<compile_context>
chip_gen: v7x
topology: tpu7x:2x2x1
jax: 0.10.0
libtpu: 0.0.40
codegen_flags: <defaults>
</compile_context>

<pallas_src>
import functools

import jax
import jax.numpy as jnp
import numpy as np
from jax import lax
from jax.experimental import pallas as pl
from jax.experimental.pallas import tpu as pltpu

_LANE = 128


def _round_up(x, m):
    return (x + m - 1) // m * m


# ----------------------------------------------------------------------------
# Fused kernel: conv1(3x3,p1)+SiLU -> conv2(3x3,p1)+SiLU -> stride-2 subsample
#               -> 1x1 detect head.  One image per grid step, all in VMEM.
# ----------------------------------------------------------------------------
def _fused_yolo_kernel(x_ref, w1_ref, b1_ref, w2_ref, b2_ref, w3_ref, b3_ref,
                       mask_ref, o_ref,
                       xcol_ref, a1_ref, a1col_ref, a2_ref, a2s_ref,
                       *, wp, row0, nrows, ho, wo):
    """Refs:
      x_ref    : (1, Tx, Cin)    zero-padded input, flattened spatial rows
      w1_ref   : (9*Cin, C1)     tap-packed conv1 weight (compute dtype)
      w2_ref   : (9*C1, C2)      tap-packed conv2 weight
      w3_ref   : (C2, 128)       1x1 head, out-channels padded to 128 lanes
      b*_ref   : (1, C*)         fused biases (f32)
      mask_ref : (nrows, 1)      1.0 on valid rows, 0.0 on wrap-around junk
      o_ref    : (1, ho*wo, 128) head output at the stride-2 positions only
      xcol_ref : (nrows, 9*Cin)  conv1 im2col scratch
      a1_ref   : (Ta, C1)        act1 scratch incl. zero padding ring
      a1col_ref: (nrows, 9*C1)   conv2 im2col scratch
      a2_ref   : (nrows, C2)     dense act2 scratch
      a2s_ref  : (ho*wo, C2)     stride-2 subsampled act2
    """
    f32 = jnp.float32
    shifts = [wp * (di - 1) + (dj - 1) for di in range(3) for dj in range(3)]
    cin = x_ref.shape[-1]
    c1 = a1_ref.shape[-1]
    ta = a1_ref.shape[0]

    # ---------------- conv1: K-packed im2col -> ONE MXU dot -----------------
    for t, d in enumerate(shifts):
        xcol_ref[:, t * cin:(t + 1) * cin] = x_ref[0, row0 + d:row0 + d + nrows, :]
    z1 = jnp.dot(xcol_ref[...], w1_ref[...], preferred_element_type=f32)
    z1 = z1 + b1_ref[...]
    a1 = z1 * jax.nn.sigmoid(z1)               # SiLU (sigmoid -> EUP slot)
    a1 = a1 * mask_ref[...]                    # wrap-around junk rows -> zeros

    # Zero ONLY the a1 padding-ring rows (every step; never gate on program_id).
    a1_ref[0:row0, :] = jnp.zeros((row0, c1), a1_ref.dtype)
    a1_ref[row0 + nrows:ta, :] = jnp.zeros((ta - row0 - nrows, c1), a1_ref.dtype)
    a1_ref[row0:row0 + nrows, :] = a1.astype(a1_ref.dtype)   # aligned store

    # ---------------- conv2 (dense): K-packed im2col -> ONE MXU dot ---------
    for t, d in enumerate(shifts):
        a1col_ref[:, t * c1:(t + 1) * c1] = a1_ref[row0 + d:row0 + d + nrows, :]
    z2 = jnp.dot(a1col_ref[...], w2_ref[...], preferred_element_type=f32)
    z2 = z2 + b2_ref[...]
    a2 = z2 * jax.nn.sigmoid(z2)
    a2_ref[...] = a2.astype(a2_ref.dtype)

    # ---------------- stride-2 subsample BEFORE the 1x1 head ----------------
    # Output position (i, j) <-> dense row 2*i*wp + 2*j: one strided sublane
    # read per output row (start 2*i*wp, stride 2, length wo).
    for i in range(ho):
        a2s_ref[i * wo:(i + 1) * wo, :] = a2_ref[pl.ds(2 * i * wp, wo, stride=2), :]

    # ---------------- 1x1 detect head, lane-dense, fully-written ------------
    y = jnp.dot(a2s_ref[...], w3_ref[...], preferred_element_type=f32)
    y = y + b3_ref[...]
    o_ref[0, :, :] = y.astype(o_ref.dtype)


# ----------------------------------------------------------------------------
# Wrapper: layout plumbing (pad / flatten / pack / unpad) around ONE pallas_call
# ----------------------------------------------------------------------------
@functools.partial(jax.jit, static_argnames=("use_bf16",))
def _forward_impl(x_nchw, w1, b1, w2, b2, w3, b3, *, use_bf16):
    n, cin, h, w = x_nchw.shape
    assert h % 2 == 0 and w % 2 == 0, "stride-2 head assumes even spatial dims"
    c1, c2, c3 = w1.shape[-1], w2.shape[-1], w3.shape[-1]
    hp, wp = h + 2, w + 2
    ho, wo = h // 2, w // 2
    c3p = _round_up(max(c3, _LANE), _LANE)

    # Flat-row geometry.  A small leading pad makes row0 % 8 == 0 and nrows is
    # rounded to a multiple of 8 so the big in-kernel stores are unmasked.
    lead = (-(wp + 1)) % 8
    row0 = lead + wp + 1                       # flat row of interior pixel (0,0)
    nrows = _round_up((h - 1) * wp + w, 8)     # dense conv rows (covers interior)
    total = _round_up(max(lead + hp * wp, row0 + nrows + wp + 1), 8)

    cdtype = jnp.bfloat16 if use_bf16 else jnp.float32

    # NCHW -> NHWC, zero-pad 1 px, flatten rows (channels on lanes), add the
    # lead/tail flat-row zero pad, and cast ONCE to the MXU operand dtype.
    x = jnp.transpose(x_nchw, (0, 2, 3, 1))
    xflat = jnp.pad(x, ((0, 0), (1, 1), (1, 1), (0, 0))).reshape(n, hp * wp, cin)
    xflat = jnp.pad(xflat, ((0, 0), (lead, total - lead - hp * wp), (0, 0)))
    xflat = xflat.astype(cdtype)

    # Tap-packed (K = 9*Cin) weights, already in the compute dtype; the 1x1
    # head is zero-padded to a lane-dense 128-wide output.  Biases stay f32.
    w1p = w1.reshape(9 * cin, c1).astype(cdtype)
    w2p = w2.reshape(9 * c1, c2).astype(cdtype)
    w3m = jnp.pad(w3.reshape(c2, c3), ((0, 0), (0, c3p - c3))).astype(cdtype)
    b1r = b1.reshape(1, c1).astype(jnp.float32)
    b2r = b2.reshape(1, c2).astype(jnp.float32)
    b3p = jnp.pad(b3, (0, c3p - c3)).reshape(1, c3p).astype(jnp.float32)

    # Row-validity mask for the "wide rows" trick (host-side, trace time).
    m = np.arange(nrows)
    mask = jnp.asarray(((m % wp) < w).astype(np.float32).reshape(nrows, 1))

    kernel = functools.partial(_fused_yolo_kernel, wp=wp, row0=row0,
                               nrows=nrows, ho=ho, wo=wo)

    itemsize = 2 if use_bf16 else 4
    flops = 2 * n * (nrows * (9 * cin * c1 + 9 * c1 * c2) + ho * wo * c2 * c3p)
    bytes_accessed = (itemsize * (xflat.size + w1p.size + w2p.size + w3m.size
                                  + n * ho * wo * c3p)
                      + 4 * (c1 + c2 + c3p + nrows))
    cost = pl.CostEstimate(flops=flops,
                           transcendentals=n * nrows * (c1 + c2),
                           bytes_accessed=bytes_accessed)

    out_flat = pl.pallas_call(
        kernel,
        out_shape=jax.ShapeDtypeStruct((n, ho * wo, c3p), cdtype),
        grid=(n,),
        in_specs=[
            pl.BlockSpec((1, total, cin), lambda b: (b, 0, 0)),   # x (padded)
            pl.BlockSpec((9 * cin, c1), lambda b: (0, 0)),        # w1 packed
            pl.BlockSpec((1, c1), lambda b: (0, 0)),              # b1
            pl.BlockSpec((9 * c1, c2), lambda b: (0, 0)),         # w2 packed
            pl.BlockSpec((1, c2), lambda b: (0, 0)),              # b2
            pl.BlockSpec((c2, c3p), lambda b: (0, 0)),            # w3 (128 lanes)
            pl.BlockSpec((1, c3p), lambda b: (0, 0)),             # b3 (128 lanes)
            pl.BlockSpec((nrows, 1), lambda b: (0, 0)),           # row mask
        ],
        out_specs=pl.BlockSpec((1, ho * wo, c3p), lambda b: (b, 0, 0)),
        scratch_shapes=[
            pltpu.VMEM((nrows, 9 * cin), cdtype),    # conv1 im2col
            pltpu.VMEM((total, c1), cdtype),         # act1 (padding-ring incl.)
            pltpu.VMEM((nrows, 9 * c1), cdtype),     # conv2 im2col
            pltpu.VMEM((nrows, c2), cdtype),         # dense act2
            pltpu.VMEM((ho * wo, c2), cdtype),       # stride-2 act2
        ],
        compiler_params=pltpu.CompilerParams(
            dimension_semantics=("parallel",),       # v7x: one image per core
            vmem_limit_bytes=32 * 1024 * 1024),
        cost_estimate=cost,
    )(xflat, w1p, b1r, w2p, b2r, w3m, b3p, mask)

    # Output holds ONLY the stride-2 head positions — no garbage ring rows.
    out = out_flat.reshape(n, ho, wo, c3p)[..., :c3].astype(jnp.float32)
    return jnp.transpose(out, (0, 3, 1, 2))          # NCHW (PyTorch convention)


# ----------------------------------------------------------------------------
# The "YOLO" model wrapped by CustomYOLOPipeline (deterministic synthetic init)
# ----------------------------------------------------------------------------
class CustomYOLOPipelinePallas:
    def __init__(self, key, in_ch=4, c1=8, c2=16, head_out=8, use_bf16_mxu=True):
        # Mirrors the PyTorch wrapper's attributes.
        self.stride = 32
        self.names = {"car": 2}
        self.use_bf16_mxu = use_bf16_mxu

        k0, k1, k2, k3, k4, k5 = jax.random.split(key, 6)
        s = 0.1
        # Weights are HWIO (kh, kw, Cin, Cout); BN already fused (inference).
        self.w1 = jax.random.normal(k0, (3, 3, in_ch, c1), jnp.float32) * s
        self.b1 = jax.random.normal(k1, (c1,), jnp.float32) * s
        self.w2 = jax.random.normal(k2, (3, 3, c1, c2), jnp.float32) * s
        self.b2 = jax.random.normal(k3, (c2,), jnp.float32) * s
        self.w3 = jax.random.normal(k4, (1, 1, c2, head_out), jnp.float32) * s
        self.b3 = jax.random.normal(k5, (head_out,), jnp.float32) * s

    def fuse(self, verbose=False):
        if verbose:
            print("Fusion is not needed for CustomYOLOPipeline. Returning self.")
        return self

    def __call__(self, x_nchw):
        # forward(x) == self.yolo(x)
        return _forward_impl(x_nchw, self.w1, self.b1, self.w2, self.b2,
                             self.w3, self.b3, use_bf16=self.use_bf16_mxu)

    # Pure-JAX reference (lax.conv, HIGHEST precision) for correctness checks.
    def reference(self, x_nchw):
        dn = ("NHWC", "HWIO", "NHWC")

        def conv(x, w, b, stride, pad, silu):
            y = lax.conv_general_dilated(
                x, w, (stride, stride), ((pad, pad), (pad, pad)),
                dimension_numbers=dn, precision=lax.Precision.HIGHEST)
            y = y + b.reshape(1, 1, 1, -1)
            if silu:
                y = y * jax.nn.sigmoid(y)
            return y

        x = jnp.transpose(x_nchw, (0, 2, 3, 1))
        x = conv(x, self.w1, self.b1, 1, 1, True)
        x = conv(x, self.w2, self.b2, 2, 1, True)
        y = conv(x, self.w3, self.b3, 1, 0, False)
        return jnp.transpose(y, (0, 3, 1, 2))


# ----------------------------------------------------------------------------
if __name__ == "__main__":
    key = jax.random.PRNGKey(0)
    kx, kp = jax.random.split(key)

    # Small shapes consistent with the module: batch=2, channels=4, 16x16 NCHW.
    x = jax.random.normal(kx, (2, 4, 16, 16), jnp.float32)

    # f32 MXU path: tight correctness check against the lax.conv reference.
    model_f32 = CustomYOLOPipelinePallas(kp, use_bf16_mxu=False).fuse()
    out_f32 = jax.block_until_ready(model_f32(x))
    ref = jax.block_until_ready(model_f32.reference(x))
    np.testing.assert_allclose(np.asarray(out_f32), np.asarray(ref),
                               rtol=2e-3, atol=2e-3)

    # bf16-operand MXU path (fast path on v6e/v7x); looser tolerance purely due
    # to bf16 operands/activations across three chained layers (f32 accum).
    model_bf16 = CustomYOLOPipelinePallas(kp, use_bf16_mxu=True).fuse()
    out_bf16 = jax.block_until_ready(model_bf16(x))
    np.testing.assert_allclose(np.asarray(out_bf16), np.asarray(ref),
                               rtol=3e-2, atol=3e-2)

    # TODO(synk): the real Ultralytics detect-head decode (DFL / anchor grid /
    # NMS) is checkpoint-dependent and not reproducible without weights; only
    # the fused conv backbone + 1x1 head hot path is implemented here.
    print("KERNEL_OK")
</pallas_src>

<mosaic_0001>
module attributes {stable_mosaic.version = 11 : i64} {
  func.func @_fused_yolo_kernel(%arg0: i32, %arg1: memref<1x336x4xf32, #tpu.memory_space<vmem>>, %arg2: memref<36x8xf32, #tpu.memory_space<vmem>>, %arg3: memref<1x8xf32, #tpu.memory_space<vmem>>, %arg4: memref<72x16xf32, #tpu.memory_space<vmem>>, %arg5: memref<1x16xf32, #tpu.memory_space<vmem>>, %arg6: memref<16x128xf32, #tpu.memory_space<vmem>>, %arg7: memref<1x128xf32, #tpu.memory_space<vmem>>, %arg8: memref<288x1xf32, #tpu.memory_space<vmem>>, %arg9: memref<1x64x128xf32, #tpu.memory_space<vmem>>, %arg10: memref<288x36xf32, #tpu.memory_space<vmem>>, %arg11: memref<336x8xf32, #tpu.memory_space<vmem>>, %arg12: memref<288x72xf32, #tpu.memory_space<vmem>>, %arg13: memref<288x16xf32, #tpu.memory_space<vmem>>, %arg14: memref<64x16xf32, #tpu.memory_space<vmem>>) attributes {dimension_semantics = [#tpu.dimension_semantics<parallel>], iteration_bounds = array<i64: 2>, scalar_prefetch = 0 : i64, scratch_operands = 5 : i64, tpu.core_type = #tpu.core_type<tc>, window_params = [{transform_indices = @transform_0, window_bounds = array<i64: 1, 336, 4>}, {pipeline_mode = #tpu.pipeline_mode<synchronous>, transform_indices = @transform_1, window_bounds = array<i64: 36, 8>}, {pipeline_mode = #tpu.pipeline_mode<synchronous>, transform_indices = @transform_2, window_bounds = array<i64: 1, 8>}, {pipeline_mode = #tpu.pipeline_mode<synchronous>, transform_indices = @transform_3, window_bounds = array<i64: 72, 16>}, {pipeline_mode = #tpu.pipeline_mode<synchronous>, transform_indices = @transform_4, window_bounds = array<i64: 1, 16>}, {pipeline_mode = #tpu.pipeline_mode<synchronous>, transform_indices = @transform_5, window_bounds = array<i64: 16, 128>}, {pipeline_mode = #tpu.pipeline_mode<synchronous>, transform_indices = @transform_6, window_bounds = array<i64: 1, 128>}, {pipeline_mode = #tpu.pipeline_mode<synchronous>, transform_indices = @transform_7, window_bounds = array<i64: 288, 1>}, {transform_indices = @transform_8, window_bounds = array<i64: 1, 64, 128>}]} {
    %c0 = arith.constant 0 : index
    %c5 = arith.constant 5 : index
    %c0_0 = arith.constant 0 : index
    %0 = vector.load %arg1[%c0, %c5, %c0_0] : memref<1x336x4xf32, #tpu.memory_space<vmem>>, vector<1x288x4xf32>
    %1 = vector.shape_cast %0 : vector<1x288x4xf32> to vector<288x4xf32>
    %c0_1 = arith.constant 0 : index
    %c0_2 = arith.constant 0 : index
    %2 = vector.load %arg10[%c0_1, %c0_2] : memref<288x36xf32, #tpu.memory_space<vmem>>, vector<288x4xf32>
    tpu.vector_store %arg10[%c0_1, %c0_2], %1 {strides = array<i32>} : memref<288x36xf32, #tpu.memory_space<vmem>>, vector<288x4xf32>,
    %c0_3 = arith.constant 0 : index
    %c6 = arith.constant 6 : index
    %c0_4 = arith.constant 0 : index
    %3 = vector.load %arg1[%c0_3, %c6, %c0_4] : memref<1x336x4xf32, #tpu.memory_space<vmem>>, vector<1x288x4xf32>
    %4 = vector.shape_cast %3 : vector<1x288x4xf32> to vector<288x4xf32>
    %c0_5 = arith.constant 0 : index
    %c4 = arith.constant 4 : index
    %5 = vector.load %arg10[%c0_5, %c4] : memref<288x36xf32, #tpu.memory_space<vmem>>, vector<288x4xf32>
    tpu.vector_store %arg10[%c0_5, %c4], %4 {strides = array<i32>} : memref<288x36xf32, #tpu.memory_space<vmem>>, vector<288x4xf32>,
    %c0_6 = arith.constant 0 : index
    %c7 = arith.constant 7 : index
    %c0_7 = arith.constant 0 : index
    %6 = vector.load %arg1[%c0_6, %c7, %c0_7] : memref<1x336x4xf32, #tpu.memory_space<vmem>>, vector<1x288x4xf32>
    %7 = vector.shape_cast %6 : vector<1x288x4xf32> to vector<288x4xf32>
    %c0_8 = arith.constant 0 : index
    %c8 = arith.constant 8 : index
    %8 = vector.load %arg10[%c0_8, %c8] : memref<288x36xf32, #tpu.memory_space<vmem>>, vector<288x4xf32>
    tpu.vector_store %arg10[%c0_8, %c8], %7 {strides = array<i32>} : memref<288x36xf32, #tpu.memory_space<vmem>>, vector<288x4xf32>,
    %c0_9 = arith.constant 0 : index
    %c23 = arith.constant 23 : index
    %c0_10 = arith.constant 0 : index
    %9 = vector.load %arg1[%c0_9, %c23, %c0_10] : memref<1x336x4xf32, #tpu.memory_space<vmem>>, vector<1x288x4xf32>
    %10 = vector.shape_cast %9 : vector<1x288x4xf32> to vector<288x4xf32>
    %c0_11 = arith.constant 0 : index
    %c12 = arith.constant 12 : index
    %11 = vector.load %arg10[%c0_11, %c12] : memref<288x36xf32, #tpu.memory_space<vmem>>, vector<288x4xf32>
    tpu.vector_store %arg10[%c0_11, %c12], %10 {strides = array<i32>} : memref<288x36xf32, #tpu.memory_space<vmem>>, vector<288x4xf32>,
    %c0_12 = arith.constant 0 : index
    %c24 = arith.constant 24 : index
    %c0_13 = arith.constant 0 : index
    %12 = vector.load %arg1[%c0_12, %c24, %c0_13] : memref<1x336x4xf32, #tpu.memory_space<vmem>>, vector<1x288x4xf32>
    %13 = vector.shape_cast %12 : vector<1x288x4xf32> to vector<288x4xf32>
    %c0_14 = arith.constant 0 : index
    %c16 = arith.constant 16 : index
    %14 = vector.load %arg10[%c0_14, %c16] : memref<288x36xf32, #tpu.memory_space<vmem>>, vector<288x4xf32>
    tpu.vector_store %arg10[%c0_14, %c16], %13 {strides = array<i32>} : memref<288x36xf32, #tpu.memory_space<vmem>>, vector<288x4xf32>,
    %c0_15 = arith.constant 0 : index
    %c25 = arith.constant 25 : index
    %c0_16 = arith.constant 0 : index
    %15 = vector.load %arg1[%c0_15, %c25, %c0_16] : memref<1x336x4xf32, #tpu.memory_space<vmem>>, vector<1x288x4xf32>
    %16 = vector.shape_cast %15 : vector<1x288x4xf32> to vector<288x4xf32>
    %c0_17 = arith.constant 0 : index
    %c20 = arith.constant 20 : index
    %17 = vector.load %arg10[%c0_17, %c20] : memref<288x36xf32, #tpu.memory_space<vmem>>, vector<288x4xf32>
    tpu.vector_store %arg10[%c0_17, %c20], %16 {strides = array<i32>} : memref<288x36xf32, #tpu.memory_space<vmem>>, vector<288x4xf32>,
    %c0_18 = arith.constant 0 : index
    %c41 = arith.constant 41 : index
    %c0_19 = arith.constant 0 : index
    %18 = vector.load %arg1[%c0_18, %c41, %c0_19] : memref<1x336x4xf32, #tpu.memory_space<vmem>>, vector<1x288x4xf32>
    %19 = vector.shape_cast %18 : vector<1x288x4xf32> to vector<288x4xf32>
    %c0_20 = arith.constant 0 : index
    %c24_21 = arith.constant 24 : index
    %20 = vector.load %arg10[%c0_20, %c24_21] : memref<288x36xf32, #tpu.memory_space<vmem>>, vector<288x4xf32>
    tpu.vector_store %arg10[%c0_20, %c24_21], %19 {strides = array<i32>} : memref<288x36xf32, #tpu.memory_space<vmem>>, vector<288x4xf32>,
    %c0_22 = arith.constant 0 : index
    %c42 = arith.constant 42 : index
    %c0_23 = arith.constant 0 : index
    %21 = vector.load %arg1[%c0_22, %c42, %c0_23] : memref<1x336x4xf32, #tpu.memory_space<vmem>>, vector<1x288x4xf32>
    %22 = vector.shape_cast %21 : vector<1x288x4xf32> to vector<288x4xf32>
    %c0_24 = arith.constant 0 : index
    %c28 = arith.constant 28 : index
    %23 = vector.load %arg10[%c0_24, %c28] : memref<288x36xf32, #tpu.memory_space<vmem>>, vector<288x4xf32>
    tpu.vector_store %arg10[%c0_24, %c28], %22 {strides = array<i32>} : memref<288x36xf32, #tpu.memory_space<vmem>>, vector<288x4xf32>,
    %c0_25 = arith.constant 0 : index
    %c43 = arith.constant 43 : index
    %c0_26 = arith.constant 0 : index
    %24 = vector.load %arg1[%c0_25, %c43, %c0_26] : memref<1x336x4xf32, #tpu.memory_space<vmem>>, vector<1x288x4xf32>
    %25 = vector.shape_cast %24 : vector<1x288x4xf32> to vector<288x4xf32>
    %c0_27 = arith.constant 0 : index
    %c32 = arith.constant 32 : index
    %26 = vector.load %arg10[%c0_27, %c32] : memref<288x36xf32, #tpu.memory_space<vmem>>, vector<288x4xf32>
    tpu.vector_store %arg10[%c0_27, %c32], %25 {strides = array<i32>} : memref<288x36xf32, #tpu.memory_space<vmem>>, vector<288x4xf32>,
    %c0_28 = arith.constant 0 : index
    %c0_29 = arith.constant 0 : index
    %27 = vector.load %arg10[%c0_28, %c0_29] : memref<288x36xf32, #tpu.memory_space<vmem>>, vector<288x36xf32>
    %c0_30 = arith.constant 0 : index
    %c0_31 = arith.constant 0 : index
    %28 = vector.load %arg2[%c0_30, %c0_31] : memref<36x8xf32, #tpu.memory_space<vmem>>, vector<36x8xf32>
    %cst = arith.constant dense<0.000000e+00> : vector<288x8xf32>
    %29 = tpu.matmul %27, %28, %cst {dimension_numbers = #tpu.dot_dimension_numbers<[1], [0], [0], [1], [0, 0, 1, 1], [], []>} : vector<288x36xf32>, vector<36x8xf32>, vector<288x8xf32> -> vector<288x8xf32>
    %c0_32 = arith.constant 0 : index
    %c0_33 = arith.constant 0 : index
    %30 = vector.load %arg3[%c0_32, %c0_33] : memref<1x8xf32, #tpu.memory_space<vmem>>, vector<1x8xf32>
    %31 = vector.broadcast %30 : vector<1x8xf32> to vector<288x8xf32>
    %32 = arith.addf %29, %31 : vector<288x8xf32>
    %33 = arith.negf %32 : vector<288x8xf32>
    %34 = math.exp %33 : vector<288x8xf32>
    %cst_34 = arith.constant 1.000000e+00 : f32
    %35 = vector.broadcast %cst_34 : f32 to vector<288x8xf32>
    %36 = arith.addf %35, %34 : vector<288x8xf32>
    %37 = arith.divf %35, %36 : vector<288x8xf32>
    %38 = arith.mulf %32, %37 : vector<288x8xf32>
    %c0_35 = arith.constant 0 : index
    %c0_36 = arith.constant 0 : index
    %39 = vector.load %arg8[%c0_35, %c0_36] : memref<288x1xf32, #tpu.memory_space<vmem>>, vector<288x1xf32>
    %40 = vector.broadcast %39 : vector<288x1xf32> to vector<288x8xf32>
    %41 = arith.mulf %38, %40 : vector<288x8xf32>
    %cst_37 = arith.constant 0.000000e+00 : f32
    %42 = vector.broadcast %cst_37 : f32 to vector<24x8xf32>
    %c0_38 = arith.constant 0 : index
    %c0_39 = arith.constant 0 : index
    %43 = vector.load %arg11[%c0_38, %c0_39] : memref<336x8xf32, #tpu.memory_space<vmem>>, vector<24x8xf32>
    tpu.vector_store %arg11[%c0_38, %c0_39], %42 {strides = array<i32>} : memref<336x8xf32, #tpu.memory_space<vmem>>, vector<24x8xf32>,
    %cst_40 = arith.constant 0.000000e+00 : f32
    %44 = vector.broadcast %cst_40 : f32 to vector<24x8xf32>
    %c312 = arith.constant 312 : index
    %c0_41 = arith.constant 0 : index
    %45 = vector.load %arg11[%c312, %c0_41] : memref<336x8xf32, #tpu.memory_space<vmem>>, vector<24x8xf32>
    tpu.vector_store %arg11[%c312, %c0_41], %44 {strides = array<i32>} : memref<336x8xf32, #tpu.memory_space<vmem>>, vector<24x8xf32>,
    %c24_42 = arith.constant 24 : index
    %c0_43 = arith.constant 0 : index
    %46 = vector.load %arg11[%c24_42, %c0_43] : memref<336x8xf32, #tpu.memory_space<vmem>>, vector<288x8xf32>
    tpu.vector_store %arg11[%c24_42, %c0_43], %41 {strides = array<i32>} : memref<336x8xf32, #tpu.memory_space<vmem>>, vector<288x8xf32>,
    %c5_44 = arith.constant 5 : index
    %c0_45 = arith.constant 0 : index
    %47 = vector.load %arg11[%c5_44, %c0_45] : memref<336x8xf32, #tpu.memory_space<vmem>>, vector<288x8xf32>
    %c0_46 = arith.constant 0 : index
    %c0_47 = arith.constant 0 : index
    %48 = vector.load %arg12[%c0_46, %c0_47] : memref<288x72xf32, #tpu.memory_space<vmem>>, vector<288x8xf32>
    tpu.vector_store %arg12[%c0_46, %c0_47], %47 {strides = array<i32>} : memref<288x72xf32, #tpu.memory_space<vmem>>, vector<288x8xf32>,
    %c6_48 = arith.constant 6 : index
    %c0_49 = arith.constant 0 : index
    %49 = vector.load %arg11[%c6_48, %c0_49] : memref<336x8xf32, #tpu.memory_space<vmem>>, vector<288x8xf32>
    %c0_50 = arith.constant 0 : index
    %c8_51 = arith.constant 8 : index
    %50 = vector.load %arg12[%c0_50, %c8_51] : memref<288x72xf32, #tpu.memory_space<vmem>>, vector<288x8xf32>
    tpu.vector_store %arg12[%c0_50, %c8_51], %49 {strides = array<i32>} : memref<288x72xf32, #tpu.memory_space<vmem>>, vector<288x8xf32>,
    %c7_52 = arith.constant 7 : index
    %c0_53 = arith.constant 0 : index
    %51 = vector.load %arg11[%c7_52, %c0_53] : memref<336x8xf32, #tpu.memory_space<vmem>>, vector<288x8xf32>
    %c0_54 = arith.constant 0 : index
    %c16_55 = arith.constant 16 : index
    %52 = vector.load %arg12[%c0_54, %c16_55] : memref<288x72xf32, #tpu.memory_space<vmem>>, vector<288x8xf32>
    tpu.vector_store %arg12[%c0_54, %c16_55], %51 {strides = array<i32>} : memref<288x72xf32, #tpu.memory_space<vmem>>, vector<288x8xf32>,
    %c23_56 = arith.constant 23 : index
    %c0_57 = arith.constant 0 : index
    %53 = vector.load %arg11[%c23_56, %c0_57] : memref<336x8xf32, #tpu.memory_space<vmem>>, vector<288x8xf32>
    %c0_58 = arith.constant 0 : index
    %c24_59 = arith.constant 24 : index
    %54 = vector.load %arg12[%c0_58, %c24_59] : memref<288x72xf32, #tpu.memory_space<vmem>>, vector<288x8xf32>
    tpu.vector_store %arg12[%c0_58, %c24_59], %53 {strides = array<i32>} : memref<288x72xf32, #tpu.memory_space<vmem>>, vector<288x8xf32>,
    %c24_60 = arith.constant 24 : index
    %c0_61 = arith.constant 0 : index
    %55 = vector.load %arg11[%c24_60, %c0_61] : memref<336x8xf32, #tpu.memory_space<vmem>>, vector<288x8xf32>
    %c0_62 = arith.constant 0 : index
    %c32_63 = arith.constant 32 : index
    %56 = vector.load %arg12[%c0_62, %c32_63] : memref<288x72xf32, #tpu.memory_space<vmem>>, vector<288x8xf32>
    tpu.vector_store %arg12[%c0_62, %c32_63], %55 {strides = array<i32>} : memref<288x72xf32, #tpu.memory_space<vmem>>, vector<288x8xf32>,
    %c25_64 = arith.constant 25 : index
    %c0_65 = arith.constant 0 : index
    %57 = vector.load %arg11[%c25_64, %c0_65] : memref<336x8xf32, #tpu.memory_space<vmem>>, vector<288x8xf32>
    %c0_66 = arith.constant 0 : index
    %c40 = arith.constant 40 : index
    %58 = vector.load %arg12[%c0_66, %c40] : memref<288x72xf32, #tpu.memory_space<vmem>>, vector<288x8xf32>
    tpu.vector_store %arg12[%c0_66, %c40], %57 {strides = array<i32>} : memref<288x72xf32, #tpu.memory_space<vmem>>, vector<288x8xf32>,
    %c41_67 = arith.constant 41 : index
    %c0_68 = arith.constant 0 : index
    %59 = vector.load %arg11[%c41_67, %c0_68] : memref<336x8xf32, #tpu.memory_space<vmem>>, vector<288x8xf32>
    %c0_69 = arith.constant 0 : index
    %c48 = arith.constant 48 : index
    %60 = vector.load %arg12[%c0_69, %c48] : memref<288x72xf32, #tpu.memory_space<vmem>>, vector<288x8xf32>
    tpu.vector_store %arg12[%c0_69, %c48], %59 {strides = array<i32>} : memref<288x72xf32, #tpu.memory_space<vmem>>, vector<288x8xf32>,
    %c42_70 = arith.constant 42 : index
    %c0_71 = arith.constant 0 : index
    %61 = vector.load %arg11[%c42_70, %c0_71] : memref<336x8xf32, #tpu.memory_space<vmem>>, vector<288x8xf32>
    %c0_72 = arith.constant 0 : index
    %c56 = arith.constant 56 : index
    %62 = vector.load %arg12[%c0_72, %c56] : memref<288x72xf32, #tpu.memory_space<vmem>>, vector<288x8xf32>
    tpu.vector_store %arg12[%c0_72, %c56], %61 {strides = array<i32>} : memref<288x72xf32, #tpu.memory_space<vmem>>, vector<288x8xf32>,
    %c43_73 = arith.constant 43 : index
    %c0_74 = arith.constant 0 : index
    %63 = vector.load %arg11[%c43_73, %c0_74] : memref<336x8xf32, #tpu.memory_space<vmem>>, vector<288x8xf32>
    %c0_75 = arith.constant 0 : index
    %c64 = arith.constant 64 : index
    %64 = vector.load %arg12[%c0_75, %c64] : memref<288x72xf32, #tpu.memory_space<vmem>>, vector<288x8xf32>
    tpu.vector_store %arg12[%c0_75, %c64], %63 {strides = array<i32>} : memref<288x72xf32, #tpu.memory_space<vmem>>, vector<288x8xf32>,
    %c0_76 = arith.constant 0 : index
    %c0_77 = arith.constant 0 : index
    %65 = vector.load %arg12[%c0_76, %c0_77] : memref<288x72xf32, #tpu.memory_space<vmem>>, vector<288x72xf32>
    %c0_78 = arith.constant 0 : index
    %c0_79 = arith.constant 0 : index
    %66 = vector.load %arg4[%c0_78, %c0_79] : memref<72x16xf32, #tpu.memory_space<vmem>>, vector<72x16xf32>
    %cst_80 = arith.constant dense<0.000000e+00> : vector<288x16xf32>
    %67 = tpu.matmul %65, %66, %cst_80 {dimension_numbers = #tpu.dot_dimension_numbers<[1], [0], [0], [1], [0, 0, 1, 1], [], []>} : vector<288x72xf32>, vector<72x16xf32>, vector<288x16xf32> -> vector<288x16xf32>
    %c0_81 = arith.constant 0 : index
    %c0_82 = arith.constant 0 : index
    %68 = vector.load %arg5[%c0_81, %c0_82] : memref<1x16xf32, #tpu.memory_space<vmem>>, vector<1x16xf32>
    %69 = vector.broadcast %68 : vector<1x16xf32> to vector<288x16xf32>
    %70 = arith.addf %67, %69 : vector<288x16xf32>
    %71 = arith.negf %70 : vector<288x16xf32>
    %72 = math.exp %71 : vector<288x16xf32>
    %cst_83 = arith.constant 1.000000e+00 : f32
    %73 = vector.broadcast %cst_83 : f32 to vector<288x16xf32>
    %74 = arith.addf %73, %72 : vector<288x16xf32>
    %75 = arith.divf %73, %74 : vector<288x16xf32>
    %76 = arith.mulf %70, %75 : vector<288x16xf32>
    %c0_84 = arith.constant 0 : index
    %c0_85 = arith.constant 0 : index
    %77 = vector.load %arg13[%c0_84, %c0_85] : memref<288x16xf32, #tpu.memory_space<vmem>>, vector<288x16xf32>
    tpu.vector_store %arg13[%c0_84, %c0_85], %76 {strides = array<i32>} : memref<288x16xf32, #tpu.memory_space<vmem>>, vector<288x16xf32>,
    %c0_86 = arith.constant 0 : index
    %c0_87 = arith.constant 0 : index
    %78 = tpu.strided_load %arg13[%c0_86, %c0_87] {strides = array<i32: 2, 1>} : memref<288x16xf32, #tpu.memory_space<vmem>>, vector<8x16xf32>
    %c0_88 = arith.constant 0 : index
    %c0_89 = arith.constant 0 : index
    %79 = vector.load %arg14[%c0_88, %c0_89] : memref<64x16xf32, #tpu.memory_space<vmem>>, vector<8x16xf32>
    tpu.vector_store %arg14[%c0_88, %c0_89], %78 {strides = array<i32>} : memref<64x16xf32, #tpu.memory_space<vmem>>, vector<8x16xf32>,
    %c36 = arith.constant 36 : index
    %c0_90 = arith.constant 0 : index
    %80 = tpu.strided_load %arg13[%c36, %c0_90] {strides = array<i32: 2, 1>} : memref<288x16xf32, #tpu.memory_space<vmem>>, vector<8x16xf32>
    %c8_91 = arith.constant 8 : index
    %c0_92 = arith.constant 0 : index
    %81 = vector.load %arg14[%c8_91, %c0_92] : memref<64x16xf32, #tpu.memory_space<vmem>>, vector<8x16xf32>
    tpu.vector_store %arg14[%c8_91, %c0_92], %80 {strides = array<i32>} : memref<64x16xf32, #tpu.memory_space<vmem>>, vector<8x16xf32>,
    %c72 = arith.constant 72 : index
    %c0_93 = arith.constant 0 : index
    %82 = tpu.strided_load %arg13[%c72, %c0_93] {strides = array<i32: 2, 1>} : memref<288x16xf32, #tpu.memory_space<vmem>>, vector<8x16xf32>
    %c16_94 = arith.constant 16 : index
    %c0_95 = arith.constant 0 : index
    %83 = vector.load %arg14[%c16_94, %c0_95] : memref<64x16xf32, #tpu.memory_space<vmem>>, vector<8x16xf32>
    tpu.vector_store %arg14[%c16_94, %c0_95], %82 {strides = array<i32>} : memref<64x16xf32, #tpu.memory_space<vmem>>, vector<8x16xf32>,
    %c108 = arith.constant 108 : index
    %c0_96 = arith.constant 0 : index
    %84 = tpu.strided_load %arg13[%c108, %c0_96] {strides = array<i32: 2, 1>} : memref<288x16xf32, #tpu.memory_space<vmem>>, vector<8x16xf32>
    %c24_97 = arith.constant 24 : index
    %c0_98 = arith.constant 0 : index
    %85 = vector.load %arg14[%c24_97, %c0_98] : memref<64x16xf32, #tpu.memory_space<vmem>>, vector<8x16xf32>
    tpu.vector_store %arg14[%c24_97, %c0_98], %84 {strides = array<i32>} : memref<64x16xf32, #tpu.memory_space<vmem>>, vector<8x16xf32>,
    %c144 = arith.constant 144 : index
    %c0_99 = arith.constant 0 : index
    %86 = tpu.strided_load %arg13[%c144, %c0_99] {strides = array<i32: 2, 1>} : memref<288x16xf32, #tpu.memory_space<vmem>>, vector<8x16xf32>
    %c32_100 = arith.constant 32 : index
    %c0_101 = arith.constant 0 : index
    %87 = vector.load %arg14[%c32_100, %c0_101] : memref<64x16xf32, #tpu.memory_space<vmem>>, vector<8x16xf32>
    tpu.vector_store %arg14[%c32_100, %c0_101], %86 {strides = array<i32>} : memref<64x16xf32, #tpu.memory_space<vmem>>, vector<8x16xf32>,
    %c180 = arith.constant 180 : index
    %c0_102 = arith.constant 0 : index
    %88 = tpu.strided_load %arg13[%c180, %c0_102] {strides = array<i32: 2, 1>} : memref<288x16xf32, #tpu.memory_space<vmem>>, vector<8x16xf32>
    %c40_103 = arith.constant 40 : index
    %c0_104 = arith.constant 0 : index
    %89 = vector.load %arg14[%c40_103, %c0_104] : memref<64x16xf32, #tpu.memory_space<vmem>>, vector<8x16xf32>
    tpu.vector_store %arg14[%c40_103, %c0_104], %88 {strides = array<i32>} : memref<64x16xf32, #tpu.memory_space<vmem>>, vector<8x16xf32>,
    %c216 = arith.constant 216 : index
    %c0_105 = arith.constant 0 : index
    %90 = tpu.strided_load %arg13[%c216, %c0_105] {strides = array<i32: 2, 1>} : memref<288x16xf32, #tpu.memory_space<vmem>>, vector<8x16xf32>
    %c48_106 = arith.constant 48 : index
    %c0_107 = arith.constant 0 : index
    %91 = vector.load %arg14[%c48_106, %c0_107] : memref<64x16xf32, #tpu.memory_space<vmem>>, vector<8x16xf32>
    tpu.vector_store %arg14[%c48_106, %c0_107], %90 {strides = array<i32>} : memref<64x16xf32, #tpu.memory_space<vmem>>, vector<8x16xf32>,
    %c252 = arith.constant 252 : index
    %c0_108 = arith.constant 0 : index
    %92 = tpu.strided_load %arg13[%c252, %c0_108] {strides = array<i32: 2, 1>} : memref<288x16xf32, #tpu.memory_space<vmem>>, vector<8x16xf32>
    %c56_109 = arith.constant 56 : index
    %c0_110 = arith.constant 0 : index
    %93 = vector.load %arg14[%c56_109, %c0_110] : memref<64x16xf32, #tpu.memory_space<vmem>>, vector<8x16xf32>
    tpu.vector_store %arg14[%c56_109, %c0_110], %92 {strides = array<i32>} : memref<64x16xf32, #tpu.memory_space<vmem>>, vector<8x16xf32>,
    %c0_111 = arith.constant 0 : index
    %c0_112 = arith.constant 0 : index
    %94 = vector.load %arg14[%c0_111, %c0_112] : memref<64x16xf32, #tpu.memory_space<vmem>>, vector<64x16xf32>
    %c0_113 = arith.constant 0 : index
    %c0_114 = arith.constant 0 : index
    %95 = vector.load %arg6[%c0_113, %c0_114] : memref<16x128xf32, #tpu.memory_space<vmem>>, vector<16x128xf32>
    %cst_115 = arith.constant dense<0.000000e+00> : vector<64x128xf32>
    %96 = tpu.matmul %94, %95, %cst_115 {dimension_numbers = #tpu.dot_dimension_numbers<[1], [0], [0], [1], [0, 0, 1, 1], [], []>} : vector<64x16xf32>, vector<16x128xf32>, vector<64x128xf32> -> vector<64x128xf32>
    %c0_116 = arith.constant 0 : index
    %c0_117 = arith.constant 0 : index
    %97 = vector.load %arg7[%c0_116, %c0_117] : memref<1x128xf32, #tpu.memory_space<vmem>>, vector<1x128xf32>
    %98 = vector.broadcast %97 : vector<1x128xf32> to vector<64x128xf32>
    %99 = arith.addf %96, %98 : vector<64x128xf32>
    %c0_118 = arith.constant 0 : index
    %c0_119 = arith.constant 0 : index
    %c0_120 = arith.constant 0 : index
    %100 = vector.load %arg9[%c0_118, %c0_119, %c0_120] : memref<1x64x128xf32, #tpu.memory_space<vmem>>, vector<1x64x128xf32>
    %101 = vector.shape_cast %100 : vector<1x64x128xf32> to vector<64x128xf32>
    %102 = vector.shape_cast %99 : vector<64x128xf32> to vector<1x64x128xf32>
    tpu.vector_store %arg9[%c0_118, %c0_119, %c0_120], %102 {strides = array<i32>} : memref<1x64x128xf32, #tpu.memory_space<vmem>>, vector<1x64x128xf32>,
    return
  }
  func.func @transform_0(%arg0: i32) -> (i32, i32, i32) {
    %c0_i32 = arith.constant 0 : i32
    %c0_i32_0 = arith.constant 0 : i32
    %c0_i32_1 = arith.constant 0 : i32
    return %arg0, %c0_i32, %c0_i32_0 : i32, i32, i32
  }
  func.func @transform_1(%arg0: i32) -> (i32, i32) {
    %c0_i32 = arith.constant 0 : i32
    %c0_i32_0 = arith.constant 0 : i32
    %c0_i32_1 = arith.constant 0 : i32
    return %c0_i32, %c0_i32_0 : i32, i32
  }
  func.func @transform_2(%arg0: i32) -> (i32, i32) {
    %c0_i32 = arith.constant 0 : i32
    %c0_i32_0 = arith.constant 0 : i32
    %c0_i32_1 = arith.constant 0 : i32
    return %c0_i32, %c0_i32_0 : i32, i32
  }
  func.func @transform_3(%arg0: i32) -> (i32, i32) {
    %c0_i32 = arith.constant 0 : i32
    %c0_i32_0 = arith.constant 0 : i32
    %c0_i32_1 = arith.constant 0 : i32
    return %c0_i32, %c0_i32_0 : i32, i32
  }
  func.func @transform_4(%arg0: i32) -> (i32, i32) {
    %c0_i32 = arith.constant 0 : i32
    %c0_i32_0 = arith.constant 0 : i32
    %c0_i32_1 = arith.constant 0 : i32
    return %c0_i32, %c0_i32_0 : i32, i32
  }
  func.func @transform_5(%arg0: i32) -> (i32, i32) {
    %c0_i32 = arith.constant 0 : i32
    %c0_i32_0 = arith.constant 0 : i32
    %c0_i32_1 = arith.constant 0 : i32
    return %c0_i32, %c0_i32_0 : i32, i32
  }
  func.func @transform_6(%arg0: i32) -> (i32, i32) {
    %c0_i32 = arith.constant 0 : i32
    %c0_i32_0 = arith.constant 0 : i32
    %c0_i32_1 = arith.constant 0 : i32
    return %c0_i32, %c0_i32_0 : i32, i32
  }
  func.func @transform_7(%arg0: i32) -> (i32, i32) {
    %c0_i32 = arith.constant 0 : i32
    %c0_i32_0 = arith.constant 0 : i32
    %c0_i32_1 = arith.constant 0 : i32
    return %c0_i32, %c0_i32_0 : i32, i32
  }
  func.func @transform_8(%arg0: i32) -> (i32, i32, i32) {
    %c0_i32 = arith.constant 0 : i32
    %c0_i32_0 = arith.constant 0 : i32
    %c0_i32_1 = arith.constant 0 : i32
    return %arg0, %c0_i32, %c0_i32_0 : i32, i32, i32
  }
}

</mosaic_0001>

<bundles_post_ra>
// kernel: _forward_impl.1
= control target key start
LH: loop header
LB: loop body
LE: loop exit
PB: predicated region body
PF: predicated region fallthrough
CT: control target
= control target key end

     0   :  { %s6630_s27 = smov 0   ;;  %s9244_s0 = inlined_call_operand.vmem [shape: f32[2,336,4], index: 0, kind: input, shape index: {}]   ;;  %s9245_s1 = inlined_call_operand.vmem [shape: f32[36,8], index: 1, kind: input, shape index: {}]   ;;  %s9246_s2 = inlined_call_operand.vmem [shape: f32[1,8], index: 2, kind: input, shape index: {}]   ;;  %s9247_s3 = inlined_call_operand.vmem [shape: f32[72,16], index: 3, kind: input, shape index: {}]   ;;  %s9248_s4 = inlined_call_operand.vmem [shape: f32[1,16], index: 4, kind: input, shape index: {}]   ;;  %s9249_s5 = inlined_call_operand.vmem [shape: f32[16,128], index: 5, kind: input, shape index: {}]   ;;  %s9250_s6 = inlined_call_operand.vmem [shape: f32[1,128], index: 6, kind: input, shape index: {}]   ;;  %s9251_s7 = inlined_call_operand.vmem [shape: f32[288,1], index: 7, kind: input, shape index: {}]   ;;  %s9252_s8 = inlined_call_operand.vmem [shape: f32[2,64,128], index: 8, kind: output, shape index: {}]  }
   0x1 LB: > { %s5803_s28 = sadd.s32 4294967295, %s6569_s27   ;;  %p5807_p0 = scmp.ge.s32.totalorder %s6569_s27, 1  ;;  %s6569_s27 = sphi %s6630_s27, %s18_s27  }
   0x2   : > { %p262_p1 = scmp.lt.s32.totalorder %s6569_s27, 3 }
   0x4   : > { %p263_p2 = pnand %p5807_p0, %p262_p1 }
   0x5   : > { %p296_p3 = scmp.lt.s32.totalorder (!%p263_p2), %s5803_s28, 1  ;;  %s6571_s11 = smov (!%p263_p2), 4   ;;  %vm342_vm0 = vcmask (!%p263_p2), 31744   ;;  %vm559_vm1 = vcmask (!%p263_p2), 64544   ;;  %vm776_vm2 = vcmask (!%p263_p2), 97344   ;;  %vm993_vm3 = vcmask (!%p263_p2), 130144  }
   0x6   : > { %266 = sbr.rel (%p263_p2) target bundleno = 1899 (0x76b), region = 52  ;;  %s6572_s12 = smov (!%p263_p2), 8   ;;  %vm1210_vm4 = vcmask (!%p263_p2), 162944   ;;  %vm2272_vm5 = vcmask (!%p263_p2), 1043456   ;;  %vm1427_vm6 = vcmask (!%p263_p2), 195744   ;;  %vm1644_vm7 = vcmask (!%p263_p2), 228544  }
   0x7   : > { %s6573_s13 = smov (!%p263_p2), 12   ;;  %s6574_s14 = smov (!%p263_p2), 16   ;;  %vm1861_vm8 = vcmask (!%p263_p2), 261344   ;;  %vm2078_vm9 = vcmask (!%p263_p2), 294144   ;;  %vm2163_vm10 = vcmask (!%p263_p2), 293888   ;;  %vm3025_vm11 = vcmask (!%p263_p2), 64512  }
   0x8   : > { %s6575_s15 = smov (!%p263_p2), 20   ;;  %s6576_s24 = smov (!%p263_p2), 24   ;;  %vm3320_vm12 = vcmask (!%p263_p2), 130112   ;;  %vm3537_vm13 = vcmask (!%p263_p2), 195712   ;;  %vm3754_vm14 = vcmask (!%p263_p2), 261312   ;;  %vm3971_vm15 = vcmask (!%p263_p2), 326912  }
   0x9   : > { %s6578_s30 = smov (!%p263_p2), 32   ;;  %s6581_s21 = smov (!%p263_p2), 40  }
   0xa   : > { %s6582_s22 = smov (!%p263_p2), 48  }
   0xd   : > { %s9254_s28 = smov (!%p296_p3, %s5803_s28), 1 }
   0xe   : > { %s6248_s29 = smul.u32 336, %s9254_s28 }
  0x10   : > { %s6644_s10 = scalar_lea.vmem %s9244_s0, %s6248_s29  ;;  %s6577_s29 = smov 28  }
  0x11   : > { %v381_v0 = vld [vmem:[%s6644_s10 + $0x16] sm:$0xff]  ;;  %v379_v1 = vld [vmem:[%s6644_s10 + $0x6] sm:$0xff]  ;;  %v382_v2 = vld [vmem:[%s6644_s10 + $0x1e] sm:$0xff] }
  0x12   : > { %455 = vrot.lane.b32.xlu1 %v381_v0, %s6571_s11  ;;  %451 = vrot.lane.b32.xlu0 %v379_v1, %s6571_s11  ;;  %v380_v3 = vld [vmem:[%s6644_s10 + $0xe] sm:$0xff]  ;;  %v383_v5 = vld [vmem:[%s6644_s10 + $0x26] sm:$0xff] }
  0x13   : > { %v384_v4 = vld [vmem:[%s6644_s10 + $0x2e] sm:$0xff]  ;;  %v386_v6 = vld [vmem:[%s6644_s10 + $0x3e] sm:$0xff]  ;;  %v385_v7 = vld [vmem:[%s6644_s10 + $0x36] sm:$0xff] }
  0x14   : > { %v388_v8 = vld [vmem:[%s6644_s10 + $0x4e] sm:$0xff]  ;;  %v387_v9 = vld [vmem:[%s6644_s10 + $0x46] sm:$0xff]  ;;  %v390_v10 = vld [vmem:[%s6644_s10 + $0x5e] sm:$0xff] }
  0x15   : > { %v389_v11 = vld [vmem:[%s6644_s10 + $0x56] sm:$0xff]  ;;  %v306_v12 = vld [vmem:[%s6644_s10 + $0x5] sm:$0xff]  ;;  %v392_v14 = vld [vmem:[%s6644_s10 + $0x6e] sm:$0xff] }
  0x16   : > { %457 = vrot.lane.b32.xlu1 %v382_v2, %s6571_s11  ;;  %453 = vrot.lane.b32.xlu0 %v380_v3, %s6571_s11  ;;  %v308_v13 = vld [vmem:[%s6644_s10 + $0x15] sm:$0xff]  ;;  %v391_v15 = vld [vmem:[%s6644_s10 + $0x66] sm:$0xff]  ;;  %343 = vst.msk [vmem:[#allocation2] sm:$0xff] %vm342_vm0, %v306_v12 }
  0x17   : > { %345 = vst.msk [vmem:[#allocation2 + $0x10] sm:$0xff] %vm342_vm0, %v308_v13  ;;  %v307_v16 = vld [vmem:[%s6644_s10 + $0xd] sm:$0xff]  ;;  %v309_v17 = vld [vmem:[%s6644_s10 + $0x1d] sm:$0xff]  ;;  %v310_v18 = vld [vmem:[%s6644_s10 + $0x25] sm:$0xff] }
  0x18   : > { %344 = vst.msk [vmem:[#allocation2 + $0x8] sm:$0xff] %vm342_vm0, %v307_v16  ;;  %346 = vst.msk [vmem:[#allocation2 + $0x18] sm:$0xff] %vm342_vm0, %v309_v17  ;;  %v311_v19 = vld [vmem:[%s6644_s10 + $0x2d] sm:$0xff]  ;;  %v312_v20 = vld [vmem:[%s6644_s10 + $0x35] sm:$0xff] }
  0x19   : > { %347 = vst.msk [vmem:[#allocation2 + $0x20] sm:$0xff] %vm342_vm0, %v310_v18  ;;  %348 = vst.msk [vmem:[#allocation2 + $0x28] sm:$0xff] %vm342_vm0, %v311_v19  ;;  %v394_v21 = vld [vmem:[%s6644_s10 + $0x7e] sm:$0xff]  ;;  %v393_v22 = vld [vmem:[%s6644_s10 + $0x76] sm:$0xff] }
  0x1a   : > { %461 = vrot.lane.b32.xlu1 %v384_v4, %s6571_s11  ;;  %459 = vrot.lane.b32.xlu0 %v383_v5, %s6571_s11  ;;  %349 = vst.msk [vmem:[#allocation2 + $0x30] sm:$0xff] %vm342_vm0, %v312_v20  ;;  %v313_v23 = vld [vmem:[%s6644_s10 + $0x3d] sm:$0xff]  ;;  %v314_v24 = vld [vmem:[%s6644_s10 + $0x45] sm:$0xff] }
  0x1b   : > { %350 = vst.msk [vmem:[#allocation2 + $0x38] sm:$0xff] %vm342_vm0, %v313_v23  ;;  %v315_v25 = vld [vmem:[%s6644_s10 + $0x4d] sm:$0xff]  ;;  %351 = vst.msk [vmem:[#allocation2 + $0x40] sm:$0xff] %vm342_vm0, %v314_v24  ;;  %v316_v26 = vld [vmem:[%s6644_s10 + $0x55] sm:$0xff] }
  0x1c   : > { %352 = vst.msk [vmem:[#allocation2 + $0x48] sm:$0xff] %vm342_vm0, %v315_v25  ;;  %v317_v27 = vld [vmem:[%s6644_s10 + $0x5d] sm:$0xff]  ;;  %v396_v28 = vld [vmem:[%s6644_s10 + $0x8e] sm:$0xff]  ;;  %353 = vst.msk [vmem:[#allocation2 + $0x50] sm:$0xff] %vm342_vm0, %v316_v26 }
  0x1d   : > { %354 = vst.msk [vmem:[#allocation2 + $0x58] sm:$0xff] %vm342_vm0, %v317_v27  ;;  %v395_v29 = vld [vmem:[%s6644_s10 + $0x86] sm:$0xff]  ;;  %v320_v32 = vld [vmem:[%s6644_s10 + $0x75] sm:$0xff]  ;;  %v321_v33 = vld [vmem:[%s6644_s10 + $0x7d] sm:$0xff] }
  0x1e   : > { %465 = vrot.lane.b32.xlu1 %v386_v6, %s6571_s11  ;;  %463 = vrot.lane.b32.xlu0 %v385_v7, %s6571_s11  ;;  %v318_v30 = vld [vmem:[%s6644_s10 + $0x65] sm:$0xff]  ;;  %v319_v31 = vld [vmem:[%s6644_s10 + $0x6d] sm:$0xff]  ;;  %357 = vst.msk [vmem:[#allocation2 + $0x70] sm:$0xff] %vm342_vm0, %v320_v32  ;;  %358 = vst.msk [vmem:[#allocation2 + $0x78] sm:$0xff] %vm342_vm0, %v321_v33 }
  0x1f   : > { %355 = vst.msk [vmem:[#allocation2 + $0x60] sm:$0xff] %vm342_vm0, %v318_v30  ;;  %356 = vst.msk [vmem:[#allocation2 + $0x68] sm:$0xff] %vm342_vm0, %v319_v31  ;;  %v398_v34 = vld [vmem:[%s6644_s10 + $0x9e] sm:$0xff]  ;;  %v397_v35 = vld [vmem:[%s6644_s10 + $0x96] sm:$0xff] }
  0x20   : > { %v322_v36 = vld [vmem:[%s6644_s10 + $0x85] sm:$0xff]  ;;  %v323_v37 = vld [vmem:[%s6644_s10 + $0x8d] sm:$0xff]  ;;  %v324_v38 = vld [vmem:[%s6644_s10 + $0x95] sm:$0xff] }
  0x21   : > { %359 = vst.msk [vmem:[#allocation2 + $0x80] sm:$0xff] %vm342_vm0, %v322_v36  ;;  %360 = vst.msk [vmem:[#allocation2 + $0x88] sm:$0xff] %vm342_vm0, %v323_v37  ;;  %v325_v39 = vld [vmem:[%s6644_s10 + $0x9d] sm:$0xff]  ;;  %v326_v40 = vld [vmem:[%s6644_s10 + $0xa5] sm:$0xff] }
  0x22   : > { %469 = vrot.lane.b32.xlu1 %v388_v8, %s6571_s11  ;;  %467 = vrot.lane.b32.xlu0 %v387_v9, %s6571_s11  ;;  %361 = vst.msk [vmem:[#allocation2 + $0x90] sm:$0xff] %vm342_vm0, %v324_v38  ;;  %362 = vst.msk [vmem:[#allocation2 + $0x98] sm:$0xff] %vm342_vm0, %v325_v39  ;;  %v327_v41 = vld [vmem:[%s6644_s10 + $0xad] sm:$0xff]  ;;  %v328_v42 = vld [vmem:[%s6644_s10 + $0xb5] sm:$0xff] }
  0x23   : > { %363 = vst.msk [vmem:[#allocation2 + $0xa0] sm:$0xff] %vm342_vm0, %v326_v40  ;;  %v329_v43 = vld [vmem:[%s6644_s10 + $0xbd] sm:$0xff]  ;;  %364 = vst.msk [vmem:[#allocation2 + $0xa8] sm:$0xff] %vm342_vm0, %v327_v41  ;;  %v330_v44 = vld [vmem:[%s6644_s10 + $0xc5] sm:$0xff] }
  0x24   : > { %365 = vst.msk [vmem:[#allocation2 + $0xb0] sm:$0xff] %vm342_vm0, %v328_v42  ;;  %366 = vst.msk [vmem:[#allocation2 + $0xb8] sm:$0xff] %vm342_vm0, %v329_v43  ;;  %v331_v45 = vld [vmem:[%s6644_s10 + $0xcd] sm:$0xff]  ;;  %v332_v48 = vld [vmem:[%s6644_s10 + $0xd5] sm:$0xff] }
  0x25   : > { %367 = vst.msk [vmem:[#allocation2 + $0xc0] sm:$0xff] %vm342_vm0, %v330_v44  ;;  %368 = vst.msk [vmem:[#allocation2 + $0xc8] sm:$0xff] %vm342_vm0, %v331_v45  ;;  %v400_v46 = vld [vmem:[%s6644_s10 + $0xae] sm:$0xff]  ;;  %v399_v47 = vld [vmem:[%s6644_s10 + $0xa6] sm:$0xff] }
  0x26   : > { %473 = vrot.lane.b32.xlu1 %v390_v10, %s6571_s11  ;;  %471 = vrot.lane.b32.xlu0 %v389_v11, %s6571_s11  ;;  %369 = vst.msk [vmem:[#allocation2 + $0xd0] sm:$0xff] %vm342_vm0, %v332_v48  ;;  %v333_v49 = vld [vmem:[%s6644_s10 + $0xdd] sm:$0xff]  ;;  %v334_v52 = vld [vmem:[%s6644_s10 + $0xe5] sm:$0xff] }
  0x27   : > { %370 = vst.msk [vmem:[#allocation2 + $0xd8] sm:$0xff] %vm342_vm0, %v333_v49  ;;  %v402_v50 = vld [vmem:[%s6644_s10 + $0xbe] sm:$0xff]  ;;  %v401_v51 = vld [vmem:[%s6644_s10 + $0xb6] sm:$0xff]  ;;  %371 = vst.msk [vmem:[#allocation2 + $0xe0] sm:$0xff] %vm342_vm0, %v334_v52 }
  0x28   : > { %v335_v53 = vld [vmem:[%s6644_s10 + $0xed] sm:$0xff]  ;;  %v336_v56 = vld [vmem:[%s6644_s10 + $0xf5] sm:$0xff]  ;;  %v337_v57 = vld [vmem:[%s6644_s10 + $0xfd] sm:$0xff] }
  0x29   : > { %372 = vst.msk [vmem:[#allocation2 + $0xe8] sm:$0xff] %vm342_vm0, %v335_v53  ;;  %v404_v54 = vld [vmem:[%s6644_s10 + $0xce] sm:$0xff]  ;;  %v403_v55 = vld [vmem:[%s6644_s10 + $0xc6] sm:$0xff]  ;;  %373 = vst.msk [vmem:[#allocation2 + $0xf0] sm:$0xff] %vm342_vm0, %v336_v56 }
  0x2a   : > { %477 = vrot.lane.b32.xlu1 %v392_v14, %s6571_s11  ;;  %475 = vrot.lane.b32.xlu0 %v391_v15, %s6571_s11  ;;  %374 = vst.msk [vmem:[#allocation2 + $0xf8] sm:$0xff] %vm342_vm0, %v337_v57  ;;  %v406_v58 = vld [vmem:[%s6644_s10 + $0xde] sm:$0xff]  ;;  %v405_v59 = vld [vmem:[%s6644_s10 + $0xd6] sm:$0xff] }
  0x2b   : > { %v338_v60 = vld [vmem:[%s6644_s10 + $0x105] sm:$0xff]  ;;  %v339_v61 = vld [vmem:[%s6644_s10 + $0x10d] sm:$0xff]  ;;  %v340_v0 = vld [vmem:[%s6644_s10 + $0x115] sm:$0xff] }
  0x2c   : > { %375 = vst.msk [vmem:[#allocation2 + $0x100] sm:$0xff] %vm342_vm0, %v338_v60  ;;  %376 = vst.msk [vmem:[#allocation2 + $0x108] sm:$0xff] %vm342_vm0, %v339_v61  ;;  %v408_v62 = vld [vmem:[%s6644_s10 + $0xee] sm:$0xff]  ;;  %v407_v63 = vld [vmem:[%s6644_s10 + $0xe6] sm:$0xff] }
  0x2d   : > { %377 = vst.msk [vmem:[#allocation2 + $0x110] sm:$0xff] %vm342_vm0, %v340_v0  ;;  %v341_v1 = vld [vmem:[%s6644_s10 + $0x11d] sm:$0xff]  ;;  %v412_v4 = vld [vmem:[%s6644_s10 + $0x10e] sm:$0xff]  ;;  %v411_v5 = vld [vmem:[%s6644_s10 + $0x106] sm:$0xff] }
  0x2e   : > { %481 = vrot.lane.b32.xlu1 %v394_v21, %s6571_s11  ;;  %479 = vrot.lane.b32.xlu0 %v393_v22, %s6571_s11  ;;  %378 = vst.msk [vmem:[#allocation2 + $0x118] sm:$0xff] %vm342_vm0, %v341_v1  ;;  %v410_v2 = vld [vmem:[%s6644_s10 + $0xfe] sm:$0xff]  ;;  %v409_v3 = vld [vmem:[%s6644_s10 + $0xf6] sm:$0xff]  ;;  %vm4188_vm0 = vcmask 392512  }
  0x2f   : > { %v414_v6 = vld [vmem:[%s6644_s10 + $0x11e] sm:$0xff]  ;;  %v413_v7 = vld [vmem:[%s6644_s10 + $0x116] sm:$0xff]  ;;  %v596_v9 = vld [vmem:[%s6644_s10 + $0x7] sm:$0xff] }
  0x30   : > { %v597_v8 = vld [vmem:[%s6644_s10 + $0xf] sm:$0xff]  ;;  %v6795_v10 = vld [vmem:[%s6644_s10 + $0x1f] sm:$0xff]  ;;  %v6798_v11 = vld [vmem:[%s6644_s10 + $0x17] sm:$0xff] }
  0x31   : > { %v6805_v12 = vld [vmem:[%s6644_s10 + $0x2f] sm:$0xff]  ;;  %v6808_v13 = vld [vmem:[%s6644_s10 + $0x27] sm:$0xff]  ;;  %v6815_v14 = vld [vmem:[%s6644_s10 + $0x3f] sm:$0xff] }
  0x32   : > { %485 = vrot.lane.b32.xlu1 %v396_v28, %s6571_s11  ;;  %483 = vrot.lane.b32.xlu0 %v395_v29, %s6571_s11  ;;  %v6818_v15 = vld [vmem:[%s6644_s10 + $0x37] sm:$0xff]  ;;  %v6825_v16 = vld [vmem:[%s6644_s10 + $0x4f] sm:$0xff] }
  0x33   : > { %v6828_v17 = vld [vmem:[%s6644_s10 + $0x47] sm:$0xff]  ;;  %v6835_v18 = vld [vmem:[%s6644_s10 + $0x5f] sm:$0xff]  ;;  %v6838_v19 = vld [vmem:[%s6644_s10 + $0x57] sm:$0xff] }
  0x34   : > { %v6845_v20 = vld [vmem:[%s6644_s10 + $0x6f] sm:$0xff]  ;;  %v6848_v21 = vld [vmem:[%s6644_s10 + $0x67] sm:$0xff]  ;;  %v6855_v22 = vld [vmem:[%s6644_s10 + $0x7f] sm:$0xff] }
  0x35   : > { %v6858_v23 = vld [vmem:[%s6644_s10 + $0x77] sm:$0xff]  ;;  %v6865_v24 = vld [vmem:[%s6644_s10 + $0x8f] sm:$0xff]  ;;  %v6868_v25 = vld [vmem:[%s6644_s10 + $0x87] sm:$0xff] }
  0x36   : > { %489 = vrot.lane.b32.xlu1 %v398_v34, %s6571_s11  ;;  %487 = vrot.lane.b32.xlu0 %v397_v35, %s6571_s11  ;;  %v6875_v26 = vld [vmem:[%s6644_s10 + $0x9f] sm:$0xff]  ;;  %v6878_v27 = vld [vmem:[%s6644_s10 + $0x97] sm:$0xff] }
  0x37   : > { %v6885_v28 = vld [vmem:[%s6644_s10 + $0xaf] sm:$0xff]  ;;  %v6888_v29 = vld [vmem:[%s6644_s10 + $0xa7] sm:$0xff]  ;;  %v6895_v30 = vld [vmem:[%s6644_s10 + $0xbf] sm:$0xff] }
  0x38   : > { %v6898_v31 = vld [vmem:[%s6644_s10 + $0xb7] sm:$0xff]  ;;  %v6907_v34 = vld [vmem:[%s6644_s10 + $0xcf] sm:$0xff]  ;;  %v6910_v35 = vld [vmem:[%s6644_s10 + $0xc7] sm:$0xff] }
  0x39   : > { %v6919_v38 = vld [vmem:[%s6644_s10 + $0xdf] sm:$0xff]  ;;  %v6922_v39 = vld [vmem:[%s6644_s10 + $0xd7] sm:$0xff]  ;;  %v6931_v42 = vld [vmem:[%s6644_s10 + $0xef] sm:$0xff] }
  0x3a   : > { %493 = vrot.lane.b32.xlu1 %v400_v46, %s6571_s11  ;;  %491 = vrot.lane.b32.xlu0 %v399_v47, %s6571_s11  ;;  %v6934_v43 = vld [vmem:[%s6644_s10 + $0xe7] sm:$0xff]  ;;  %v6943_v46 = vld [vmem:[%s6644_s10 + $0xff] sm:$0xff] }
  0x3b   : > { %v6946_v47 = vld [vmem:[%s6644_s10 + $0xf7] sm:$0xff] }
  0x3e   : > { %497 = vrot.lane.b32.xlu1 %v402_v50, %s6571_s11  ;;  %495 = vrot.lane.b32.xlu0 %v401_v51, %s6571_s11  ;;  %v6955_v50 = vld [vmem:[%s6644_s10 + $0x10f] sm:$0xff]  ;;  %v6958_v51 = vld [vmem:[%s6644_s10 + $0x107] sm:$0xff] }
  0x42   : > { %501 = vrot.lane.b32.xlu1 %v404_v54, %s6571_s11  ;;  %499 = vrot.lane.b32.xlu0 %v403_v55, %s6571_s11  ;;  %v6967_v54 = vld [vmem:[%s6644_s10 + $0x11f] sm:$0xff]  ;;  %v6970_v55 = vld [vmem:[%s6644_s10 + $0x117] sm:$0xff] }
  0x46   : > { %505 = vrot.lane.b32.xlu1 %v406_v58, %s6571_s11  ;;  %503 = vrot.lane.b32.xlu0 %v405_v59, %s6571_s11 }
  0x4a   : > { %509 = vrot.lane.b32.xlu1 %v408_v62, %s6571_s11  ;;  %507 = vrot.lane.b32.xlu0 %v407_v63, %s6571_s11 }
  0x4e   : > { %513 = vrot.lane.b32.xlu1 %v410_v2, %s6571_s11  ;;  %511 = vrot.lane.b32.xlu0 %v409_v3, %s6571_s11 }
  0x52   : > { %517 = vrot.lane.b32.xlu1 %v412_v4, %s6571_s11  ;;  %515 = vrot.lane.b32.xlu0 %v411_v5, %s6571_s11 }
  0x56   : > { %521 = vrot.lane.b32.xlu1 %v414_v6, %s6571_s11  ;;  %519 = vrot.lane.b32.xlu0 %v413_v7, %s6571_s11 }
  0x5a   : > { %670 = vrot.lane.b32.xlu1 %v597_v8, %s6572_s12  ;;  %668 = vrot.lane.b32.xlu0 %v596_v9, %s6572_s12 }
  0x5e   : > { %674 = vrot.lane.b32.xlu1 %v6795_v10, %s6572_s12  ;;  %672 = vrot.lane.b32.xlu0 %v6798_v11, %s6572_s12 }
  0x62   : > { %678 = vrot.lane.b32.xlu1 %v6805_v12, %s6572_s12  ;;  %676 = vrot.lane.b32.xlu0 %v6808_v13, %s6572_s12 }
  0x66   : > { %682 = vrot.lane.b32.xlu1 %v6815_v14, %s6572_s12  ;;  %680 = vrot.lane.b32.xlu0 %v6818_v15, %s6572_s12 }
  0x6a   : > { %686 = vrot.lane.b32.xlu1 %v6825_v16, %s6572_s12  ;;  %684 = vrot.lane.b32.xlu0 %v6828_v17, %s6572_s12 }
  0x6e   : > { %690 = vrot.lane.b32.xlu1 %v6835_v18, %s6572_s12  ;;  %688 = vrot.lane.b32.xlu0 %v6838_v19, %s6572_s12 }
  0x72   : > { %694 = vrot.lane.b32.xlu1 %v6845_v20, %s6572_s12  ;;  %692 = vrot.lane.b32.xlu0 %v6848_v21, %s6572_s12 }
  0x76   : > { %698 = vrot.lane.b32.xlu1 %v6855_v22, %s6572_s12  ;;  %696 = vrot.lane.b32.xlu0 %v6858_v23, %s6572_s12 }
  0x7a   : > { %702 = vrot.lane.b32.xlu1 %v6865_v24, %s6572_s12  ;;  %700 = vrot.lane.b32.xlu0 %v6868_v25, %s6572_s12 }
  0x7e   : > { %706 = vrot.lane.b32.xlu1 %v6875_v26, %s6572_s12  ;;  %704 = vrot.lane.b32.xlu0 %v6878_v27, %s6572_s12 }
  0x82   : > { %710 = vrot.lane.b32.xlu1 %v6885_v28, %s6572_s12  ;;  %708 = vrot.lane.b32.xlu0 %v6888_v29, %s6572_s12 }
  0x84   : > { %v452_v32 = vpop.permute.xlu0 %451  ;;  %v456_v33 = vpop.permute.xlu1 %455 }
  0x85   : > { %560 = vst.msk [vmem:[#allocation2] sm:$0xff] %vm559_vm1, %v452_v32  ;;  %562 = vst.msk [vmem:[#allocation2 + $0x10] sm:$0xff] %vm559_vm1, %v456_v33  ;;  %v1031_v32 = vld [vmem:[%s6644_s10 + $0x20] sm:$0xff]  ;;  %v1030_v33 = vld [vmem:[%s6644_s10 + $0x18] sm:$0xff] }
  0x86   : > { %714 = vrot.lane.b32.xlu1 %v6895_v30, %s6572_s12  ;;  %712 = vrot.lane.b32.xlu0 %v6898_v31, %s6572_s12 }
  0x88   : > { %v454_v36 = vpop.permute.xlu0 %453  ;;  %v458_v37 = vpop.permute.xlu1 %457 }
  0x89   : > { %561 = vst.msk [vmem:[#allocation2 + $0x8] sm:$0xff] %vm559_vm1, %v454_v36  ;;  %563 = vst.msk [vmem:[#allocation2 + $0x18] sm:$0xff] %vm559_vm1, %v458_v37  ;;  %v1033_v36 = vld [vmem:[%s6644_s10 + $0x30] sm:$0xff]  ;;  %v1032_v37 = vld [vmem:[%s6644_s10 + $0x28] sm:$0xff] }
  0x8a   : > { %718 = vrot.lane.b32.xlu1 %v6907_v34, %s6572_s12  ;;  %716 = vrot.lane.b32.xlu0 %v6910_v35, %s6572_s12 }
  0x8c   : > { %v460_v40 = vpop.permute.xlu0 %459  ;;  %v462_v41 = vpop.permute.xlu1 %461 }
  0x8d   : > { %564 = vst.msk [vmem:[#allocation2 + $0x20] sm:$0xff] %vm559_vm1, %v460_v40  ;;  %565 = vst.msk [vmem:[#allocation2 + $0x28] sm:$0xff] %vm559_vm1, %v462_v41  ;;  %v1035_v40 = vld [vmem:[%s6644_s10 + $0x40] sm:$0xff]  ;;  %v1034_v41 = vld [vmem:[%s6644_s10 + $0x38] sm:$0xff] }
  0x8e   : > { %722 = vrot.lane.b32.xlu1 %v6919_v38, %s6572_s12  ;;  %720 = vrot.lane.b32.xlu0 %v6922_v39, %s6572_s12 }
  0x90   : > { %v464_v44 = vpop.permute.xlu0 %463  ;;  %v466_v45 = vpop.permute.xlu1 %465 }
  0x91   : > { %566 = vst.msk [vmem:[#allocation2 + $0x30] sm:$0xff] %vm559_vm1, %v464_v44  ;;  %567 = vst.msk [vmem:[#allocation2 + $0x38] sm:$0xff] %vm559_vm1, %v466_v45  ;;  %v1037_v44 = vld [vmem:[%s6644_s10 + $0x50] sm:$0xff]  ;;  %v1036_v45 = vld [vmem:[%s6644_s10 + $0x48] sm:$0xff] }
  0x92   : > { %726 = vrot.lane.b32.xlu1 %v6931_v42, %s6572_s12  ;;  %724 = vrot.lane.b32.xlu0 %v6934_v43, %s6572_s12 }
  0x94   : > { %v468_v48 = vpop.permute.xlu0 %467  ;;  %v470_v49 = vpop.permute.xlu1 %469 }
  0x95   : > { %568 = vst.msk [vmem:[#allocation2 + $0x40] sm:$0xff] %vm559_vm1, %v468_v48  ;;  %569 = vst.msk [vmem:[#allocation2 + $0x48] sm:$0xff] %vm559_vm1, %v470_v49  ;;  %v1039_v48 = vld [vmem:[%s6644_s10 + $0x60] sm:$0xff]  ;;  %v1038_v49 = vld [vmem:[%s6644_s10 + $0x58] sm:$0xff] }
  0x96   : > { %730 = vrot.lane.b32.xlu1 %v6943_v46, %s6572_s12  ;;  %728 = vrot.lane.b32.xlu0 %v6946_v47, %s6572_s12 }
  0x98   : > { %v472_v52 = vpop.permute.xlu0 %471  ;;  %v474_v53 = vpop.permute.xlu1 %473 }
  0x99   : > { %570 = vst.msk [vmem:[#allocation2 + $0x50] sm:$0xff] %vm559_vm1, %v472_v52  ;;  %571 = vst.msk [vmem:[#allocation2 + $0x58] sm:$0xff] %vm559_vm1, %v474_v53  ;;  %v1041_v52 = vld [vmem:[%s6644_s10 + $0x70] sm:$0xff]  ;;  %v1040_v53 = vld [vmem:[%s6644_s10 + $0x68] sm:$0xff] }
  0x9a   : > { %734 = vrot.lane.b32.xlu1 %v6955_v50, %s6572_s12  ;;  %732 = vrot.lane.b32.xlu0 %v6958_v51, %s6572_s12 }
  0x9c   : > { %v476_v56 = vpop.permute.xlu0 %475  ;;  %v478_v57 = vpop.permute.xlu1 %477 }
  0x9d   : > { %572 = vst.msk [vmem:[#allocation2 + $0x60] sm:$0xff] %vm559_vm1, %v476_v56  ;;  %573 = vst.msk [vmem:[#allocation2 + $0x68] sm:$0xff] %vm559_vm1, %v478_v57  ;;  %v1043_v56 = vld [vmem:[%s6644_s10 + $0x80] sm:$0xff]  ;;  %v1042_v57 = vld [vmem:[%s6644_s10 + $0x78] sm:$0xff] }
  0x9e   : > { %738 = vrot.lane.b32.xlu1 %v6967_v54, %s6572_s12  ;;  %736 = vrot.lane.b32.xlu0 %v6970_v55, %s6572_s12 }
  0xa0   : > { %v480_v58 = vpop.permute.xlu0 %479  ;;  %v482_v59 = vpop.permute.xlu1 %481 }
  0xa1   : > { %574 = vst.msk [vmem:[#allocation2 + $0x70] sm:$0xff] %vm559_vm1, %v480_v58  ;;  %575 = vst.msk [vmem:[#allocation2 + $0x78] sm:$0xff] %vm559_vm1, %v482_v59 }
  0xa2   : > { %887 = vrot.lane.b32.xlu1 %v6795_v10, %s6573_s13  ;;  %885 = vrot.lane.b32.xlu0 %v6798_v11, %s6573_s13 }
  0xa4   : > { %v484_v60 = vpop.permute.xlu0 %483  ;;  %v486_v61 = vpop.permute.xlu1 %485 }
  0xa5   : > { %576 = vst.msk [vmem:[#allocation2 + $0x80] sm:$0xff] %vm559_vm1, %v484_v60  ;;  %577 = vst.msk [vmem:[#allocation2 + $0x88] sm:$0xff] %vm559_vm1, %v486_v61  ;;  %v1045_v60 = vld [vmem:[%s6644_s10 + $0x90] sm:$0xff]  ;;  %v1044_v61 = vld [vmem:[%s6644_s10 + $0x88] sm:$0xff] }
  0xa6   : > { %891 = vrot.lane.b32.xlu1 %v6805_v12, %s6573_s13  ;;  %889 = vrot.lane.b32.xlu0 %v6808_v13, %s6573_s13 }
  0xa8   : > { %v488_v62 = vpop.permute.xlu0 %487  ;;  %v490_v63 = vpop.permute.xlu1 %489 }
  0xa9   : > { %578 = vst.msk [vmem:[#allocation2 + $0x90] sm:$0xff] %vm559_vm1, %v488_v62  ;;  %579 = vst.msk [vmem:[#allocation2 + $0x98] sm:$0xff] %vm559_vm1, %v490_v63 }
  0xaa   : > { %895 = vrot.lane.b32.xlu1 %v6815_v14, %s6573_s13  ;;  %893 = vrot.lane.b32.xlu0 %v6818_v15, %s6573_s13 }
  0xac   : > { %v492_v0 = vpop.permute.xlu0 %491  ;;  %v494_v1 = vpop.permute.xlu1 %493 }
  0xad   : > { %580 = vst.msk [vmem:[#allocation2 + $0xa0] sm:$0xff] %vm559_vm1, %v492_v0  ;;  %581 = vst.msk [vmem:[#allocation2 + $0xa8] sm:$0xff] %vm559_vm1, %v494_v1  ;;  %v1047_v0 = vld [vmem:[%s6644_s10 + $0xa0] sm:$0xff]  ;;  %v1046_v1 = vld [vmem:[%s6644_s10 + $0x98] sm:$0xff] }
  0xae   : > { %899 = vrot.lane.b32.xlu1 %v6825_v16, %s6573_s13  ;;  %897 = vrot.lane.b32.xlu0 %v6828_v17, %s6573_s13 }
  0xb0   : > { %v496_v2 = vpop.permute.xlu0 %495  ;;  %v498_v3 = vpop.permute.xlu1 %497 }
  0xb1   : > { %582 = vst.msk [vmem:[#allocation2 + $0xb0] sm:$0xff] %vm559_vm1, %v496_v2  ;;  %583 = vst.msk [vmem:[#allocation2 + $0xb8] sm:$0xff] %vm559_vm1, %v498_v3 }
  0xb2   : > { %903 = vrot.lane.b32.xlu1 %v6835_v18, %s6573_s13  ;;  %901 = vrot.lane.b32.xlu0 %v6838_v19, %s6573_s13 }
  0xb4   : > { %v500_v4 = vpop.permute.xlu0 %499  ;;  %v502_v5 = vpop.permute.xlu1 %501 }
  0xb5   : > { %584 = vst.msk [vmem:[#allocation2 + $0xc0] sm:$0xff] %vm559_vm1, %v500_v4  ;;  %585 = vst.msk [vmem:[#allocation2 + $0xc8] sm:$0xff] %vm559_vm1, %v502_v5  ;;  %v1049_v4 = vld [vmem:[%s6644_s10 + $0xb0] sm:$0xff]  ;;  %v1048_v5 = vld [vmem:[%s6644_s10 + $0xa8] sm:$0xff] }
  0xb6   : > { %907 = vrot.lane.b32.xlu1 %v6845_v20, %s6573_s13  ;;  %905 = vrot.lane.b32.xlu0 %v6848_v21, %s6573_s13 }
  0xb8   : > { %v504_v6 = vpop.permute.xlu0 %503  ;;  %v506_v7 = vpop.permute.xlu1 %505 }
  0xb9   : > { %586 = vst.msk [vmem:[#allocation2 + $0xd0] sm:$0xff] %vm559_vm1, %v504_v6  ;;  %587 = vst.msk [vmem:[#allocation2 + $0xd8] sm:$0xff] %vm559_vm1, %v506_v7 }
  0xba   : > { %911 = vrot.lane.b32.xlu1 %v6855_v22, %s6573_s13  ;;  %909 = vrot.lane.b32.xlu0 %v6858_v23, %s6573_s13 }
  0xbc   : > { %v508_v8 = vpop.permute.xlu0 %507  ;;  %v510_v9 = vpop.permute.xlu1 %509 }
  0xbd   : > { %588 = vst.msk [vmem:[#allocation2 + $0xe0] sm:$0xff] %vm559_vm1, %v508_v8  ;;  %589 = vst.msk [vmem:[#allocation2 + $0xe8] sm:$0xff] %vm559_vm1, %v510_v9  ;;  %v1051_v8 = vld [vmem:[%s6644_s10 + $0xc0] sm:$0xff]  ;;  %v1050_v9 = vld [vmem:[%s6644_s10 + $0xb8] sm:$0xff] }
  0xbe   : > { %915 = vrot.lane.b32.xlu1 %v6865_v24, %s6573_s13  ;;  %913 = vrot.lane.b32.xlu0 %v6868_v25, %s6573_s13 }
  0xc0   : > { %v512_v10 = vpop.permute.xlu0 %511  ;;  %v514_v11 = vpop.permute.xlu1 %513 }
  0xc1   : > { %590 = vst.msk [vmem:[#allocation2 + $0xf0] sm:$0xff] %vm559_vm1, %v512_v10  ;;  %591 = vst.msk [vmem:[#allocation2 + $0xf8] sm:$0xff] %vm559_vm1, %v514_v11 }
  0xc2   : > { %919 = vrot.lane.b32.xlu1 %v6875_v26, %s6573_s13  ;;  %917 = vrot.lane.b32.xlu0 %v6878_v27, %s6573_s13 }
  0xc4   : > { %v516_v12 = vpop.permute.xlu0 %515  ;;  %v518_v13 = vpop.permute.xlu1 %517 }
  0xc5   : > { %592 = vst.msk [vmem:[#allocation2 + $0x100] sm:$0xff] %vm559_vm1, %v516_v12  ;;  %593 = vst.msk [vmem:[#allocation2 + $0x108] sm:$0xff] %vm559_vm1, %v518_v13  ;;  %v1053_v12 = vld [vmem:[%s6644_s10 + $0xd0] sm:$0xff]  ;;  %v1052_v13 = vld [vmem:[%s6644_s10 + $0xc8] sm:$0xff] }
  0xc6   : > { %923 = vrot.lane.b32.xlu1 %v6885_v28, %s6573_s13  ;;  %921 = vrot.lane.b32.xlu0 %v6888_v29, %s6573_s13  ;;  %v848_v28 = vld [vmem:[%s6644_s10 + $0x12f] sm:$0xff]  ;;  %v847_v29 = vld [vmem:[%s6644_s10 + $0x127] sm:$0xff] }
  0xc8   : > { %v520_v14 = vpop.permute.xlu0 %519  ;;  %v522_v15 = vpop.permute.xlu1 %521 }
  0xc9   : > { %594 = vst.msk [vmem:[#allocation2 + $0x110] sm:$0xff] %vm559_vm1, %v520_v14  ;;  %595 = vst.msk [vmem:[#allocation2 + $0x118] sm:$0xff] %vm559_vm1, %v522_v15  ;;  %vm4405_vm1 = vcmask 458112  }
  0xca   : > { %927 = vrot.lane.b32.xlu1 %v6895_v30, %s6573_s13  ;;  %925 = vrot.lane.b32.xlu0 %v6898_v31, %s6573_s13 }
  0xcc   : > { %v669_v16 = vpop.permute.xlu0 %668  ;;  %v671_v17 = vpop.permute.xlu1 %670 }
  0xcd   : > { %777 = vst.msk [vmem:[#allocation2] sm:$0xff] %vm776_vm2, %v669_v16  ;;  %778 = vst.msk [vmem:[#allocation2 + $0x8] sm:$0xff] %vm776_vm2, %v671_v17  ;;  %v1055_v16 = vld [vmem:[%s6644_s10 + $0xe0] sm:$0xff]  ;;  %v1054_v17 = vld [vmem:[%s6644_s10 + $0xd8] sm:$0xff] }
  0xce   : > { %931 = vrot.lane.b32.xlu1 %v6907_v34, %s6573_s13  ;;  %929 = vrot.lane.b32.xlu0 %v6910_v35, %s6573_s13 }
  0xd0   : > { %v673_v18 = vpop.permute.xlu0 %672  ;;  %v675_v19 = vpop.permute.xlu1 %674 }
  0xd1   : > { %779 = vst.msk [vmem:[#allocation2 + $0x10] sm:$0xff] %vm776_vm2, %v673_v18  ;;  %780 = vst.msk [vmem:[#allocation2 + $0x18] sm:$0xff] %vm776_vm2, %v675_v19 }
  0xd2   : > { %935 = vrot.lane.b32.xlu1 %v6919_v38, %s6573_s13  ;;  %933 = vrot.lane.b32.xlu0 %v6922_v39, %s6573_s13 }
  0xd4   : > { %v677_v20 = vpop.permute.xlu0 %676  ;;  %v679_v21 = vpop.permute.xlu1 %678 }
  0xd5   : > { %781 = vst.msk [vmem:[#allocation2 + $0x20] sm:$0xff] %vm776_vm2, %v677_v20  ;;  %782 = vst.msk [vmem:[#allocation2 + $0x28] sm:$0xff] %vm776_vm2, %v679_v21  ;;  %v1057_v20 = vld [vmem:[%s6644_s10 + $0xf0] sm:$0xff]  ;;  %v1056_v21 = vld [vmem:[%s6644_s10 + $0xe8] sm:$0xff] }
  0xd6   : > { %939 = vrot.lane.b32.xlu1 %v6931_v42, %s6573_s13  ;;  %937 = vrot.lane.b32.xlu0 %v6934_v43, %s6573_s13 }
  0xd8   : > { %v681_v22 = vpop.permute.xlu0 %680  ;;  %v683_v23 = vpop.permute.xlu1 %682 }
  0xd9   : > { %783 = vst.msk [vmem:[#allocation2 + $0x30] sm:$0xff] %vm776_vm2, %v681_v22  ;;  %784 = vst.msk [vmem:[#allocation2 + $0x38] sm:$0xff] %vm776_vm2, %v683_v23 }
  0xda   : > { %943 = vrot.lane.b32.xlu1 %v6943_v46, %s6573_s13  ;;  %941 = vrot.lane.b32.xlu0 %v6946_v47, %s6573_s13 }
  0xdc   : > { %v685_v24 = vpop.permute.xlu0 %684  ;;  %v687_v25 = vpop.permute.xlu1 %686 }
  0xdd   : > { %785 = vst.msk [vmem:[#allocation2 + $0x40] sm:$0xff] %vm776_vm2, %v685_v24  ;;  %786 = vst.msk [vmem:[#allocation2 + $0x48] sm:$0xff] %vm776_vm2, %v687_v25  ;;  %v1059_v24 = vld [vmem:[%s6644_s10 + $0x100] sm:$0xff]  ;;  %v1058_v25 = vld [vmem:[%s6644_s10 + $0xf8] sm:$0xff] }
  0xde   : > { %947 = vrot.lane.b32.xlu1 %v6955_v50, %s6573_s13  ;;  %945 = vrot.lane.b32.xlu0 %v6958_v51, %s6573_s13 }
  0xe0   : > { %v689_v26 = vpop.permute.xlu0 %688  ;;  %v691_v27 = vpop.permute.xlu1 %690 }
  0xe1   : > { %787 = vst.msk [vmem:[#allocation2 + $0x50] sm:$0xff] %vm776_vm2, %v689_v26  ;;  %788 = vst.msk [vmem:[#allocation2 + $0x58] sm:$0xff] %vm776_vm2, %v691_v27 }
  0xe2   : > { %951 = vrot.lane.b32.xlu1 %v6967_v54, %s6573_s13  ;;  %949 = vrot.lane.b32.xlu0 %v6970_v55, %s6573_s13 }
  0xe4   : > { %v693_v30 = vpop.permute.xlu0 %692  ;;  %v695_v31 = vpop.permute.xlu1 %694 }
  0xe5   : > { %789 = vst.msk [vmem:[#allocation2 + $0x60] sm:$0xff] %vm776_vm2, %v693_v30  ;;  %790 = vst.msk [vmem:[#allocation2 + $0x68] sm:$0xff] %vm776_vm2, %v695_v31 }
  0xe6   : > { %955 = vrot.lane.b32.xlu1 %v848_v28, %s6573_s13  ;;  %953 = vrot.lane.b32.xlu0 %v847_v29, %s6573_s13  ;;  %v1061_v28 = vld [vmem:[%s6644_s10 + $0x110] sm:$0xff]  ;;  %v1060_v29 = vld [vmem:[%s6644_s10 + $0x108] sm:$0xff] }
  0xe8   : > { %v697_v34 = vpop.permute.xlu0 %696  ;;  %v699_v35 = vpop.permute.xlu1 %698 }
  0xe9   : > { %791 = vst.msk [vmem:[#allocation2 + $0x70] sm:$0xff] %vm776_vm2, %v697_v34  ;;  %792 = vst.msk [vmem:[#allocation2 + $0x78] sm:$0xff] %vm776_vm2, %v699_v35 }
  0xea   : > { %1104 = vrot.lane.b32.xlu1 %v1031_v32, %s6574_s14  ;;  %1102 = vrot.lane.b32.xlu0 %v1030_v33, %s6574_s14  ;;  %v1063_v32 = vld [vmem:[%s6644_s10 + $0x120] sm:$0xff]  ;;  %v1062_v33 = vld [vmem:[%s6644_s10 + $0x118] sm:$0xff] }
  0xec   : > { %v701_v38 = vpop.permute.xlu0 %700  ;;  %v703_v39 = vpop.permute.xlu1 %702 }
  0xed   : > { %793 = vst.msk [vmem:[#allocation2 + $0x80] sm:$0xff] %vm776_vm2, %v701_v38  ;;  %794 = vst.msk [vmem:[#allocation2 + $0x88] sm:$0xff] %vm776_vm2, %v703_v39 }
  0xee   : > { %1108 = vrot.lane.b32.xlu1 %v1033_v36, %s6574_s14  ;;  %1106 = vrot.lane.b32.xlu0 %v1032_v37, %s6574_s14  ;;  %v1065_v36 = vld [vmem:[%s6644_s10 + $0x130] sm:$0xff]  ;;  %v1064_v37 = vld [vmem:[%s6644_s10 + $0x128] sm:$0xff] }
  0xf0   : > { %v705_v42 = vpop.permute.xlu0 %704  ;;  %v707_v43 = vpop.permute.xlu1 %706 }
  0xf1   : > { %795 = vst.msk [vmem:[#allocation2 + $0x90] sm:$0xff] %vm776_vm2, %v705_v42  ;;  %796 = vst.msk [vmem:[#allocation2 + $0x98] sm:$0xff] %vm776_vm2, %v707_v43 }
  0xf2   : > { %1112 = vrot.lane.b32.xlu1 %v1035_v40, %s6574_s14  ;;  %1110 = vrot.lane.b32.xlu0 %v1034_v41, %s6574_s14  ;;  %v1248_v40 = vld [vmem:[%s6644_s10 + $0x21] sm:$0xff]  ;;  %v1247_v41 = vld [vmem:[%s6644_s10 + $0x19] sm:$0xff] }
  0xf4   : > { %v709_v46 = vpop.permute.xlu0 %708  ;;  %v711_v47 = vpop.permute.xlu1 %710 }
  0xf5   : > { %797 = vst.msk [vmem:[#allocation2 + $0xa0] sm:$0xff] %vm776_vm2, %v709_v46  ;;  %798 = vst.msk [vmem:[#allocation2 + $0xa8] sm:$0xff] %vm776_vm2, %v711_v47 }
  0xf6   : > { %1116 = vrot.lane.b32.xlu1 %v1037_v44, %s6574_s14  ;;  %1114 = vrot.lane.b32.xlu0 %v1036_v45, %s6574_s14  ;;  %v7201_v44 = vld [vmem:[%s6644_s10 + $0x31] sm:$0xff]  ;;  %v7204_v45 = vld [vmem:[%s6644_s10 + $0x29] sm:$0xff] }
  0xf8   : > { %v713_v50 = vpop.permute.xlu0 %712  ;;  %v715_v51 = vpop.permute.xlu1 %714 }
  0xf9   : > { %799 = vst.msk [vmem:[#allocation2 + $0xb0] sm:$0xff] %vm776_vm2, %v713_v50  ;;  %800 = vst.msk [vmem:[#allocation2 + $0xb8] sm:$0xff] %vm776_vm2, %v715_v51 }
  0xfa   : > { %1120 = vrot.lane.b32.xlu1 %v1039_v48, %s6574_s14  ;;  %1118 = vrot.lane.b32.xlu0 %v1038_v49, %s6574_s14  ;;  %v7213_v48 = vld [vmem:[%s6644_s10 + $0x41] sm:$0xff]  ;;  %v7216_v49 = vld [vmem:[%s6644_s10 + $0x39] sm:$0xff] }
  0xfc   : > { %v717_v54 = vpop.permute.xlu0 %716  ;;  %v719_v55 = vpop.permute.xlu1 %718 }
  0xfd   : > { %801 = vst.msk [vmem:[#allocation2 + $0xc0] sm:$0xff] %vm776_vm2, %v717_v54  ;;  %802 = vst.msk [vmem:[#allocation2 + $0xc8] sm:$0xff] %vm776_vm2, %v719_v55 }
  0xfe   : > { %1124 = vrot.lane.b32.xlu1 %v1041_v52, %s6574_s14  ;;  %1122 = vrot.lane.b32.xlu0 %v1040_v53, %s6574_s14  ;;  %v7225_v52 = vld [vmem:[%s6644_s10 + $0x51] sm:$0xff]  ;;  %v7228_v53 = vld [vmem:[%s6644_s10 + $0x49] sm:$0xff] }
 0x100   : > { %v721_v58 = vpop.permute.xlu0 %720  ;;  %v723_v59 = vpop.permute.xlu1 %722 }
 0x101   : > { %803 = vst.msk [vmem:[#allocation2 + $0xd0] sm:$0xff] %vm776_vm2, %v721_v58  ;;  %804 = vst.msk [vmem:[#allocation2 + $0xd8] sm:$0xff] %vm776_vm2, %v723_v59 }
 0x102   : > { %1128 = vrot.lane.b32.xlu1 %v1043_v56, %s6574_s14  ;;  %1126 = vrot.lane.b32.xlu0 %v1042_v57, %s6574_s14  ;;  %v7237_v56 = vld [vmem:[%s6644_s10 + $0x61] sm:$0xff]  ;;  %v7240_v57 = vld [vmem:[%s6644_s10 + $0x59] sm:$0xff] }
 0x104   : > { %v725_v62 = vpop.permute.xlu0 %724  ;;  %v727_v63 = vpop.permute.xlu1 %726 }
 0x105   : > { %805 = vst.msk [vmem:[#allocation2 + $0xe0] sm:$0xff] %vm776_vm2, %v725_v62  ;;  %806 = vst.msk [vmem:[#allocation2 + $0xe8] sm:$0xff] %vm776_vm2, %v727_v63 }
 0x106   : > { %1132 = vrot.lane.b32.xlu1 %v1045_v60, %s6574_s14  ;;  %1130 = vrot.lane.b32.xlu0 %v1044_v61, %s6574_s14  ;;  %v7249_v60 = vld [vmem:[%s6644_s10 + $0x71] sm:$0xff]  ;;  %v7252_v61 = vld [vmem:[%s6644_s10 + $0x69] sm:$0xff] }
 0x108   : > { %v729_v2 = vpop.permute.xlu0 %728  ;;  %v731_v3 = vpop.permute.xlu1 %730 }
 0x109   : > { %807 = vst.msk [vmem:[#allocation2 + $0xf0] sm:$0xff] %vm776_vm2, %v729_v2  ;;  %808 = vst.msk [vmem:[#allocation2 + $0xf8] sm:$0xff] %vm776_vm2, %v731_v3 }
 0x10a   : > { %1136 = vrot.lane.b32.xlu1 %v1047_v0, %s6574_s14  ;;  %1134 = vrot.lane.b32.xlu0 %v1046_v1, %s6574_s14  ;;  %v7261_v0 = vld [vmem:[%s6644_s10 + $0x81] sm:$0xff]  ;;  %v7264_v1 = vld [vmem:[%s6644_s10 + $0x79] sm:$0xff] }
 0x10c   : > { %v733_v6 = vpop.permute.xlu0 %732  ;;  %v735_v7 = vpop.permute.xlu1 %734 }
 0x10d   : > { %809 = vst.msk [vmem:[#allocation2 + $0x100] sm:$0xff] %vm776_vm2, %v733_v6  ;;  %810 = vst.msk [vmem:[#allocation2 + $0x108] sm:$0xff] %vm776_vm2, %v735_v7 }
 0x10e   : > { %1140 = vrot.lane.b32.xlu1 %v1049_v4, %s6574_s14  ;;  %1138 = vrot.lane.b32.xlu0 %v1048_v5, %s6574_s14  ;;  %v7273_v4 = vld [vmem:[%s6644_s10 + $0x91] sm:$0xff]  ;;  %v7276_v5 = vld [vmem:[%s6644_s10 + $0x89] sm:$0xff] }
 0x110   : > { %v737_v10 = vpop.permute.xlu0 %736  ;;  %v739_v11 = vpop.permute.xlu1 %738 }
 0x111   : > { %811 = vst.msk [vmem:[#allocation2 + $0x110] sm:$0xff] %vm776_vm2, %v737_v10  ;;  %812 = vst.msk [vmem:[#allocation2 + $0x118] sm:$0xff] %vm776_vm2, %v739_v11  ;;  %vm4622_vm2 = vcmask 523712  }
 0x112   : > { %1144 = vrot.lane.b32.xlu1 %v1051_v8, %s6574_s14  ;;  %1142 = vrot.lane.b32.xlu0 %v1050_v9, %s6574_s14  ;;  %v7285_v8 = vld [vmem:[%s6644_s10 + $0xa1] sm:$0xff]  ;;  %v7288_v9 = vld [vmem:[%s6644_s10 + $0x99] sm:$0xff] }
 0x114   : > { %v886_v14 = vpop.permute.xlu0 %885  ;;  %v888_v15 = vpop.permute.xlu1 %887 }
 0x115   : > { %994 = vst.msk [vmem:[#allocation2] sm:$0xff] %vm993_vm3, %v886_v14  ;;  %995 = vst.msk [vmem:[#allocation2 + $0x8] sm:$0xff] %vm993_vm3, %v888_v15 }
 0x116   : > { %1148 = vrot.lane.b32.xlu1 %v1053_v12, %s6574_s14  ;;  %1146 = vrot.lane.b32.xlu0 %v1052_v13, %s6574_s14  ;;  %v7297_v12 = vld [vmem:[%s6644_s10 + $0xb1] sm:$0xff]  ;;  %v7300_v13 = vld [vmem:[%s6644_s10 + $0xa9] sm:$0xff] }
 0x118   : > { %v890_v18 = vpop.permute.xlu0 %889  ;;  %v892_v19 = vpop.permute.xlu1 %891 }
 0x119   : > { %996 = vst.msk [vmem:[#allocation2 + $0x10] sm:$0xff] %vm993_vm3, %v890_v18  ;;  %997 = vst.msk [vmem:[#allocation2 + $0x18] sm:$0xff] %vm993_vm3, %v892_v19 }
 0x11a   : > { %1152 = vrot.lane.b32.xlu1 %v1055_v16, %s6574_s14  ;;  %1150 = vrot.lane.b32.xlu0 %v1054_v17, %s6574_s14  ;;  %v7309_v16 = vld [vmem:[%s6644_s10 + $0xc1] sm:$0xff]  ;;  %v7312_v17 = vld [vmem:[%s6644_s10 + $0xb9] sm:$0xff] }
 0x11c   : > { %v894_v22 = vpop.permute.xlu0 %893  ;;  %v896_v23 = vpop.permute.xlu1 %895 }
 0x11d   : > { %998 = vst.msk [vmem:[#allocation2 + $0x20] sm:$0xff] %vm993_vm3, %v894_v22  ;;  %999 = vst.msk [vmem:[#allocation2 + $0x28] sm:$0xff] %vm993_vm3, %v896_v23 }
 0x11e   : > { %1156 = vrot.lane.b32.xlu1 %v1057_v20, %s6574_s14  ;;  %1154 = vrot.lane.b32.xlu0 %v1056_v21, %s6574_s14  ;;  %v7321_v20 = vld [vmem:[%s6644_s10 + $0xd1] sm:$0xff]  ;;  %v7324_v21 = vld [vmem:[%s6644_s10 + $0xc9] sm:$0xff] }
 0x120   : > { %v898_v26 = vpop.permute.xlu0 %897  ;;  %v900_v27 = vpop.permute.xlu1 %899 }
 0x121   : > { %1000 = vst.msk [vmem:[#allocation2 + $0x30] sm:$0xff] %vm993_vm3, %v898_v26  ;;  %1001 = vst.msk [vmem:[#allocation2 + $0x38] sm:$0xff] %vm993_vm3, %v900_v27 }
 0x122   : > { %1160 = vrot.lane.b32.xlu1 %v1059_v24, %s6574_s14  ;;  %1158 = vrot.lane.b32.xlu0 %v1058_v25, %s6574_s14  ;;  %v7333_v24 = vld [vmem:[%s6644_s10 + $0xe1] sm:$0xff]  ;;  %v7336_v25 = vld [vmem:[%s6644_s10 + $0xd9] sm:$0xff] }
 0x124   : > { %v902_v30 = vpop.permute.xlu0 %901  ;;  %v904_v31 = vpop.permute.xlu1 %903 }
 0x125   : > { %1002 = vst.msk [vmem:[#allocation2 + $0x40] sm:$0xff] %vm993_vm3, %v902_v30  ;;  %1003 = vst.msk [vmem:[#allocation2 + $0x48] sm:$0xff] %vm993_vm3, %v904_v31 }
 0x126   : > { %1164 = vrot.lane.b32.xlu1 %v1061_v28, %s6574_s14  ;;  %1162 = vrot.lane.b32.xlu0 %v1060_v29, %s6574_s14  ;;  %v7345_v28 = vld [vmem:[%s6644_s10 + $0xf1] sm:$0xff]  ;;  %v7348_v29 = vld [vmem:[%s6644_s10 + $0xe9] sm:$0xff] }
 0x128   : > { %v906_v34 = vpop.permute.xlu0 %905  ;;  %v908_v35 = vpop.permute.xlu1 %907 }
 0x129   : > { %1004 = vst.msk [vmem:[#allocation2 + $0x50] sm:$0xff] %vm993_vm3, %v906_v34  ;;  %1005 = vst.msk [vmem:[#allocation2 + $0x58] sm:$0xff] %vm993_vm3, %v908_v35 }
 0x12a   : > { %1168 = vrot.lane.b32.xlu1 %v1063_v32, %s6574_s14  ;;  %1166 = vrot.lane.b32.xlu0 %v1062_v33, %s6574_s14  ;;  %v7357_v32 = vld [vmem:[%s6644_s10 + $0x101] sm:$0xff]  ;;  %v7360_v33 = vld [vmem:[%s6644_s10 + $0xf9] sm:$0xff] }
 0x12c   : > { %v910_v38 = vpop.permute.xlu0 %909  ;;  %v912_v39 = vpop.permute.xlu1 %911 }
 0x12d   : > { %1006 = vst.msk [vmem:[#allocation2 + $0x60] sm:$0xff] %vm993_vm3, %v910_v38  ;;  %1007 = vst.msk [vmem:[#allocation2 + $0x68] sm:$0xff] %vm993_vm3, %v912_v39 }
 0x12e   : > { %1172 = vrot.lane.b32.xlu1 %v1065_v36, %s6574_s14  ;;  %1170 = vrot.lane.b32.xlu0 %v1064_v37, %s6574_s14  ;;  %v7369_v36 = vld [vmem:[%s6644_s10 + $0x111] sm:$0xff]  ;;  %v7372_v37 = vld [vmem:[%s6644_s10 + $0x109] sm:$0xff] }
 0x130   : > { %v914_v42 = vpop.permute.xlu0 %913  ;;  %v916_v43 = vpop.permute.xlu1 %915 }
 0x131   : > { %1008 = vst.msk [vmem:[#allocation2 + $0x70] sm:$0xff] %vm993_vm3, %v914_v42  ;;  %1009 = vst.msk [vmem:[#allocation2 + $0x78] sm:$0xff] %vm993_vm3, %v916_v43 }
 0x132   : > { %1321 = vrot.lane.b32.xlu1 %v1248_v40, %s6575_s15  ;;  %1319 = vrot.lane.b32.xlu0 %v1247_v41, %s6575_s15  ;;  %v7381_v40 = vld [vmem:[%s6644_s10 + $0x121] sm:$0xff]  ;;  %v7384_v41 = vld [vmem:[%s6644_s10 + $0x119] sm:$0xff] }
 0x134   : > { %v918_v46 = vpop.permute.xlu0 %917  ;;  %v920_v47 = vpop.permute.xlu1 %919 }
 0x135   : > { %1010 = vst.msk [vmem:[#allocation2 + $0x80] sm:$0xff] %vm993_vm3, %v918_v46  ;;  %1011 = vst.msk [vmem:[#allocation2 + $0x88] sm:$0xff] %vm993_vm3, %v920_v47  ;;  %v2151_v46 = vld [vmem:[%s9245_s1] sm:$0xff]  ;;  %v2152_v47 = vld [vmem:[%s9245_s1 + $0x8] sm:$0xff] }
 0x136   : > { %1325 = vrot.lane.b32.xlu1 %v7201_v44, %s6575_s15  ;;  %1323 = vrot.lane.b32.xlu0 %v7204_v45, %s6575_s15 }
 0x138   : > { %v922_v50 = vpop.permute.xlu0 %921  ;;  %v924_v51 = vpop.permute.xlu1 %923 }
 0x139   : > { %1012 = vst.msk [vmem:[#allocation2 + $0x90] sm:$0xff] %vm993_vm3, %v922_v50  ;;  %1013 = vst.msk [vmem:[#allocation2 + $0x98] sm:$0xff] %vm993_vm3, %v924_v51  ;;  %v6218_v50 = vpack.c.bf16 %v2152_v47, %v2151_v46  ;;  %v7399_v51 = vld [vmem:[%s6644_s10 + $0x131] sm:$0xff] }
 0x13a   : > { %1329 = vrot.lane.b32.xlu1 %v7213_v48, %s6575_s15  ;;  %1327 = vrot.lane.b32.xlu0 %v7216_v49, %s6575_s15  ;;  %v1903_v47 = vld [vmem:[%s6644_s10 + $0x53] sm:$0xff] }
 0x13b   : > { %6219 = vmatprep.subr.bf16.mxu0 %v6218_v50 }
 0x13c   : > { %v926_v54 = vpop.permute.xlu0 %925  ;;  %v928_v55 = vpop.permute.xlu1 %927  ;;  %6221 = vmatpush3.bf16.msra.mxu0 %v6218_v50  ;;  %v1902_v50 = vld [vmem:[%s6644_s10 + $0x4b] sm:$0xff] }
 0x13d   : > { %1014 = vst.msk [vmem:[#allocation2 + $0xa0] sm:$0xff] %vm993_vm3, %v926_v54  ;;  %1015 = vst.msk [vmem:[#allocation2 + $0xa8] sm:$0xff] %vm993_vm3, %v928_v55  ;;  %v7402_v54 = vld [vmem:[%s6644_s10 + $0x129] sm:$0xff] }
 0x13e   : > { %1333 = vrot.lane.b32.xlu1 %v7225_v52, %s6575_s15  ;;  %1331 = vrot.lane.b32.xlu0 %v7228_v53, %s6575_s15 }
 0x140   : > { %v930_v58 = vpop.permute.xlu0 %929  ;;  %v932_v59 = vpop.permute.xlu1 %931 }
 0x141   : > { %1016 = vst.msk [vmem:[#allocation2 + $0xb0] sm:$0xff] %vm993_vm3, %v930_v58  ;;  %1017 = vst.msk [vmem:[#allocation2 + $0xb8] sm:$0xff] %vm993_vm3, %v932_v59  ;;  %v2153_v59 = vld [vmem:[%s9245_s1 + $0x10] sm:$0xff] }
 0x142   : > { %1337 = vrot.lane.b32.xlu1 %v7237_v56, %s6575_s15  ;;  %1335 = vrot.lane.b32.xlu0 %v7240_v57, %s6575_s15 }
 0x144   : > { %v934_v62 = vpop.permute.xlu0 %933  ;;  %v936_v63 = vpop.permute.xlu1 %935 }
 0x145   : > { %1018 = vst.msk [vmem:[#allocation2 + $0xc0] sm:$0xff] %vm993_vm3, %v934_v62  ;;  %1019 = vst.msk [vmem:[#allocation2 + $0xc8] sm:$0xff] %vm993_vm3, %v936_v63  ;;  %v2154_v62 = vld [vmem:[%s9245_s1 + $0x18] sm:$0xff] }
 0x146   : > { %1341 = vrot.lane.b32.xlu1 %v7249_v60, %s6575_s15  ;;  %1339 = vrot.lane.b32.xlu0 %v7252_v61, %s6575_s15  ;;  %v6222_v63 = vpack.c.bf16 %v2154_v62, %v2153_v59  ;;  %v1688_v59 = vld [vmem:[%s6644_s10 + $0x62] sm:$0xff]  ;;  %v1687_v62 = vld [vmem:[%s6644_s10 + $0x5a] sm:$0xff] }
 0x148   : > { %v938_v2 = vpop.permute.xlu0 %937  ;;  %v940_v3 = vpop.permute.xlu1 %939  ;;  %6223 = vmatprep.subr.bf16.mxu0 %v6222_v63 }
 0x149   : > { %1020 = vst.msk [vmem:[#allocation2 + $0xd0] sm:$0xff] %vm993_vm3, %v938_v2  ;;  %1021 = vst.msk [vmem:[#allocation2 + $0xd8] sm:$0xff] %vm993_vm3, %v940_v3  ;;  %6225 = vmatpush3.bf16.msra.mxu0 %v6222_v63 }
 0x14a   : > { %1345 = vrot.lane.b32.xlu1 %v7261_v0, %s6575_s15  ;;  %1343 = vrot.lane.b32.xlu0 %v7264_v1, %s6575_s15 }
 0x14c   : > { %v942_v6 = vpop.permute.xlu0 %941  ;;  %v944_v7 = vpop.permute.xlu1 %943 }
 0x14d   : > { %1022 = vst.msk [vmem:[#allocation2 + $0xe0] sm:$0xff] %vm993_vm3, %v942_v6  ;;  %1023 = vst.msk [vmem:[#allocation2 + $0xe8] sm:$0xff] %vm993_vm3, %v944_v7  ;;  %v2155_v6 = vld [vmem:[%s9245_s1 + $0x20] sm:$0xf]  ;;  %v1682_v7 = vld [vmem:[%s6644_s10 + $0x32] sm:$0xff] }
 0x14e   : > { %1349 = vrot.lane.b32.xlu1 %v7273_v4, %s6575_s15  ;;  %1347 = vrot.lane.b32.xlu0 %v7276_v5, %s6575_s15 }
 0x14f   : > { %6074 = vmatprep.subr.msk.mxu0 %vm2272_vm5, %v2155_v6 }
 0x150   : > { %v946_v10 = vpop.permute.xlu0 %945  ;;  %v948_v11 = vpop.permute.xlu1 %947  ;;  %6075 = vmatpush3.msk.msra.mxu0 %vm2272_vm5, %v2155_v6  ;;  %vm5534_vm5 = vcmask 130048  }
 0x151   : > { %1024 = vst.msk [vmem:[#allocation2 + $0xf0] sm:$0xff] %vm993_vm3, %v946_v10  ;;  %1025 = vst.msk [vmem:[#allocation2 + $0xf8] sm:$0xff] %vm993_vm3, %v948_v11  ;;  %v1681_v10 = vld [vmem:[%s6644_s10 + $0x2a] sm:$0xff] }
 0x152   : > { %1353 = vrot.lane.b32.xlu1 %v7285_v8, %s6575_s15  ;;  %1351 = vrot.lane.b32.xlu0 %v7288_v9, %s6575_s15 }
 0x154   : > { %v950_v14 = vpop.permute.xlu0 %949  ;;  %v952_v15 = vpop.permute.xlu1 %951 }
 0x155   : > { %1026 = vst.msk [vmem:[#allocation2 + $0x100] sm:$0xff] %vm993_vm3, %v950_v14  ;;  %1027 = vst.msk [vmem:[#allocation2 + $0x108] sm:$0xff] %vm993_vm3, %v952_v15 }
 0x156   : > { %1357 = vrot.lane.b32.xlu1 %v7297_v12, %s6575_s15  ;;  %1355 = vrot.lane.b32.xlu0 %v7300_v13, %s6575_s15 }
 0x158   : > { %v954_v18 = vpop.permute.xlu0 %953  ;;  %v956_v19 = vpop.permute.xlu1 %955 }
 0x159   : > { %1028 = vst.msk [vmem:[#allocation2 + $0x110] sm:$0xff] %vm993_vm3, %v954_v18  ;;  %1029 = vst.msk [vmem:[#allocation2 + $0x118] sm:$0xff] %vm993_vm3, %v956_v19  ;;  %vm4839_vm3 = vcmask 589312  }
 0x15a   : > { %1361 = vrot.lane.b32.xlu1 %v7309_v16, %s6575_s15  ;;  %1359 = vrot.lane.b32.xlu0 %v7312_v17, %s6575_s15 }
 0x15c   : > { %v1103_v22 = vpop.permute.xlu0 %1102  ;;  %v1105_v23 = vpop.permute.xlu1 %1104 }
 0x15d   : > { %1211 = vst.msk [vmem:[#allocation2] sm:$0xff] %vm1210_vm4, %v1103_v22  ;;  %1212 = vst.msk [vmem:[#allocation2 + $0x8] sm:$0xff] %vm1210_vm4, %v1105_v23  ;;  %v1684_v23 = vld [vmem:[%s6644_s10 + $0x42] sm:$0xff] }
 0x15e   : > { %1365 = vrot.lane.b32.xlu1 %v7321_v20, %s6575_s15  ;;  %1363 = vrot.lane.b32.xlu0 %v7324_v21, %s6575_s15 }
 0x160   : > { %v1107_v26 = vpop.permute.xlu0 %1106  ;;  %v1109_v27 = vpop.permute.xlu1 %1108 }
 0x161   : > { %1213 = vst.msk [vmem:[#allocation2 + $0x10] sm:$0xff] %vm1210_vm4, %v1107_v26  ;;  %1214 = vst.msk [vmem:[#allocation2 + $0x18] sm:$0xff] %vm1210_vm4, %v1109_v27  ;;  %v1683_v26 = vld [vmem:[%s6644_s10 + $0x3a] sm:$0xff] }
 0x162   : > { %1369 = vrot.lane.b32.xlu1 %v7333_v24, %s6575_s15  ;;  %1367 = vrot.lane.b32.xlu0 %v7336_v25, %s6575_s15 }
 0x164   : > { %v1111_v30 = vpop.permute.xlu0 %1110  ;;  %v1113_v31 = vpop.permute.xlu1 %1112 }
 0x165   : > { %1215 = vst.msk [vmem:[#allocation2 + $0x20] sm:$0xff] %vm1210_vm4, %v1111_v30  ;;  %1216 = vst.msk [vmem:[#allocation2 + $0x28] sm:$0xff] %vm1210_vm4, %v1113_v31  ;;  %v1901_v31 = vld [vmem:[%s6644_s10 + $0x43] sm:$0xff] }
 0x166   : > { %1373 = vrot.lane.b32.xlu1 %v7345_v28, %s6575_s15  ;;  %1371 = vrot.lane.b32.xlu0 %v7348_v29, %s6575_s15 }
 0x168   : > { %v1115_v34 = vpop.permute.xlu0 %1114  ;;  %v1117_v35 = vpop.permute.xlu1 %1116 }
 0x169   : > { %1217 = vst.msk [vmem:[#allocation2 + $0x30] sm:$0xff] %vm1210_vm4, %v1115_v34  ;;  %1218 = vst.msk [vmem:[#allocation2 + $0x38] sm:$0xff] %vm1210_vm4, %v1117_v35  ;;  %v1900_v34 = vld [vmem:[%s6644_s10 + $0x3b] sm:$0xff] }
 0x16a   : > { %1377 = vrot.lane.b32.xlu1 %v7357_v32, %s6575_s15  ;;  %1375 = vrot.lane.b32.xlu0 %v7360_v33, %s6575_s15 }
 0x16c   : > { %v1119_v38 = vpop.permute.xlu0 %1118  ;;  %v1121_v39 = vpop.permute.xlu1 %1120 }
 0x16d   : > { %1219 = vst.msk [vmem:[#allocation2 + $0x40] sm:$0xff] %vm1210_vm4, %v1119_v38  ;;  %1220 = vst.msk [vmem:[#allocation2 + $0x48] sm:$0xff] %vm1210_vm4, %v1121_v39  ;;  %v1686_v39 = vld [vmem:[%s6644_s10 + $0x52] sm:$0xff] }
 0x16e   : > { %1381 = vrot.lane.b32.xlu1 %v7369_v36, %s6575_s15  ;;  %1379 = vrot.lane.b32.xlu0 %v7372_v37, %s6575_s15 }
 0x170   : > { %v1123_v42 = vpop.permute.xlu0 %1122  ;;  %v1125_v43 = vpop.permute.xlu1 %1124 }
 0x171   : > { %1221 = vst.msk [vmem:[#allocation2 + $0x50] sm:$0xff] %vm1210_vm4, %v1123_v42  ;;  %1222 = vst.msk [vmem:[#allocation2 + $0x58] sm:$0xff] %vm1210_vm4, %v1125_v43  ;;  %v1685_v42 = vld [vmem:[%s6644_s10 + $0x4a] sm:$0xff] }
 0x172   : > { %1385 = vrot.lane.b32.xlu1 %v7381_v40, %s6575_s15  ;;  %1383 = vrot.lane.b32.xlu0 %v7384_v41, %s6575_s15 }
 0x174   : > { %v1127_v55 = vpop.permute.xlu0 %1126  ;;  %v1129_v58 = vpop.permute.xlu1 %1128 }
 0x175   : > { %1223 = vst.msk [vmem:[#allocation2 + $0x60] sm:$0xff] %vm1210_vm4, %v1127_v55  ;;  %1224 = vst.msk [vmem:[#allocation2 + $0x68] sm:$0xff] %vm1210_vm4, %v1129_v58 }
 0x176   : > { %1389 = vrot.lane.b32.xlu1 %v7399_v51, %s6575_s15  ;;  %1387 = vrot.lane.b32.xlu0 %v7402_v54, %s6575_s15 }
 0x178   : > { %v1131_v2 = vpop.permute.xlu0 %1130  ;;  %v1133_v3 = vpop.permute.xlu1 %1132 }
 0x179   : > { %1225 = vst.msk [vmem:[#allocation2 + $0x70] sm:$0xff] %vm1210_vm4, %v1131_v2  ;;  %1226 = vst.msk [vmem:[#allocation2 + $0x78] sm:$0xff] %vm1210_vm4, %v1133_v3  ;;  %v1905_v3 = vld [vmem:[%s6644_s10 + $0x63] sm:$0xff] }
 0x17a   : > { %1538 = vrot.lane.b32.xlu1 %v7201_v44, %s6576_s24  ;;  %1536 = vrot.lane.b32.xlu0 %v7204_v45, %s6576_s24  ;;  %v1899_v44 = vld [vmem:[%s6644_s10 + $0x33] sm:$0xff]  ;;  %v1898_v45 = vld [vmem:[%s6644_s10 + $0x2b] sm:$0xff] }
 0x17c   : > { %v1135_v11 = vpop.permute.xlu0 %1134  ;;  %v1137_v14 = vpop.permute.xlu1 %1136 }
 0x17d   : > { %1227 = vst.msk [vmem:[#allocation2 + $0x80] sm:$0xff] %vm1210_vm4, %v1135_v11  ;;  %1228 = vst.msk [vmem:[#allocation2 + $0x88] sm:$0xff] %vm1210_vm4, %v1137_v14  ;;  %v1690_v11 = vld [vmem:[%s6644_s10 + $0x72] sm:$0xff]  ;;  %v1689_v14 = vld [vmem:[%s6644_s10 + $0x6a] sm:$0xff] }
 0x17e   : > { %1755 = vrot.lane.b32.xlu1 %v1682_v7, %s6577_s29  ;;  %1753 = vrot.lane.b32.xlu0 %v1681_v10, %s6577_s29 }
 0x180   : > { %v1139_v15 = vpop.permute.xlu0 %1138  ;;  %v1141_v18 = vpop.permute.xlu1 %1140 }
 0x181   : > { %1229 = vst.msk [vmem:[#allocation2 + $0x90] sm:$0xff] %vm1210_vm4, %v1139_v15  ;;  %1230 = vst.msk [vmem:[#allocation2 + $0x98] sm:$0xff] %vm1210_vm4, %v1141_v18  ;;  %v1907_v15 = vld [vmem:[%s6644_s10 + $0x73] sm:$0xff]  ;;  %v1906_v18 = vld [vmem:[%s6644_s10 + $0x6b] sm:$0xff] }
 0x182   : > { %1972 = vrot.lane.b32.xlu1 %v1899_v44, %s6578_s30  ;;  %1970 = vrot.lane.b32.xlu0 %v1898_v45, %s6578_s30 }
 0x184   : > { %v1143_v19 = vpop.permute.xlu0 %1142  ;;  %v1145_v22 = vpop.permute.xlu1 %1144 }
 0x185   : > { %1231 = vst.msk [vmem:[#allocation2 + $0xa0] sm:$0xff] %vm1210_vm4, %v1143_v19  ;;  %1232 = vst.msk [vmem:[#allocation2 + $0xa8] sm:$0xff] %vm1210_vm4, %v1145_v22 }
 0x186   : > { %1542 = vrot.lane.b32.xlu1 %v7213_v48, %s6576_s24  ;;  %1540 = vrot.lane.b32.xlu0 %v7216_v49, %s6576_s24 }
 0x188   : > { %v1147_v27 = vpop.permute.xlu0 %1146  ;;  %v1149_v30 = vpop.permute.xlu1 %1148 }
 0x189   : > { %1233 = vst.msk [vmem:[#allocation2 + $0xb0] sm:$0xff] %vm1210_vm4, %v1147_v27  ;;  %1234 = vst.msk [vmem:[#allocation2 + $0xb8] sm:$0xff] %vm1210_vm4, %v1149_v30 }
 0x18a   : > { %1759 = vrot.lane.b32.xlu1 %v1684_v23, %s6577_s29  ;;  %1757 = vrot.lane.b32.xlu0 %v1683_v26, %s6577_s29  ;;  %v1692_v23 = vld [vmem:[%s6644_s10 + $0x82] sm:$0xff]  ;;  %v1691_v26 = vld [vmem:[%s6644_s10 + $0x7a] sm:$0xff] }
 0x18c   : > { %v1151_v48 = vpop.permute.xlu0 %1150  ;;  %v1153_v35 = vpop.permute.xlu1 %1152 }
 0x18d   : > { %1235 = vst.msk [vmem:[#allocation2 + $0xc0] sm:$0xff] %vm1210_vm4, %v1151_v48  ;;  %1236 = vst.msk [vmem:[#allocation2 + $0xc8] sm:$0xff] %vm1210_vm4, %v1153_v35 }
 0x18e   : > { %1976 = vrot.lane.b32.xlu1 %v1901_v31, %s6578_s30  ;;  %1974 = vrot.lane.b32.xlu0 %v1900_v34, %s6578_s30  ;;  %v1909_v31 = vld [vmem:[%s6644_s10 + $0x83] sm:$0xff]  ;;  %v1908_v34 = vld [vmem:[%s6644_s10 + $0x7b] sm:$0xff] }
 0x190   : > { %v1155_v49 = vpop.permute.xlu0 %1154  ;;  %v1157_v38 = vpop.permute.xlu1 %1156 }
 0x191   : > { %1237 = vst.msk [vmem:[#allocation2 + $0xd0] sm:$0xff] %vm1210_vm4, %v1155_v49  ;;  %1238 = vst.msk [vmem:[#allocation2 + $0xd8] sm:$0xff] %vm1210_vm4, %v1157_v38  ;;  %v1694_v49 = vld [vmem:[%s6644_s10 + $0x92] sm:$0xff]  ;;  %v1693_v38 = vld [vmem:[%s6644_s10 + $0x8a] sm:$0xff] }
 0x192   : > { %1546 = vrot.lane.b32.xlu1 %v7225_v52, %s6576_s24  ;;  %1544 = vrot.lane.b32.xlu0 %v7228_v53, %s6576_s24 }
 0x194   : > { %v1159_v43 = vpop.permute.xlu0 %1158  ;;  %v1161_v46 = vpop.permute.xlu1 %1160 }
 0x195   : > { %1239 = vst.msk [vmem:[#allocation2 + $0xe0] sm:$0xff] %vm1210_vm4, %v1159_v43  ;;  %1240 = vst.msk [vmem:[#allocation2 + $0xe8] sm:$0xff] %vm1210_vm4, %v1161_v46  ;;  %v1911_v43 = vld [vmem:[%s6644_s10 + $0x93] sm:$0xff]  ;;  %v1910_v46 = vld [vmem:[%s6644_s10 + $0x8b] sm:$0xff] }
 0x196   : > { %1763 = vrot.lane.b32.xlu1 %v1686_v39, %s6577_s29  ;;  %1761 = vrot.lane.b32.xlu0 %v1685_v42, %s6577_s29 }
 0x198   : > { %v1163_v52 = vpop.permute.xlu0 %1162  ;;  %v1165_v55 = vpop.permute.xlu1 %1164 }
 0x199   : > { %1241 = vst.msk [vmem:[#allocation2 + $0xf0] sm:$0xff] %vm1210_vm4, %v1163_v52  ;;  %1242 = vst.msk [vmem:[#allocation2 + $0xf8] sm:$0xff] %vm1210_vm4, %v1165_v55  ;;  %v1696_v52 = vld [vmem:[%s6644_s10 + $0xa2] sm:$0xff]  ;;  %v1695_v55 = vld [vmem:[%s6644_s10 + $0x9a] sm:$0xff] }
 0x19a   : > { %1980 = vrot.lane.b32.xlu1 %v1903_v47, %s6578_s30  ;;  %1978 = vrot.lane.b32.xlu0 %v1902_v50, %s6578_s30 }
 0x19c   : > { %v1167_v53 = vpop.permute.xlu0 %1166  ;;  %v1169_v58 = vpop.permute.xlu1 %1168 }
 0x19d   : > { %1243 = vst.msk [vmem:[#allocation2 + $0x100] sm:$0xff] %vm1210_vm4, %v1167_v53  ;;  %1244 = vst.msk [vmem:[#allocation2 + $0x108] sm:$0xff] %vm1210_vm4, %v1169_v58 }
 0x19e   : > { %1550 = vrot.lane.b32.xlu1 %v7237_v56, %s6576_s24  ;;  %1548 = vrot.lane.b32.xlu0 %v7240_v57, %s6576_s24  ;;  %v1904_v56 = vld [vmem:[%s6644_s10 + $0x5b] sm:$0xff] }
 0x1a0   : > { %v1171_v63 = vpop.permute.xlu0 %1170  ;;  %v1173_v2 = vpop.permute.xlu1 %1172 }
 0x1a1   : > { %1245 = vst.msk [vmem:[#allocation2 + $0x110] sm:$0xff] %vm1210_vm4, %v1171_v63  ;;  %1246 = vst.msk [vmem:[#allocation2 + $0x118] sm:$0xff] %vm1210_vm4, %v1173_v2  ;;  %v6579_v63 = vmov 0   ;;  %vm4928_vm4 = vcmask 588800  }
 0x1a2   : > { %1767 = vrot.lane.b32.xlu1 %v1688_v59, %s6577_s29  ;;  %1765 = vrot.lane.b32.xlu0 %v1687_v62, %s6577_s29  ;;  %v1913_v59 = vld [vmem:[%s6644_s10 + $0xa3] sm:$0xff]  ;;  %v1912_v62 = vld [vmem:[%s6644_s10 + $0x9b] sm:$0xff] }
 0x1a3   : > { %6272 = vset.pattern.permute.xlu1 %v6579_v63  ;;  %6271 = vset.pattern.permute.xlu0 %v6579_v63  ;;  %v1922_v63 = vld [vmem:[%s6644_s10 + $0xeb] sm:$0xff] }
 0x1a4   : > { %v1320_v6 = vpop.permute.xlu0 %1319  ;;  %v1322_v7 = vpop.permute.xlu1 %1321 }
 0x1a5   : > { %1428 = vst.msk [vmem:[#allocation2] sm:$0xff] %vm1427_vm6, %v1320_v6  ;;  %1429 = vst.msk [vmem:[#allocation2 + $0x8] sm:$0xff] %vm1427_vm6, %v1322_v7  ;;  %v1697_v6 = vld [vmem:[%s6644_s10 + $0xaa] sm:$0xff] }
 0x1a6   : > { %1984 = vrot.lane.b32.xlu1 %v1905_v3, %s6578_s30  ;;  %1982 = vrot.lane.b32.xlu0 %v1904_v56, %s6578_s30  ;;  %v1698_v56 = vld [vmem:[%s6644_s10 + $0xb2] sm:$0xff] }
 0x1a8   : > { %v1324_v57 = vpop.permute.xlu0 %1323  ;;  %v1326_v10 = vpop.permute.xlu1 %1325 }
 0x1a9   : > { %1430 = vst.msk [vmem:[#allocation2 + $0x10] sm:$0xff] %vm1427_vm6, %v1324_v57  ;;  %1431 = vst.msk [vmem:[#allocation2 + $0x18] sm:$0xff] %vm1427_vm6, %v1326_v10  ;;  %v1915_v10 = vld [vmem:[%s6644_s10 + $0xb3] sm:$0xff] }
 0x1aa   : > { %1554 = vrot.lane.b32.xlu1 %v7249_v60, %s6576_s24  ;;  %1552 = vrot.lane.b32.xlu0 %v7252_v61, %s6576_s24 }
 0x1ac   : > { %v1328_v44 = vpop.permute.xlu0 %1327  ;;  %v1330_v45 = vpop.permute.xlu1 %1329 }
 0x1ad   : > { %1432 = vst.msk [vmem:[#allocation2 + $0x20] sm:$0xff] %vm1427_vm6, %v1328_v44  ;;  %1433 = vst.msk [vmem:[#allocation2 + $0x28] sm:$0xff] %vm1427_vm6, %v1330_v45  ;;  %v1700_v45 = vld [vmem:[%s6644_s10 + $0xc2] sm:$0xff] }
 0x1ae   : > { %1771 = vrot.lane.b32.xlu1 %v1690_v11, %s6577_s29  ;;  %1769 = vrot.lane.b32.xlu0 %v1689_v14, %s6577_s29  ;;  %v1914_v11 = vld [vmem:[%s6644_s10 + $0xab] sm:$0xff] }
 0x1b0   : > { %v1332_v60 = vpop.permute.xlu0 %1331  ;;  %v1334_v19 = vpop.permute.xlu1 %1333 }
 0x1b1   : > { %1434 = vst.msk [vmem:[#allocation2 + $0x30] sm:$0xff] %vm1427_vm6, %v1332_v60  ;;  %1435 = vst.msk [vmem:[#allocation2 + $0x38] sm:$0xff] %vm1427_vm6, %v1334_v19  ;;  %v1917_v19 = vld [vmem:[%s6644_s10 + $0xc3] sm:$0xff] }
 0x1b2   : > { %1988 = vrot.lane.b32.xlu1 %v1907_v15, %s6578_s30  ;;  %1986 = vrot.lane.b32.xlu0 %v1906_v18, %s6578_s30  ;;  %v1699_v15 = vld [vmem:[%s6644_s10 + $0xba] sm:$0xff] }
 0x1b4   : > { %v1336_v61 = vpop.permute.xlu0 %1335  ;;  %v1338_v22 = vpop.permute.xlu1 %1337 }
 0x1b5   : > { %1436 = vst.msk [vmem:[#allocation2 + $0x40] sm:$0xff] %vm1427_vm6, %v1336_v61  ;;  %1437 = vst.msk [vmem:[#allocation2 + $0x48] sm:$0xff] %vm1427_vm6, %v1338_v22  ;;  %v1916_v61 = vld [vmem:[%s6644_s10 + $0xbb] sm:$0xff] }
 0x1b6   : > { %1558 = vrot.lane.b32.xlu1 %v7261_v0, %s6576_s24  ;;  %1556 = vrot.lane.b32.xlu0 %v7264_v1, %s6576_s24 }
 0x1b8   : > { %v1340_v27 = vpop.permute.xlu0 %1339  ;;  %v1342_v30 = vpop.permute.xlu1 %1341 }
 0x1b9   : > { %1438 = vst.msk [vmem:[#allocation2 + $0x50] sm:$0xff] %vm1427_vm6, %v1340_v27  ;;  %1439 = vst.msk [vmem:[#allocation2 + $0x58] sm:$0xff] %vm1427_vm6, %v1342_v30  ;;  %v1701_v27 = vld [vmem:[%s6644_s10 + $0xca] sm:$0xff] }
 0x1ba   : > { %1775 = vrot.lane.b32.xlu1 %v1692_v23, %s6577_s29  ;;  %1773 = vrot.lane.b32.xlu0 %v1691_v26, %s6577_s29  ;;  %v1702_v26 = vld [vmem:[%s6644_s10 + $0xd2] sm:$0xff] }
 0x1bc   : > { %v1344_v0 = vpop.permute.xlu0 %1343  ;;  %v1346_v48 = vpop.permute.xlu1 %1345 }
 0x1bd   : > { %1440 = vst.msk [vmem:[#allocation2 + $0x60] sm:$0xff] %vm1427_vm6, %v1344_v0  ;;  %1441 = vst.msk [vmem:[#allocation2 + $0x68] sm:$0xff] %vm1427_vm6, %v1346_v48  ;;  %v1918_v0 = vld [vmem:[%s6644_s10 + $0xcb] sm:$0xff] }
 0x1be   : > { %1992 = vrot.lane.b32.xlu1 %v1909_v31, %s6578_s30  ;;  %1990 = vrot.lane.b32.xlu0 %v1908_v34, %s6578_s30  ;;  %v1919_v34 = vld [vmem:[%s6644_s10 + $0xd3] sm:$0xff] }
 0x1c0   : > { %v1348_v1 = vpop.permute.xlu0 %1347  ;;  %v1350_v35 = vpop.permute.xlu1 %1349 }
 0x1c1   : > { %1442 = vst.msk [vmem:[#allocation2 + $0x70] sm:$0xff] %vm1427_vm6, %v1348_v1  ;;  %1443 = vst.msk [vmem:[#allocation2 + $0x78] sm:$0xff] %vm1427_vm6, %v1350_v35 }
 0x1c2   : > { %1562 = vrot.lane.b32.xlu1 %v7273_v4, %s6576_s24  ;;  %1560 = vrot.lane.b32.xlu0 %v7276_v5, %s6576_s24 }
 0x1c4   : > { %v1352_v39 = vpop.permute.xlu0 %1351  ;;  %v1354_v42 = vpop.permute.xlu1 %1353 }
 0x1c5   : > { %1444 = vst.msk [vmem:[#allocation2 + $0x80] sm:$0xff] %vm1427_vm6, %v1352_v39  ;;  %1445 = vst.msk [vmem:[#allocation2 + $0x88] sm:$0xff] %vm1427_vm6, %v1354_v42  ;;  %v1703_v39 = vld [vmem:[%s6644_s10 + $0xda] sm:$0xff] }
 0x1c6   : > { %1779 = vrot.lane.b32.xlu1 %v1694_v49, %s6577_s29  ;;  %1777 = vrot.lane.b32.xlu0 %v1693_v38, %s6577_s29  ;;  %v1704_v38 = vld [vmem:[%s6644_s10 + $0xe2] sm:$0xff] }
 0x1c8   : > { %v1356_v4 = vpop.permute.xlu0 %1355  ;;  %v1358_v47 = vpop.permute.xlu1 %1357 }
 0x1c9   : > { %1446 = vst.msk [vmem:[#allocation2 + $0x90] sm:$0xff] %vm1427_vm6, %v1356_v4  ;;  %1447 = vst.msk [vmem:[#allocation2 + $0x98] sm:$0xff] %vm1427_vm6, %v1358_v47  ;;  %v1920_v4 = vld [vmem:[%s6644_s10 + $0xdb] sm:$0xff] }
 0x1ca   : > { %1996 = vrot.lane.b32.xlu1 %v1911_v43, %s6578_s30  ;;  %1994 = vrot.lane.b32.xlu0 %v1910_v46, %s6578_s30  ;;  %v1921_v46 = vld [vmem:[%s6644_s10 + $0xe3] sm:$0xff] }
 0x1cc   : > { %v1360_v5 = vpop.permute.xlu0 %1359  ;;  %v1362_v50 = vpop.permute.xlu1 %1361 }
 0x1cd   : > { %1448 = vst.msk [vmem:[#allocation2 + $0xa0] sm:$0xff] %vm1427_vm6, %v1360_v5  ;;  %1449 = vst.msk [vmem:[#allocation2 + $0xa8] sm:$0xff] %vm1427_vm6, %v1362_v50 }
 0x1ce   : > { %1566 = vrot.lane.b32.xlu1 %v7285_v8, %s6576_s24  ;;  %1564 = vrot.lane.b32.xlu0 %v7288_v9, %s6576_s24 }
 0x1d0   : > { %v1364_v53 = vpop.permute.xlu0 %1363  ;;  %v1366_v58 = vpop.permute.xlu1 %1365 }
 0x1d1   : > { %1450 = vst.msk [vmem:[#allocation2 + $0xb0] sm:$0xff] %vm1427_vm6, %v1364_v53  ;;  %1451 = vst.msk [vmem:[#allocation2 + $0xb8] sm:$0xff] %vm1427_vm6, %v1366_v58  ;;  %v1705_v53 = vld [vmem:[%s6644_s10 + $0xea] sm:$0xff] }
 0x1d2   : > { %1783 = vrot.lane.b32.xlu1 %v1696_v52, %s6577_s29  ;;  %1781 = vrot.lane.b32.xlu0 %v1695_v55, %s6577_s29  ;;  %v1706_v55 = vld [vmem:[%s6644_s10 + $0xf2] sm:$0xff] }
 0x1d4   : > { %v1368_v8 = vpop.permute.xlu0 %1367  ;;  %v1370_v9 = vpop.permute.xlu1 %1369 }
 0x1d5   : > { %1452 = vst.msk [vmem:[#allocation2 + $0xc0] sm:$0xff] %vm1427_vm6, %v1368_v8  ;;  %1453 = vst.msk [vmem:[#allocation2 + $0xc8] sm:$0xff] %vm1427_vm6, %v1370_v9 }
 0x1d6   : > { %2000 = vrot.lane.b32.xlu1 %v1913_v59, %s6578_s30  ;;  %1998 = vrot.lane.b32.xlu0 %v1912_v62, %s6578_s30  ;;  %v1923_v62 = vld [vmem:[%s6644_s10 + $0xf3] sm:$0xff] }
 0x1d8   : > { %v1372_v2 = vpop.permute.xlu0 %1371  ;;  %v1374_v3 = vpop.permute.xlu1 %1373 }
 0x1d9   : > { %1454 = vst.msk [vmem:[#allocation2 + $0xd0] sm:$0xff] %vm1427_vm6, %v1372_v2  ;;  %1455 = vst.msk [vmem:[#allocation2 + $0xd8] sm:$0xff] %vm1427_vm6, %v1374_v3 }
 0x1da   : > { %1570 = vrot.lane.b32.xlu1 %v7297_v12, %s6576_s24  ;;  %1568 = vrot.lane.b32.xlu0 %v7300_v13, %s6576_s24 }
 0x1dc   : > { %v1376_v7 = vpop.permute.xlu0 %1375  ;;  %v1378_v57 = vpop.permute.xlu1 %1377 }
 0x1dd   : > { %1456 = vst.msk [vmem:[#allocation2 + $0xe0] sm:$0xff] %vm1427_vm6, %v1376_v7  ;;  %1457 = vst.msk [vmem:[#allocation2 + $0xe8] sm:$0xff] %vm1427_vm6, %v1378_v57 }
 0x1de   : > { %1787 = vrot.lane.b32.xlu1 %v1698_v56, %s6577_s29  ;;  %1785 = vrot.lane.b32.xlu0 %v1697_v6, %s6577_s29  ;;  %v1708_v56 = vld [vmem:[%s6644_s10 + $0x102] sm:$0xff]  ;;  %v1707_v6 = vld [vmem:[%s6644_s10 + $0xfa] sm:$0xff] }
 0x1e0   : > { %v1380_v12 = vpop.permute.xlu0 %1379  ;;  %v1382_v14 = vpop.permute.xlu1 %1381 }
 0x1e1   : > { %1458 = vst.msk [vmem:[#allocation2 + $0xf0] sm:$0xff] %vm1427_vm6, %v1380_v12  ;;  %1459 = vst.msk [vmem:[#allocation2 + $0xf8] sm:$0xff] %vm1427_vm6, %v1382_v14 }
 0x1e2   : > { %2004 = vrot.lane.b32.xlu1 %v1915_v10, %s6578_s30  ;;  %2002 = vrot.lane.b32.xlu0 %v1914_v11, %s6578_s30  ;;  %v1925_v10 = vld [vmem:[%s6644_s10 + $0x103] sm:$0xff]  ;;  %v1924_v11 = vld [vmem:[%s6644_s10 + $0xfb] sm:$0xff] }
 0x1e4   : > { %v1384_v13 = vpop.permute.xlu0 %1383  ;;  %v1386_v44 = vpop.permute.xlu1 %1385 }
 0x1e5   : > { %1460 = vst.msk [vmem:[#allocation2 + $0x100] sm:$0xff] %vm1427_vm6, %v1384_v13  ;;  %1461 = vst.msk [vmem:[#allocation2 + $0x108] sm:$0xff] %vm1427_vm6, %v1386_v44 }
 0x1e6   : > { %1574 = vrot.lane.b32.xlu1 %v7309_v16, %s6576_s24  ;;  %1572 = vrot.lane.b32.xlu0 %v7312_v17, %s6576_s24 }
 0x1e8   : > { %v1388_v18 = vpop.permute.xlu0 %1387  ;;  %v1390_v60 = vpop.permute.xlu1 %1389 }
 0x1e9   : > { %1462 = vst.msk [vmem:[#allocation2 + $0x110] sm:$0xff] %vm1427_vm6, %v1388_v18  ;;  %1463 = vst.msk [vmem:[#allocation2 + $0x118] sm:$0xff] %vm1427_vm6, %v1390_v60 }
 0x1ea   : > { %1791 = vrot.lane.b32.xlu1 %v1700_v45, %s6577_s29  ;;  %1789 = vrot.lane.b32.xlu0 %v1699_v15, %s6577_s29  ;;  %v1710_v45 = vld [vmem:[%s6644_s10 + $0x112] sm:$0xff]  ;;  %v1709_v15 = vld [vmem:[%s6644_s10 + $0x10a] sm:$0xff] }
 0x1ec   : > { %v1537_v16 = vpop.permute.xlu0 %1536  ;;  %v1539_v22 = vpop.permute.xlu1 %1538 }
 0x1ed   : > { %1645 = vst.msk [vmem:[#allocation2] sm:$0xff] %vm1644_vm7, %v1537_v16  ;;  %1646 = vst.msk [vmem:[#allocation2 + $0x8] sm:$0xff] %vm1644_vm7, %v1539_v22 }
 0x1ee   : > { %2008 = vrot.lane.b32.xlu1 %v1917_v19, %s6578_s30  ;;  %2006 = vrot.lane.b32.xlu0 %v1916_v61, %s6578_s30  ;;  %v1927_v19 = vld [vmem:[%s6644_s10 + $0x113] sm:$0xff]  ;;  %v1926_v61 = vld [vmem:[%s6644_s10 + $0x10b] sm:$0xff] }
 0x1f0   : > { %v1754_v17 = vpop.permute.xlu0 %1753  ;;  %v1756_v23 = vpop.permute.xlu1 %1755 }
 0x1f1   : > { %1862 = vst.msk [vmem:[#allocation2] sm:$0xff] %vm1861_vm8, %v1754_v17  ;;  %1863 = vst.msk [vmem:[#allocation2 + $0x8] sm:$0xff] %vm1861_vm8, %v1756_v23 }
 0x1f2   : > { %1578 = vrot.lane.b32.xlu1 %v7321_v20, %s6576_s24  ;;  %1576 = vrot.lane.b32.xlu0 %v7324_v21, %s6576_s24 }
 0x1f4   : > { %v1971_v30 = vpop.permute.xlu0 %1970  ;;  %v1973_v31 = vpop.permute.xlu1 %1972 }
 0x1f5   : > { %2079 = vst.msk [vmem:[#allocation2] sm:$0xff] %vm2078_vm9, %v1971_v30  ;;  %2080 = vst.msk [vmem:[#allocation2 + $0x8] sm:$0xff] %vm2078_vm9, %v1973_v31 }
 0x1f6   : > { %1795 = vrot.lane.b32.xlu1 %v1702_v26, %s6577_s29  ;;  %1793 = vrot.lane.b32.xlu0 %v1701_v27, %s6577_s29  ;;  %v1712_v26 = vld [vmem:[%s6644_s10 + $0x122] sm:$0xff]  ;;  %v1711_v27 = vld [vmem:[%s6644_s10 + $0x11a] sm:$0xff] }
 0x1f8   : > { %v1541_v48 = vpop.permute.xlu0 %1540  ;;  %v1543_v20 = vpop.permute.xlu1 %1542 }
 0x1f9   : > { %1647 = vst.msk [vmem:[#allocation2 + $0x10] sm:$0xff] %vm1644_vm7, %v1541_v48  ;;  %1648 = vst.msk [vmem:[#allocation2 + $0x18] sm:$0xff] %vm1644_vm7, %v1543_v20 }
 0x1fa   : > { %2012 = vrot.lane.b32.xlu1 %v1919_v34, %s6578_s30  ;;  %2010 = vrot.lane.b32.xlu0 %v1918_v0, %s6578_s30  ;;  %v1929_v34 = vld [vmem:[%s6644_s10 + $0x123] sm:$0xff]  ;;  %v1928_v0 = vld [vmem:[%s6644_s10 + $0x11b] sm:$0xff] }
 0x1fc   : > { %v1758_v21 = vpop.permute.xlu0 %1757  ;;  %v1760_v1 = vpop.permute.xlu1 %1759  ;;  %v2115_v35 = vld [vmem:[#allocation2] sm:$0xff]  ;;  %v2116_v49 = vld [vmem:[#allocation2 + $0x8] sm:$0xff] }
 0x1fd   : > { %1864 = vst.msk [vmem:[#allocation2 + $0x10] sm:$0xff] %vm1861_vm8, %v1758_v21  ;;  %1865 = vst.msk [vmem:[#allocation2 + $0x18] sm:$0xff] %vm1861_vm8, %v1760_v1  ;;  %6076 = vmatprep.mubr.msk.f32.mxu0 %vm2163_vm10, %v2115_v35  ;;  %v1714_v35 = vld [vmem:[%s6644_s10 + $0x132] sm:$0xff] }
 0x1fe   : > { %1582 = vrot.lane.b32.xlu1 %v7333_v24, %s6576_s24  ;;  %1580 = vrot.lane.b32.xlu0 %v7336_v25, %s6576_s24 }
 0x1ff   : > { %6077 = vmatmul.mubr.msk.f32.vlgmr.msra.gmra.mrb[0].mxu0 %vm2163_vm10, %v2116_v49  ;;  %v1713_v49 = vld [vmem:[%s6644_s10 + $0x12a] sm:$0xff] }
 0x200   : > { %v1975_v42 = vpop.permute.xlu0 %1974  ;;  %v1977_v43 = vpop.permute.xlu1 %1976 }
 0x201   : > { %2081 = vst.msk [vmem:[#allocation2 + $0x10] sm:$0xff] %vm2078_vm9, %v1975_v42  ;;  %2082 = vst.msk [vmem:[#allocation2 + $0x18] sm:$0xff] %vm2078_vm9, %v1977_v43  ;;  %v1930_v42 = vld [vmem:[%s6644_s10 + $0x12b] sm:$0xff] }
 0x202   : > { %1799 = vrot.lane.b32.xlu1 %v1704_v38, %s6577_s29  ;;  %1797 = vrot.lane.b32.xlu0 %v1703_v39, %s6577_s29 }
 0x204   : > { %v1545_v24 = vpop.permute.xlu0 %1544  ;;  %v1547_v47 = vpop.permute.xlu1 %1546 }
 0x205   : > { %1649 = vst.msk [vmem:[#allocation2 + $0x20] sm:$0xff] %vm1644_vm7, %v1545_v24  ;;  %1650 = vst.msk [vmem:[#allocation2 + $0x28] sm:$0xff] %vm1644_vm7, %v1547_v47 }
 0x206   : > { %2016 = vrot.lane.b32.xlu1 %v1921_v46, %s6578_s30  ;;  %2014 = vrot.lane.b32.xlu0 %v1920_v4, %s6578_s30  ;;  %v1499_v46 = vld [vmem:[%s6644_s10 + $0x141] sm:$0xff]  ;;  %v1498_v4 = vld [vmem:[%s6644_s10 + $0x139] sm:$0xff] }
 0x208   : > { %v1762_v25 = vpop.permute.xlu0 %1761  ;;  %v1764_v5 = vpop.permute.xlu1 %1763  ;;  %v2117_v50 = vld [vmem:[#allocation2 + $0x10] sm:$0xff]  ;;  %v2118_v52 = vld [vmem:[#allocation2 + $0x18] sm:$0xff] }
 0x209   : > { %1866 = vst.msk [vmem:[#allocation2 + $0x20] sm:$0xff] %vm1861_vm8, %v1762_v25  ;;  %1867 = vst.msk [vmem:[#allocation2 + $0x28] sm:$0xff] %vm1861_vm8, %v1764_v5  ;;  %6079 = vmatprep.mubr.msk.f32.mxu0 %vm2163_vm10, %v2117_v50  ;;  %v1716_v50 = vld [vmem:[%s6644_s10 + $0x142] sm:$0xff] }
 0x20a   : > { %1586 = vrot.lane.b32.xlu1 %v7345_v28, %s6576_s24  ;;  %1584 = vrot.lane.b32.xlu0 %v7348_v29, %s6576_s24 }
 0x20b   : > { %6080 = vmatmul.mubr.msk.f32.gmra.mrb[2].mxu0 %vm2163_vm10, %v2118_v52  ;;  %v1715_v52 = vld [vmem:[%s6644_s10 + $0x13a] sm:$0xff] }
 0x20c   : > { %v1979_v58 = vpop.permute.xlu0 %1978  ;;  %v1981_v59 = vpop.permute.xlu1 %1980 }
 0x20d   : > { %2083 = vst.msk [vmem:[#allocation2 + $0x20] sm:$0xff] %vm2078_vm9, %v1979_v58  ;;  %2084 = vst.msk [vmem:[#allocation2 + $0x28] sm:$0xff] %vm2078_vm9, %v1981_v59  ;;  %v1933_v58 = vld [vmem:[%s6644_s10 + $0x143] sm:$0xff]  ;;  %v1932_v59 = vld [vmem:[%s6644_s10 + $0x13b] sm:$0xff] }
 0x20e   : > { %1803 = vrot.lane.b32.xlu1 %v1706_v55, %s6577_s29  ;;  %1801 = vrot.lane.b32.xlu0 %v1705_v53, %s6577_s29 }
 0x210   : > { %v1549_v28 = vpop.permute.xlu0 %1548  ;;  %v1551_v8 = vpop.permute.xlu1 %1550 }
 0x211   : > { %1651 = vst.msk [vmem:[#allocation2 + $0x30] sm:$0xff] %vm1644_vm7, %v1549_v28  ;;  %1652 = vst.msk [vmem:[#allocation2 + $0x38] sm:$0xff] %vm1644_vm7, %v1551_v8  ;;  %v2774_v28 = vld [vmem:[%s9251_s7 + $0x8] sm:$0xff]  ;;  %v2773_v8 = vld [vmem:[%s9251_s7] sm:$0xff] }
 0x212   : > { %2020 = vrot.lane.b32.xlu1 %v1923_v62, %s6578_s30  ;;  %2018 = vrot.lane.b32.xlu0 %v1922_v63, %s6578_s30 }
 0x214   : > { %v1766_v29 = vpop.permute.xlu0 %1765  ;;  %v1768_v9 = vpop.permute.xlu1 %1767  ;;  %v2119_v2 = vld [vmem:[#allocation2 + $0x20] sm:$0xff]  ;;  %v2120_v3 = vld [vmem:[#allocation2 + $0x28] sm:$0xff] }
 0x215   : > { %1868 = vst.msk [vmem:[#allocation2 + $0x30] sm:$0xff] %vm1861_vm8, %v1766_v29  ;;  %1869 = vst.msk [vmem:[#allocation2 + $0x38] sm:$0xff] %vm1861_vm8, %v1768_v9  ;;  %6082 = vmatprep.mubr.msk.f32.mxu0 %vm2163_vm10, %v2119_v2 }
 0x216   : > { %1590 = vrot.lane.b32.xlu1 %v7357_v32, %s6576_s24  ;;  %1588 = vrot.lane.b32.xlu0 %v7360_v33, %s6576_s24 }
 0x217   : > { %6083 = vmatmul.mubr.msk.f32.gmra.mrb[4].mxu0 %vm2163_vm10, %v2120_v3 }
 0x218   : > { %v1983_v7 = vpop.permute.xlu0 %1982  ;;  %v1985_v57 = vpop.permute.xlu1 %1984 }
 0x219   : > { %2085 = vst.msk [vmem:[#allocation2 + $0x30] sm:$0xff] %vm2078_vm9, %v1983_v7  ;;  %2086 = vst.msk [vmem:[#allocation2 + $0x38] sm:$0xff] %vm2078_vm9, %v1985_v57 }
 0x21a   : > { %1807 = vrot.lane.b32.xlu1 %v1708_v56, %s6577_s29  ;;  %1805 = vrot.lane.b32.xlu0 %v1707_v6, %s6577_s29  ;;  %v2775_v56 = vld [vmem:[%s9251_s7 + $0x10] sm:$0xff]  ;;  %v2776_v6 = vld [vmem:[%s9251_s7 + $0x18] sm:$0xff] }
 0x21c   : > { %v1553_v32 = vpop.permute.xlu0 %1552  ;;  %v1555_v12 = vpop.permute.xlu1 %1554 }
 0x21d   : > { %1653 = vst.msk [vmem:[#allocation2 + $0x40] sm:$0xff] %vm1644_vm7, %v1553_v32  ;;  %1654 = vst.msk [vmem:[#allocation2 + $0x48] sm:$0xff] %vm1644_vm7, %v1555_v12 }
 0x21e   : > { %2024 = vrot.lane.b32.xlu1 %v1925_v10, %s6578_s30  ;;  %2022 = vrot.lane.b32.xlu0 %v1924_v11, %s6578_s30  ;;  %v2777_v10 = vld [vmem:[%s9251_s7 + $0x20] sm:$0xff]  ;;  %v2778_v11 = vld [vmem:[%s9251_s7 + $0x28] sm:$0xff] }
 0x220   : > { %v1770_v33 = vpop.permute.xlu0 %1769  ;;  %v1772_v14 = vpop.permute.xlu1 %1771  ;;  %v2121_v13 = vld [vmem:[#allocation2 + $0x30] sm:$0xff]  ;;  %v2122_v44 = vld [vmem:[#allocation2 + $0x38] sm:$0xff] }
 0x221   : > { %1870 = vst.msk [vmem:[#allocation2 + $0x40] sm:$0xff] %vm1861_vm8, %v1770_v33  ;;  %1871 = vst.msk [vmem:[#allocation2 + $0x48] sm:$0xff] %vm1861_vm8, %v1772_v14  ;;  %6085 = vmatprep.mubr.msk.f32.mxu0 %vm2163_vm10, %v2121_v13  ;;  %v2779_v33 = vld [vmem:[%s9251_s7 + $0x30] sm:$0xff]  ;;  %v2780_v14 = vld [vmem:[%s9251_s7 + $0x38] sm:$0xff] }
 0x222   : > { %1594 = vrot.lane.b32.xlu1 %v7369_v36, %s6576_s24  ;;  %1592 = vrot.lane.b32.xlu0 %v7372_v37, %s6576_s24 }
 0x223   : > { %6086 = vmatmul.mubr.msk.f32.gmra.mrb[6].mxu0 %vm2163_vm10, %v2122_v44 }
 0x224   : > { %v1987_v18 = vpop.permute.xlu0 %1986  ;;  %v1989_v60 = vpop.permute.xlu1 %1988 }
 0x225   : > { %2087 = vst.msk [vmem:[#allocation2 + $0x40] sm:$0xff] %vm2078_vm9, %v1987_v18  ;;  %2088 = vst.msk [vmem:[#allocation2 + $0x48] sm:$0xff] %vm2078_vm9, %v1989_v60  ;;  %v2781_v18 = vld [vmem:[%s9251_s7 + $0x40] sm:$0xff]  ;;  %v2782_v60 = vld [vmem:[%s9251_s7 + $0x48] sm:$0xff] }
 0x226   : > { %1811 = vrot.lane.b32.xlu1 %v1710_v45, %s6577_s29  ;;  %1809 = vrot.lane.b32.xlu0 %v1709_v15, %s6577_s29 }
 0x228   : > { %v1557_v36 = vpop.permute.xlu0 %1556  ;;  %v1559_v16 = vpop.permute.xlu1 %1558 }
 0x229   : > { %1655 = vst.msk [vmem:[#allocation2 + $0x50] sm:$0xff] %vm1644_vm7, %v1557_v36  ;;  %1656 = vst.msk [vmem:[#allocation2 + $0x58] sm:$0xff] %vm1644_vm7, %v1559_v16  ;;  %v2783_v36 = vld [vmem:[%s9251_s7 + $0x50] sm:$0xff]  ;;  %v2784_v16 = vld [vmem:[%s9251_s7 + $0x58] sm:$0xff] }
 0x22a   : > { %2028 = vrot.lane.b32.xlu1 %v1927_v19, %s6578_s30  ;;  %2026 = vrot.lane.b32.xlu0 %v1926_v61, %s6578_s30 }
 0x22c   : > { %v1774_v37 = vpop.permute.xlu0 %1773  ;;  %v1776_v22 = vpop.permute.xlu1 %1775  ;;  %v2123_v17 = vld [vmem:[#allocation2 + $0x40] sm:$0xff]  ;;  %v2124_v23 = vld [vmem:[#allocation2 + $0x48] sm:$0xff] }
 0x22d   : > { %1872 = vst.msk [vmem:[#allocation2 + $0x50] sm:$0xff] %vm1861_vm8, %v1774_v37  ;;  %1873 = vst.msk [vmem:[#allocation2 + $0x58] sm:$0xff] %vm1861_vm8, %v1776_v22  ;;  %6088 = vmatprep.mubr.msk.f32.mxu0 %vm2163_vm10, %v2123_v17  ;;  %v2785_v17 = vld [vmem:[%s9251_s7 + $0x60] sm:$0xff] }
 0x22e   : > { %1598 = vrot.lane.b32.xlu1 %v7381_v40, %s6576_s24  ;;  %1596 = vrot.lane.b32.xlu0 %v7384_v41, %s6576_s24 }
 0x22f   : > { %6089 = vmatmul.mubr.msk.f32.gmra.mrb[8].mxu0 %vm2163_vm10, %v2124_v23  ;;  %v2786_v23 = vld [vmem:[%s9251_s7 + $0x68] sm:$0xff] }
 0x230   : > { %v1991_v30 = vpop.permute.xlu0 %1990  ;;  %v1993_v31 = vpop.permute.xlu1 %1992 }
 0x231   : > { %2089 = vst.msk [vmem:[#allocation2 + $0x50] sm:$0xff] %vm2078_vm9, %v1991_v30  ;;  %2090 = vst.msk [vmem:[#allocation2 + $0x58] sm:$0xff] %vm2078_vm9, %v1993_v31 }
 0x232   : > { %1815 = vrot.lane.b32.xlu1 %v1712_v26, %s6577_s29  ;;  %1813 = vrot.lane.b32.xlu0 %v1711_v27, %s6577_s29 }
 0x234   : > { %v1561_v40 = vpop.permute.xlu0 %1560  ;;  %v1563_v48 = vpop.permute.xlu1 %1562 }
 0x235   : > { %1657 = vst.msk [vmem:[#allocation2 + $0x60] sm:$0xff] %vm1644_vm7, %v1561_v40  ;;  %1658 = vst.msk [vmem:[#allocation2 + $0x68] sm:$0xff] %vm1644_vm7, %v1563_v48 }
 0x236   : > { %2032 = vrot.lane.b32.xlu1 %v1929_v34, %s6578_s30  ;;  %2030 = vrot.lane.b32.xlu0 %v1928_v0, %s6578_s30  ;;  %v2787_v34 = vld [vmem:[%s9251_s7 + $0x70] sm:$0xff]  ;;  %v2788_v0 = vld [vmem:[%s9251_s7 + $0x78] sm:$0xff] }
 0x238   : > { %v1778_v41 = vpop.permute.xlu0 %1777  ;;  %v1780_v20 = vpop.permute.xlu1 %1779  ;;  %v2125_v21 = vld [vmem:[#allocation2 + $0x50] sm:$0xff]  ;;  %v2126_v1 = vld [vmem:[#allocation2 + $0x58] sm:$0xff] }
 0x239   : > { %1874 = vst.msk [vmem:[#allocation2 + $0x60] sm:$0xff] %vm1861_vm8, %v1778_v41  ;;  %1875 = vst.msk [vmem:[#allocation2 + $0x68] sm:$0xff] %vm1861_vm8, %v1780_v20  ;;  %6091 = vmatprep.mubr.msk.f32.mxu0 %vm2163_vm10, %v2125_v21  ;;  %v6580_v41 = vmov 0.0   ;;  %v2789_v20 = vld [vmem:[%s9251_s7 + $0x80] sm:$0xff]  ;;  %v2790_v21 = vld [vmem:[%s9251_s7 + $0x88] sm:$0xff] }
 0x23a   : > { %1602 = vrot.lane.b32.xlu1 %v7399_v51, %s6576_s24  ;;  %1600 = vrot.lane.b32.xlu0 %v7402_v54, %s6576_s24  ;;  %v1931_v51 = vld [vmem:[%s6644_s10 + $0x133] sm:$0xff]  ;;  %3026 = vst.msk [vmem:[#allocation3] sm:$0xff] %vm3025_vm11, %v6580_v41  ;;  %3027 = vst.msk [vmem:[#allocation3 + $0x8] sm:$0xff] %vm3025_vm11, %v6580_v41  ;;  %s6583_s10 = smov 56  }
 0x23b   : > { %6092 = vmatmul.mubr.msk.f32.gmra.mrb[10].mxu0 %vm2163_vm10, %v2126_v1  ;;  %3028 = vst.msk [vmem:[#allocation3 + $0x10] sm:$0xff] %vm3025_vm11, %v6580_v41  ;;  %3029 = vst.msk [vmem:[#allocation3 + $0x138] sm:$0xff] %vm3025_vm11, %v6580_v41 }
 0x23c   : > { %v1995_v38 = vpop.permute.xlu0 %1994  ;;  %v1997_v39 = vpop.permute.xlu1 %1996  ;;  %3030 = vst.msk [vmem:[#allocation3 + $0x140] sm:$0xff] %vm3025_vm11, %v6580_v41  ;;  %3031 = vst.msk [vmem:[#allocation3 + $0x148] sm:$0xff] %vm3025_vm11, %v6580_v41 }
 0x23d   : > { %2091 = vst.msk [vmem:[#allocation2 + $0x60] sm:$0xff] %vm2078_vm9, %v1995_v38  ;;  %2092 = vst.msk [vmem:[#allocation2 + $0x68] sm:$0xff] %vm2078_vm9, %v1997_v39  ;;  %v2792_v38 = vld [vmem:[%s9251_s7 + $0x98] sm:$0xff] }
 0x23e   : > { %1819 = vrot.lane.b32.xlu1 %v1714_v35, %s6577_s29  ;;  %1817 = vrot.lane.b32.xlu0 %v1713_v49, %s6577_s29  ;;  %v2791_v49 = vld [vmem:[%s9251_s7 + $0x90] sm:$0xff] }
 0x240   : > { %v1565_v43 = vpop.permute.xlu0 %1564  ;;  %v1567_v54 = vpop.permute.xlu1 %1566 }
 0x241   : > { %1659 = vst.msk [vmem:[#allocation2 + $0x70] sm:$0xff] %vm1644_vm7, %v1565_v43  ;;  %1660 = vst.msk [vmem:[#allocation2 + $0x78] sm:$0xff] %vm1644_vm7, %v1567_v54  ;;  %v2793_v54 = vld [vmem:[%s9251_s7 + $0xa0] sm:$0xff] }
 0x242   : > { %2036 = vrot.lane.b32.xlu1 %v1931_v51, %s6578_s30  ;;  %2034 = vrot.lane.b32.xlu0 %v1930_v42, %s6578_s30 }
 0x244   : > { %v1782_v24 = vpop.permute.xlu0 %1781  ;;  %v1784_v47 = vpop.permute.xlu1 %1783  ;;  %v2127_v25 = vld [vmem:[#allocation2 + $0x60] sm:$0xff]  ;;  %v2128_v5 = vld [vmem:[#allocation2 + $0x68] sm:$0xff] }
 0x245   : > { %1876 = vst.msk [vmem:[#allocation2 + $0x70] sm:$0xff] %vm1861_vm8, %v1782_v24  ;;  %1877 = vst.msk [vmem:[#allocation2 + $0x78] sm:$0xff] %vm1861_vm8, %v1784_v47  ;;  %6094 = vmatprep.mubr.msk.f32.mxu0 %vm2163_vm10, %v2127_v25  ;;  %v2795_v47 = vld [vmem:[%s9251_s7 + $0xb0] sm:$0xff]  ;;  %v2796_v25 = vld [vmem:[%s9251_s7 + $0xb8] sm:$0xff] }
 0x246   : > { %1606 = vrot.lane.b32.xlu1 %v1499_v46, %s6576_s24  ;;  %1604 = vrot.lane.b32.xlu0 %v1498_v4, %s6576_s24  ;;  %v2794_v46 = vld [vmem:[%s9251_s7 + $0xa8] sm:$0xff] }
 0x247   : > { %6095 = vmatmul.mubr.msk.f32.gmra.mrb[12].mxu0 %vm2163_vm10, %v2128_v5 }
 0x248   : > { %v1999_v55 = vpop.permute.xlu0 %1998  ;;  %v2001_v53 = vpop.permute.xlu1 %2000 }
 0x249   : > { %2093 = vst.msk [vmem:[#allocation2 + $0x70] sm:$0xff] %vm2078_vm9, %v1999_v55  ;;  %2094 = vst.msk [vmem:[#allocation2 + $0x78] sm:$0xff] %vm2078_vm9, %v2001_v53  ;;  %v2798_v55 = vld [vmem:[%s9251_s7 + $0xc8] sm:$0xff] }
 0x24a   : > { %1823 = vrot.lane.b32.xlu1 %v1716_v50, %s6577_s29  ;;  %1821 = vrot.lane.b32.xlu0 %v1715_v52, %s6577_s29  ;;  %v2797_v52 = vld [vmem:[%s9251_s7 + $0xc0] sm:$0xff]  ;;  %s6584_s29 = smov 64  }
 0x24c   : > { %v1569_v62 = vpop.permute.xlu0 %1568  ;;  %v1571_v63 = vpop.permute.xlu1 %1570 }
 0x24d   : > { %1661 = vst.msk [vmem:[#allocation2 + $0x80] sm:$0xff] %vm1644_vm7, %v1569_v62  ;;  %1662 = vst.msk [vmem:[#allocation2 + $0x88] sm:$0xff] %vm1644_vm7, %v1571_v63  ;;  %v2799_v63 = vld [vmem:[%s9251_s7 + $0xd0] sm:$0xff] }
 0x24e   : > { %2040 = vrot.lane.b32.xlu1 %v1933_v58, %s6578_s30  ;;  %2038 = vrot.lane.b32.xlu0 %v1932_v59, %s6578_s30 }
 0x250   : > { %v1786_v29 = vpop.permute.xlu0 %1785  ;;  %v1788_v9 = vpop.permute.xlu1 %1787  ;;  %v2129_v2 = vld [vmem:[#allocation2 + $0x70] sm:$0xff]  ;;  %v2130_v3 = vld [vmem:[#allocation2 + $0x78] sm:$0xff] }
 0x251   : > { %1878 = vst.msk [vmem:[#allocation2 + $0x80] sm:$0xff] %vm1861_vm8, %v1786_v29  ;;  %1879 = vst.msk [vmem:[#allocation2 + $0x88] sm:$0xff] %vm1861_vm8, %v1788_v9  ;;  %6097 = vmatprep.mubr.msk.f32.mxu0 %vm2163_vm10, %v2129_v2  ;;  %v2801_v9 = vld [vmem:[%s9251_s7 + $0xe0] sm:$0xff]  ;;  %v2802_v2 = vld [vmem:[%s9251_s7 + $0xe8] sm:$0xff] }
 0x252   : > { %2816 = vperm.xlu1 %6272, %v2774_v28   ;;  %2811 = vperm.xlu0 %6271, %v2773_v8   ;;  %v2800_v28 = vld [vmem:[%s9251_s7 + $0xd8] sm:$0xff] }
 0x253   : > { %6098 = vmatmul.mubr.msk.f32.gmra.mrb[14].mxu0 %vm2163_vm10, %v2130_v3 }
 0x254   : > { %v2003_v7 = vpop.permute.xlu0 %2002  ;;  %v2005_v57 = vpop.permute.xlu1 %2004 }
 0x255   : > { %2095 = vst.msk [vmem:[#allocation2 + $0x80] sm:$0xff] %vm2078_vm9, %v2003_v7  ;;  %2096 = vst.msk [vmem:[#allocation2 + $0x88] sm:$0xff] %vm2078_vm9, %v2005_v57  ;;  %v2804_v7 = vld [vmem:[%s9251_s7 + $0xf8] sm:$0xff] }
 0x256   : > { %2821 = vperm.xlu1 %6272, %v2775_v56   ;;  %2826 = vperm.xlu0 %6271, %v2776_v6   ;;  %v2803_v6 = vld [vmem:[%s9251_s7 + $0xf0] sm:$0xff] }
 0x258   : > { %v1573_v32 = vpop.permute.xlu0 %1572  ;;  %v1575_v12 = vpop.permute.xlu1 %1574 }
 0x259   : > { %1663 = vst.msk [vmem:[#allocation2 + $0x90] sm:$0xff] %vm1644_vm7, %v1573_v32  ;;  %1664 = vst.msk [vmem:[#allocation2 + $0x98] sm:$0xff] %vm1644_vm7, %v1575_v12  ;;  %v2805_v12 = vld [vmem:[%s9251_s7 + $0x100] sm:$0xff] }
 0x25a   : > { %2831 = vperm.xlu1 %6272, %v2777_v10   ;;  %2836 = vperm.xlu0 %6271, %v2778_v11  }
 0x25c   : > { %v1790_v13 = vpop.permute.xlu0 %1789  ;;  %v1792_v44 = vpop.permute.xlu1 %1791  ;;  %v2131_v45 = vld [vmem:[#allocation2 + $0x80] sm:$0xff]  ;;  %v2132_v15 = vld [vmem:[#allocation2 + $0x88] sm:$0xff] }
 0x25d   : > { %1880 = vst.msk [vmem:[#allocation2 + $0x90] sm:$0xff] %vm1861_vm8, %v1790_v13  ;;  %1881 = vst.msk [vmem:[#allocation2 + $0x98] sm:$0xff] %vm1861_vm8, %v1792_v44  ;;  %6100 = vmatprep.mubr.msk.f32.mxu0 %vm2163_vm10, %v2131_v45  ;;  %v2807_v44 = vld [vmem:[%s9251_s7 + $0x110] sm:$0xff]  ;;  %v2808_v45 = vld [vmem:[%s9251_s7 + $0x118] sm:$0xff] }
 0x25e   : > { %2841 = vperm.xlu1 %6272, %v2779_v33   ;;  %2846 = vperm.xlu0 %6271, %v2780_v14   ;;  %v2806_v33 = vld [vmem:[%s9251_s7 + $0x108] sm:$0xff] }
 0x25f   : > { %6101 = vmatmul.mubr.msk.f32.gmra.mrb[16].mxu0 %vm2163_vm10, %v2132_v15 }
 0x260   : > { %v2007_v19 = vpop.permute.xlu0 %2006  ;;  %v2009_v61 = vpop.permute.xlu1 %2008 }
 0x261   : > { %2097 = vst.msk [vmem:[#allocation2 + $0x90] sm:$0xff] %vm2078_vm9, %v2007_v19  ;;  %2098 = vst.msk [vmem:[#allocation2 + $0x98] sm:$0xff] %vm2078_vm9, %v2009_v61 }
 0x262   : > { %2851 = vperm.xlu1 %6272, %v2781_v18   ;;  %2856 = vperm.xlu0 %6271, %v2782_v60   ;;  %v3140_v60 = vld [vmem:[#allocation3 + $0x6] sm:$0xff] }
 0x264   : > { %v1577_v37 = vpop.permute.xlu0 %1576  ;;  %v1579_v22 = vpop.permute.xlu1 %1578 }
 0x265   : > { %1665 = vst.msk [vmem:[#allocation2 + $0xa0] sm:$0xff] %vm1644_vm7, %v1577_v37  ;;  %1666 = vst.msk [vmem:[#allocation2 + $0xa8] sm:$0xff] %vm1644_vm7, %v1579_v22  ;;  %v3141_v37 = vld [vmem:[#allocation3 + $0xe] sm:$0xff] }
 0x266   : > { %2861 = vperm.xlu1 %6272, %v2783_v36   ;;  %2866 = vperm.xlu0 %6271, %v2784_v16   ;;  %v3357_v22 = vld [vmem:[#allocation3 + $0x7] sm:$0xff] }
 0x268   : > { %v1794_v26 = vpop.permute.xlu0 %1793  ;;  %v1796_v27 = vpop.permute.xlu1 %1795  ;;  %v2133_v30 = vld [vmem:[#allocation2 + $0x90] sm:$0xff]  ;;  %v2134_v31 = vld [vmem:[#allocation2 + $0x98] sm:$0xff] }
 0x269   : > { %1882 = vst.msk [vmem:[#allocation2 + $0xa0] sm:$0xff] %vm1861_vm8, %v1794_v26  ;;  %1883 = vst.msk [vmem:[#allocation2 + $0xa8] sm:$0xff] %vm1861_vm8, %v1796_v27  ;;  %6103 = vmatprep.mubr.msk.f32.mxu0 %vm2163_vm10, %v2133_v30  ;;  %v3358_v26 = vld [vmem:[#allocation3 + $0xf] sm:$0xff] }
 0x26a   : > { %2871 = vperm.xlu1 %6272, %v2785_v17   ;;  %2876 = vperm.xlu0 %6271, %v2786_v23  }
 0x26b   : > { %6104 = vmatmul.mubr.msk.f32.gmra.mrb[18].mxu0 %vm2163_vm10, %v2134_v31 }
 0x26c   : > { %v2011_v40 = vpop.permute.xlu0 %2010  ;;  %v2013_v48 = vpop.permute.xlu1 %2012 }
 0x26d   : > { %2099 = vst.msk [vmem:[#allocation2 + $0xa0] sm:$0xff] %vm2078_vm9, %v2011_v40  ;;  %2100 = vst.msk [vmem:[#allocation2 + $0xa8] sm:$0xff] %vm2078_vm9, %v2013_v48 }
 0x26e   : > { %2881 = vperm.xlu1 %6272, %v2787_v34   ;;  %2886 = vperm.xlu0 %6271, %v2788_v0  }
 0x270   : > { %v1581_v1 = vpop.permute.xlu0 %1580  ;;  %v1583_v35 = vpop.permute.xlu1 %1582 }
 0x271   : > { %1667 = vst.msk [vmem:[#allocation2 + $0xb0] sm:$0xff] %vm1644_vm7, %v1581_v1  ;;  %1668 = vst.msk [vmem:[#allocation2 + $0xb8] sm:$0xff] %vm1644_vm7, %v1583_v35 }
 0x272   : > { %2891 = vperm.xlu1 %6272, %v2789_v20   ;;  %2896 = vperm.xlu0 %6271, %v2790_v21  }
 0x274   : > { %v1798_v39 = vpop.permute.xlu0 %1797  ;;  %v1800_v51 = vpop.permute.xlu1 %1799  ;;  %v2135_v42 = vld [vmem:[#allocation2 + $0xa0] sm:$0xff]  ;;  %v2136_v43 = vld [vmem:[#allocation2 + $0xa8] sm:$0xff] }
 0x275   : > { %1884 = vst.msk [vmem:[#allocation2 + $0xb0] sm:$0xff] %vm1861_vm8, %v1798_v39  ;;  %1885 = vst.msk [vmem:[#allocation2 + $0xb8] sm:$0xff] %vm1861_vm8, %v1800_v51  ;;  %6106 = vmatprep.mubr.msk.f32.mxu0 %vm2163_vm10, %v2135_v42 }
 0x276   : > { %2901 = vperm.xlu1 %6272, %v2791_v49   ;;  %2906 = vperm.xlu0 %6271, %v2792_v38  }
 0x277   : > { %6107 = vmatmul.mubr.msk.f32.gmra.mrb[20].mxu0 %vm2163_vm10, %v2136_v43 }
 0x278   : > { %v2015_v4 = vpop.permute.xlu0 %2014  ;;  %v2017_v24 = vpop.permute.xlu1 %2016 }
 0x279   : > { %2101 = vst.msk [vmem:[#allocation2 + $0xb0] sm:$0xff] %vm2078_vm9, %v2015_v4  ;;  %2102 = vst.msk [vmem:[#allocation2 + $0xb8] sm:$0xff] %vm2078_vm9, %v2017_v24 }
 0x27a   : > { %2911 = vperm.xlu1 %6272, %v2793_v54   ;;  %2916 = vperm.xlu0 %6271, %v2794_v46  }
 0x27c   : > { %v1585_v5 = vpop.permute.xlu0 %1584  ;;  %v1587_v50 = vpop.permute.xlu1 %1586 }
 0x27d   : > { %1669 = vst.msk [vmem:[#allocation2 + $0xc0] sm:$0xff] %vm1644_vm7, %v1585_v5  ;;  %1670 = vst.msk [vmem:[#allocation2 + $0xc8] sm:$0xff] %vm1644_vm7, %v1587_v50 }
 0x27e   : > { %2921 = vperm.xlu1 %6272, %v2795_v47   ;;  %2926 = vperm.xlu0 %6271, %v2796_v25  }
 0x280   : > { %v1802_v53 = vpop.permute.xlu0 %1801  ;;  %v1804_v58 = vpop.permute.xlu1 %1803  ;;  %v2137_v59 = vld [vmem:[#allocation2 + $0xb0] sm:$0xff]  ;;  %v2138_v62 = vld [vmem:[#allocation2 + $0xb8] sm:$0xff] }
 0x281   : > { %1886 = vst.msk [vmem:[#allocation2 + $0xc0] sm:$0xff] %vm1861_vm8, %v1802_v53  ;;  %1887 = vst.msk [vmem:[#allocation2 + $0xc8] sm:$0xff] %vm1861_vm8, %v1804_v58  ;;  %6109 = vmatprep.mubr.msk.f32.mxu0 %vm2163_vm10, %v2137_v59 }
 0x282   : > { %2931 = vperm.xlu1 %6272, %v2797_v52   ;;  %2936 = vperm.xlu0 %6271, %v2798_v55   ;;  %v7958_v52 = vld [vmem:[%s9246_s2] ss:$0 sm:$0xff] }
 0x283   : > { %6110 = vmatmul.mubr.msk.f32.gmra.mrb[22].mxu0 %vm2163_vm10, %v2138_v62 }
 0x284   : > { %v2019_v8 = vpop.permute.xlu0 %2018  ;;  %v2021_v29 = vpop.permute.xlu1 %2020 }
 0x285   : > { %2103 = vst.msk [vmem:[#allocation2 + $0xc0] sm:$0xff] %vm2078_vm9, %v2019_v8  ;;  %2104 = vst.msk [vmem:[#allocation2 + $0xc8] sm:$0xff] %vm2078_vm9, %v2021_v29 }
 0x286   : > { %2941 = vperm.xlu1 %6272, %v2799_v63   ;;  %2946 = vperm.xlu0 %6271, %v2800_v28  }
 0x288   : > { %v1589_v3 = vpop.permute.xlu0 %1588  ;;  %v1591_v56 = vpop.permute.xlu1 %1590 }
 0x289   : > { %1671 = vst.msk [vmem:[#allocation2 + $0xd0] sm:$0xff] %vm1644_vm7, %v1589_v3  ;;  %1672 = vst.msk [vmem:[#allocation2 + $0xd8] sm:$0xff] %vm1644_vm7, %v1591_v56 }
 0x28a   : > { %2951 = vperm.xlu1 %6272, %v2801_v9   ;;  %2956 = vperm.xlu0 %6271, %v2802_v2  }
 0x28c   : > { %v1806_v57 = vpop.permute.xlu0 %1805  ;;  %v1808_v10 = vpop.permute.xlu1 %1807  ;;  %v2139_v11 = vld [vmem:[#allocation2 + $0xc0] sm:$0xff]  ;;  %v2140_v32 = vld [vmem:[#allocation2 + $0xc8] sm:$0xff] }
 0x28d   : > { %1888 = vst.msk [vmem:[#allocation2 + $0xd0] sm:$0xff] %vm1861_vm8, %v1806_v57  ;;  %1889 = vst.msk [vmem:[#allocation2 + $0xd8] sm:$0xff] %vm1861_vm8, %v1808_v10  ;;  %6112 = vmatprep.mubr.msk.f32.mxu0 %vm2163_vm10, %v2139_v11 }
 0x28e   : > { %2961 = vperm.xlu1 %6272, %v2803_v6   ;;  %2966 = vperm.xlu0 %6271, %v2804_v7  }
 0x28f   : > { %6113 = vmatmul.mubr.msk.f32.gmra.mrb[24].mxu0 %vm2163_vm10, %v2140_v32 }
 0x290   : > { %v2023_v14 = vpop.permute.xlu0 %2022  ;;  %v2025_v13 = vpop.permute.xlu1 %2024 }
 0x291   : > { %2105 = vst.msk [vmem:[#allocation2 + $0xd0] sm:$0xff] %vm2078_vm9, %v2023_v14  ;;  %2106 = vst.msk [vmem:[#allocation2 + $0xd8] sm:$0xff] %vm2078_vm9, %v2025_v13 }
 0x292   : > { %2971 = vperm.xlu1 %6272, %v2805_v12   ;;  %2976 = vperm.xlu0 %6271, %v2806_v33  }
 0x294   : > { %v1593_v15 = vpop.permute.xlu0 %1592  ;;  %v1595_v18 = vpop.permute.xlu1 %1594 }
 0x295   : > { %1673 = vst.msk [vmem:[#allocation2 + $0xe0] sm:$0xff] %vm1644_vm7, %v1593_v15  ;;  %1674 = vst.msk [vmem:[#allocation2 + $0xe8] sm:$0xff] %vm1644_vm7, %v1595_v18 }
 0x296   : > { %2981 = vperm.xlu1 %6272, %v2807_v44   ;;  %2986 = vperm.xlu0 %6271, %v2808_v45  }
 0x298   : > { %v1810_v19 = vpop.permute.xlu0 %1809  ;;  %v1812_v61 = vpop.permute.xlu1 %1811  ;;  %v2141_v36 = vld [vmem:[#allocation2 + $0xd0] sm:$0xff]  ;;  %v2142_v16 = vld [vmem:[#allocation2 + $0xd8] sm:$0xff] }
 0x299   : > { %1890 = vst.msk [vmem:[#allocation2 + $0xe0] sm:$0xff] %vm1861_vm8, %v1810_v19  ;;  %1891 = vst.msk [vmem:[#allocation2 + $0xe8] sm:$0xff] %vm1861_vm8, %v1812_v61  ;;  %6115 = vmatprep.mubr.msk.f32.mxu0 %vm2163_vm10, %v2141_v36  ;;  %v3068_v36 = vld [vmem:[#allocation3 + $0x5] sm:$0xff] }
 0x29a   : > { %6116 = vmatmul.mubr.msk.f32.gmra.mrb[26].mxu0 %vm2163_vm10, %v2142_v16  ;;  %3212 = vrot.lane.b32.xlu1 %v3140_v60, %s6572_s12  ;;  %3104 = vst.msk [vmem:[#allocation4] sm:$0xff] %vm3025_vm11, %v3068_v36 }
 0x29b   : > { %3214 = vrot.lane.b32.xlu0 %v3141_v37, %s6572_s12  ;;  %v3069_v37 = vld [vmem:[#allocation3 + $0xd] sm:$0xff] }
 0x29c   : > { %v2027_v17 = vpop.permute.xlu0 %2026  ;;  %v2029_v23 = vpop.permute.xlu1 %2028  ;;  %3105 = vst.msk [vmem:[#allocation4 + $0x8] sm:$0xff] %vm3025_vm11, %v3069_v37 }
 0x29d   : > { %2107 = vst.msk [vmem:[#allocation2 + $0xe0] sm:$0xff] %vm2078_vm9, %v2027_v17  ;;  %2108 = vst.msk [vmem:[#allocation2 + $0xe8] sm:$0xff] %vm2078_vm9, %v2029_v23 }
 0x29e   : > { %3429 = vrot.lane.b32.xlu1 %v3357_v22, %s6574_s14 }
 0x29f   : > { %3431 = vrot.lane.b32.xlu0 %v3358_v26, %s6574_s14 }
 0x2a0   : > { %v1597_v27 = vpop.permute.xlu0 %1596  ;;  %v1599_v30 = vpop.permute.xlu1 %1598 }
 0x2a1   : > { %1675 = vst.msk [vmem:[#allocation2 + $0xf0] sm:$0xff] %vm1644_vm7, %v1597_v27  ;;  %1676 = vst.msk [vmem:[#allocation2 + $0xf8] sm:$0xff] %vm1644_vm7, %v1599_v30 }
 0x2a4   : > { %v1814_v31 = vpop.permute.xlu0 %1813  ;;  %v1816_v34 = vpop.permute.xlu1 %1815  ;;  %v2143_v0 = vld [vmem:[#allocation2 + $0xe0] sm:$0xff]  ;;  %v2144_v40 = vld [vmem:[#allocation2 + $0xe8] sm:$0xff] }
 0x2a5   : > { %1892 = vst.msk [vmem:[#allocation2 + $0xf0] sm:$0xff] %vm1861_vm8, %v1814_v31  ;;  %1893 = vst.msk [vmem:[#allocation2 + $0xf8] sm:$0xff] %vm1861_vm8, %v1816_v34  ;;  %6118 = vmatprep.mubr.msk.f32.mxu0 %vm2163_vm10, %v2143_v0 }
 0x2a6   : > { %6119 = vmatmul.mubr.msk.f32.gmra.mrb[28].mxu0 %vm2163_vm10, %v2144_v40 }
 0x2a8   : > { %v2031_v48 = vpop.permute.xlu0 %2030  ;;  %v2033_v41 = vpop.permute.xlu1 %2032 }
 0x2a9   : > { %2109 = vst.msk [vmem:[#allocation2 + $0xf0] sm:$0xff] %vm2078_vm9, %v2031_v48  ;;  %2110 = vst.msk [vmem:[#allocation2 + $0xf8] sm:$0xff] %vm2078_vm9, %v2033_v41 }
 0x2ac   : > { %v1601_v20 = vpop.permute.xlu0 %1600  ;;  %v1603_v21 = vpop.permute.xlu1 %1602 }
 0x2ad   : > { %1677 = vst.msk [vmem:[#allocation2 + $0x100] sm:$0xff] %vm1644_vm7, %v1601_v20  ;;  %1678 = vst.msk [vmem:[#allocation2 + $0x108] sm:$0xff] %vm1644_vm7, %v1603_v21 }
 0x2b0   : > { %v1818_v1 = vpop.permute.xlu0 %1817  ;;  %v1820_v35 = vpop.permute.xlu1 %1819  ;;  %v2145_v49 = vld [vmem:[#allocation2 + $0xf0] sm:$0xff]  ;;  %v2146_v38 = vld [vmem:[#allocation2 + $0xf8] sm:$0xff] }
 0x2b1   : > { %1894 = vst.msk [vmem:[#allocation2 + $0x100] sm:$0xff] %vm1861_vm8, %v1818_v1  ;;  %1895 = vst.msk [vmem:[#allocation2 + $0x108] sm:$0xff] %vm1861_vm8, %v1820_v35  ;;  %6121 = vmatprep.mubr.msk.f32.mxu0 %vm2163_vm10, %v2145_v49 }
 0x2b2   : > { %6122 = vmatmul.mubr.msk.f32.gmra.mrb[30].mxu0 %vm2163_vm10, %v2146_v38 }
 0x2b4   : > { %v2035_v39 = vpop.permute.xlu0 %2034  ;;  %v2037_v51 = vpop.permute.xlu1 %2036 }
 0x2b5   : > { %2111 = vst.msk [vmem:[#allocation2 + $0x100] sm:$0xff] %vm2078_vm9, %v2035_v39  ;;  %2112 = vst.msk [vmem:[#allocation2 + $0x108] sm:$0xff] %vm2078_vm9, %v2037_v51 }
 0x2b8   : > { %v1605_v42 = vpop.permute.xlu0 %1604  ;;  %v1607_v43 = vpop.permute.xlu1 %1606 }
 0x2b9   : > { %1679 = vst.msk [vmem:[#allocation2 + $0x110] sm:$0xff] %vm1644_vm7, %v1605_v42  ;;  %1680 = vst.msk [vmem:[#allocation2 + $0x118] sm:$0xff] %vm1644_vm7, %v1607_v43 }
 0x2bc   : > { %v1822_v54 = vpop.permute.xlu0 %1821  ;;  %v1824_v46 = vpop.permute.xlu1 %1823  ;;  %v2147_v4 = vld [vmem:[#allocation2 + $0x100] sm:$0xff]  ;;  %v2148_v24 = vld [vmem:[#allocation2 + $0x108] sm:$0xff] }
 0x2bd   : > { %1896 = vst.msk [vmem:[#allocation2 + $0x110] sm:$0xff] %vm1861_vm8, %v1822_v54  ;;  %1897 = vst.msk [vmem:[#allocation2 + $0x118] sm:$0xff] %vm1861_vm8, %v1824_v46  ;;  %6124 = vmatprep.mubr.msk.f32.mxu0 %vm2163_vm10, %v2147_v4 }
 0x2be   : > { %6125 = vmatmul.mubr.msk.f32.gmra.mrb[32].mxu0 %vm2163_vm10, %v2148_v24 }
 0x2c0   : > { %v2039_v47 = vpop.permute.xlu0 %2038  ;;  %v2041_v25 = vpop.permute.xlu1 %2040 }
 0x2c1   : > { %2113 = vst.msk [vmem:[#allocation2 + $0x110] sm:$0xff] %vm2078_vm9, %v2039_v47  ;;  %2114 = vst.msk [vmem:[#allocation2 + $0x118] sm:$0xff] %vm2078_vm9, %v2041_v25 }
 0x2c8   : > { %v2149_v5 = vld [vmem:[#allocation2 + $0x110] sm:$0xff]  ;;  %v2150_v50 = vld [vmem:[#allocation2 + $0x118] sm:$0xff] }
 0x2c9   : > { %6127 = vmatprep.mubr.msk.f32.mxu0 %vm2163_vm10, %v2149_v5 }
 0x2ca   : > { %6128 = vmatmul.mubr.msk.f32.gmra.mrb[34].mxu0 %vm2163_vm10, %v2150_v50 }
 0x2d1   : > { %v2817_v55 = vpop.permute.xlu1 %2816  ;;  %v2812_v53 = vpop.permute.xlu0 %2811 }
 0x2d2   : > { %v6078_v58 = vpop.f32.mrb[0].mxu0 }
 0x2d3   : > { %v2348_v59 = vadd.f32 %v6078_v58, %v7958_v52  ;;  %v2342_v62 = vpop.f32.mrb[1].mxu0 }
 0x2d4   : > { %v2343_v63 = vadd.f32 %v7958_v52, %v2342_v62 }
 0x2d5   : > { %v5850_v28 = vmul.f32 -1.442695, %v2348_v59  ;;  %v7962_v8 = vpop.permute.xlu1 %2821  ;;  %v7964_v29 = vpop.permute.xlu0 %2826 }
 0x2d6   : > { %v5849_v9 = vmul.f32 -1.442695, %v2343_v63 }
 0x2d7   : > { %6273 = vpow2.f32 %v5850_v28 }
 0x2d8   : > { %6275 = vpow2.f32 %v5849_v9 }
 0x2d9   : > { %v7966_v2 = vpop.permute.xlu1 %2831  ;;  %v7968_v3 = vpop.permute.xlu0 %2836 }
 0x2dd   : > { %v7970_v56 = vpop.permute.xlu1 %2841  ;;  %v7972_v6 = vpop.permute.xlu0 %2846 }
 0x2de   : > { %v6081_v7 = vpop.f32.mrb[2].mxu0 }
 0x2df   : > { %v7975_v57 = vadd.f32 %v6081_v7, %v7958_v52  ;;  %v2352_v10 = vpop.f32.mrb[3].mxu0 }
 0x2e0   : > { %v7978_v11 = vadd.f32 %v7958_v52, %v2352_v10 }
 0x2e1   : > { %v6274_v32 = vpop.eup %6273  ;;  %v5852_v12 = vmul.f32 -1.442695, %v7975_v57  ;;  %v7981_v33 = vpop.permute.xlu1 %2851 }
 0x2e2   : > { %v7983_v14 = vpop.permute.xlu0 %2856  ;;  %v6276_v13 = vpop.eup %6275  ;;  %v2630_v44 = vadd.f32 1.0, %v6274_v32  ;;  %v5851_v45 = vmul.f32 -1.442695, %v7978_v11 }
 0x2e3   : > { %v2629_v15 = vadd.f32 1.0, %v6276_v13  ;;  %6277 = vpow2.f32 %v5852_v12 }
 0x2e4   : > { %6279 = vrcp.f32 %v2630_v44 }
 0x2e5   : > { %6281 = vrcp.f32 %v2629_v15  ;;  %v7986_v18 = vpop.permute.xlu1 %2861 }
 0x2e6   : > { %v7988_v60 = vpop.permute.xlu0 %2866  ;;  %6283 = vpow2.f32 %v5851_v45 }
 0x2e9   : > { %v7990_v19 = vpop.permute.xlu1 %2871 }
 0x2ea   : > { %v7992_v61 = vpop.permute.xlu0 %2876  ;;  %v6084_v16 = vpop.f32.mrb[4].mxu0 }
 0x2eb   : > { %v7996_v22 = vadd.f32 %v6084_v16, %v7958_v52  ;;  %v2362_v17 = vpop.f32.mrb[5].mxu0 }
 0x2ec   : > { %v8000_v23 = vadd.f32 %v7958_v52, %v2362_v17 }
 0x2ed   : > { %v6278_v26 = vpop.eup %6277  ;;  %v5854_v27 = vmul.f32 -1.442695, %v7996_v22  ;;  %v8003_v30 = vpop.permute.xlu1 %2881 }
 0x2ee   : > { %v8005_v31 = vpop.permute.xlu0 %2886  ;;  %v6280_v34 = vpop.eup %6279  ;;  %v2632_v0 = vadd.f32 1.0, %v6278_v26  ;;  %v5853_v40 = vmul.f32 -1.442695, %v8000_v23 }
 0x2ef   : > { %v6282_v48 = vpop.eup %6281  ;;  %v2738_v41 = vmul.f32 %v6280_v34, %v2348_v59  ;;  %6285 = vpow2.f32 %v5854_v27 }
 0x2f0   : > { %v6284_v20 = vpop.eup %6283  ;;  %v2737_v21 = vmul.f32 %v6282_v48, %v2343_v63  ;;  %6287 = vrcp.f32 %v2632_v0 }
 0x2f1   : > { %v2990_v1 = vmul.f32 %v2817_v55, %v2738_v41  ;;  %v2631_v35 = vadd.f32 1.0, %v6284_v20  ;;  %6289 = vpow2.f32 %v5853_v40  ;;  %v8008_v49 = vpop.permute.xlu1 %2891 }
 0x2f2   : > { %v8010_v38 = vpop.permute.xlu0 %2896  ;;  %v2989_v39 = vmul.f32 %v2812_v53, %v2737_v21 }
 0x2f3   : > { %3033 = vst.msk [vmem:[#allocation3 + $0x20] sm:$0xff] %vm3025_vm11, %v2990_v1  ;;  %6291 = vrcp.f32 %v2631_v35 }
 0x2f4   : > { %3032 = vst.msk [vmem:[#allocation3 + $0x18] sm:$0xff] %vm3025_vm11, %v2989_v39 }
 0x2f5   : > { %v8014_v51 = vpop.permute.xlu1 %2901 }
 0x2f6   : > { %v8016_v42 = vpop.permute.xlu0 %2906  ;;  %v6087_v43 = vpop.f32.mrb[6].mxu0 }
 0x2f7   : > { %v8019_v54 = vadd.f32 %v6087_v43, %v7958_v52  ;;  %v2372_v46 = vpop.f32.mrb[7].mxu0 }
 0x2f8   : > { %v8022_v4 = vadd.f32 %v7958_v52, %v2372_v46 }
 0x2f9   : > { %v6286_v24 = vpop.eup %6285  ;;  %v5856_v47 = vmul.f32 -1.442695, %v8019_v54  ;;  %v8025_v25 = vpop.permute.xlu1 %2911 }
 0x2fa   : > { %v8027_v5 = vpop.permute.xlu0 %2916  ;;  %v6288_v50 = vpop.eup %6287  ;;  %v2634_v55 = vadd.f32 1.0, %v6286_v24  ;;  %v5855_v53 = vmul.f32 -1.442695, %v8022_v4  ;;  %v3792_v17 = vld [vmem:[#allocation3 + $0x20] sm:$0xff] }
 0x2fb   : > { %v6290_v58 = vpop.eup %6289  ;;  %v2740_v59 = vmul.f32 %v6288_v50, %v7975_v57  ;;  %6293 = vpow2.f32 %v5856_v47  ;;  %v8031_v62 = vld [vmem:[#allocation3 + $0x1f] sm:$0xff]  ;;  %v3574_v63 = vld [vmem:[#allocation3 + $0x17] sm:$0xff] }
 0x2fc   : > { %6295 = vrcp.f32 %v2634_v55  ;;  %v2633_v28 = vadd.f32 1.0, %v6290_v58  ;;  %3648 = vrot.lane.b32.xlu0 %v8031_v62, %s6576_s24  ;;  %3646 = vrot.lane.b32.xlu1 %v3574_v63, %s6576_s24  ;;  %v3070_v57 = vld [vmem:[#allocation3 + $0x15] sm:$0xff]  ;;  %v3071_v12 = vld [vmem:[#allocation3 + $0x1d] sm:$0xff] }
 0x2fd   : > { %v6292_v9 = vpop.eup %6291  ;;  %v2992_v7 = vmul.f32 %v7964_v29, %v2740_v59  ;;  %6297 = vpow2.f32 %v5855_v53  ;;  %v8037_v10 = vpop.permute.xlu1 %2921  ;;  %3106 = vst.msk [vmem:[#allocation4 + $0x10] sm:$0xff] %vm3025_vm11, %v3070_v57  ;;  %3107 = vst.msk [vmem:[#allocation4 + $0x18] sm:$0xff] %vm3025_vm11, %v3071_v12  ;;  %v3791_v44 = vld [vmem:[#allocation3 + $0x18] sm:$0xff] }
 0x2fe   : > { %v8039_v32 = vpop.permute.xlu0 %2926  ;;  %v2739_v13 = vmul.f32 %v6292_v9, %v7978_v11  ;;  %6299 = vrcp.f32 %v2633_v28  ;;  %v3142_v45 = vld [vmem:[#allocation3 + $0x16] sm:$0xff]  ;;  %v3143_v35 = vld [vmem:[#allocation3 + $0x1e] sm:$0xff]  ;;  %v4913_v28 = vld [vmem:[%s9247_s3 + $0x8] sm:$0xff] }
 0x2ff   : > { %3035 = vst.msk [vmem:[#allocation3 + $0x30] sm:$0xff] %vm3025_vm11, %v2992_v7  ;;  %v4008_v26 = vld [vmem:[#allocation3 + $0x19] sm:$0xff] }
 0x300   : > { %v2991_v29 = vmul.f32 %v7962_v8, %v2739_v13  ;;  %3863 = vrot.lane.b32.xlu1 %v3791_v44, %s6578_s30  ;;  %3216 = vrot.lane.b32.xlu0 %v3142_v45, %s6572_s12 }
 0x301   : > { %v8048_v15 = vpop.permute.xlu1 %2931 }
 0x302   : > { %v8050_v36 = vpop.permute.xlu0 %2936  ;;  %3034 = vst.msk [vmem:[#allocation3 + $0x28] sm:$0xff] %vm3025_vm11, %v2991_v29  ;;  %v6090_v11 = vpop.f32.mrb[8].mxu0 }
 0x303   : > { %v8054_v16 = vadd.f32 %v6090_v11, %v7958_v52  ;;  %v2382_v37 = vpop.f32.mrb[9].mxu0 }
 0x304   : > { %v8057_v27 = vadd.f32 %v7958_v52, %v2382_v37  ;;  %3865 = vrot.lane.b32.xlu1 %v3792_v17, %s6578_s30  ;;  %4080 = vrot.lane.b32.xlu0 %v4008_v26, %s6581_s21 }
 0x305   : > { %v6294_v8 = vpop.eup %6293  ;;  %v5858_v34 = vmul.f32 -1.442695, %v8054_v16  ;;  %v8062_v0 = vpop.permute.xlu1 %2941 }
 0x306   : > { %v8064_v40 = vpop.permute.xlu0 %2946  ;;  %v6296_v48 = vpop.eup %6295  ;;  %v2636_v41 = vadd.f32 1.0, %v6294_v8  ;;  %v5857_v20 = vmul.f32 -1.442695, %v8057_v27 }
 0x307   : > { %v6298_v21 = vpop.eup %6297  ;;  %v2742_v1 = vmul.f32 %v6296_v48, %v7996_v22  ;;  %6301 = vpow2.f32 %v5858_v34 }
 0x308   : > { %v6300_v39 = vpop.eup %6299  ;;  %6303 = vrcp.f32 %v2636_v41  ;;  %v2635_v43 = vadd.f32 1.0, %v6298_v21  ;;  %3218 = vrot.lane.b32.xlu1 %v3143_v35, %s6572_s12  ;;  %3433 = vrot.lane.b32.xlu0 %v3574_v63, %s6574_s14  ;;  %v4912_v63 = vld [vmem:[%s9247_s3] sm:$0xff]  ;;  %v4915_v41 = vld [vmem:[%s9247_s3 + $0x18] sm:$0xff] }
 0x309   : > { %v2994_v46 = vmul.f32 %v7968_v3, %v2742_v1  ;;  %v2741_v24 = vmul.f32 %v6300_v39, %v8000_v23  ;;  %6305 = vpow2.f32 %v5857_v20  ;;  %v8072_v47 = vpop.permute.xlu1 %2951  ;;  %v4009_v55 = vld [vmem:[#allocation3 + $0x21] sm:$0xff]  ;;  %v8078_v53 = vld [vmem:[#allocation3 + $0x29] sm:$0xff]  ;;  %v6226_v12 = vpack.c.bf16 %v4913_v28, %v4912_v63 }
 0x30a   : > { %v8074_v50 = vpop.permute.xlu0 %2956  ;;  %6307 = vrcp.f32 %v2635_v43  ;;  %v3072_v3 = vld [vmem:[#allocation3 + $0x25] sm:$0xff]  ;;  %v3073_v23 = vld [vmem:[#allocation3 + $0x2d] sm:$0xff] }
 0x30b   : > { %3037 = vst.msk [vmem:[#allocation3 + $0x40] sm:$0xff] %vm3025_vm11, %v2994_v46  ;;  %v2993_v22 = vmul.f32 %v7966_v2, %v2741_v24  ;;  %3108 = vst.msk [vmem:[#allocation4 + $0x20] sm:$0xff] %vm3025_vm11, %v3072_v3  ;;  %v8099_v57 = vld [vmem:[#allocation3 + $0x27] sm:$0xff]  ;;  %6227 = vmatprep.subr.bf16.mxu1 %v6226_v12 }
 0x30c   : > { %4082 = vrot.lane.b32.xlu1 %v4009_v55, %s6581_s21  ;;  %4297 = vrot.lane.b32.xlu0 %v8078_v53, %s6582_s22  ;;  %3109 = vst.msk [vmem:[#allocation4 + $0x28] sm:$0xff] %vm3025_vm11, %v3073_v23  ;;  %v4442_v48 = vld [vmem:[#allocation3 + $0x2a] sm:$0xff] }
 0x30d   : > { %3036 = vst.msk [vmem:[#allocation3 + $0x38] sm:$0xff] %vm3025_vm11, %v2993_v22  ;;  %v8084_v58 = vpop.permute.xlu1 %2961  ;;  %6229 = vmatpush3.bf16.msra.mxu1 %v6226_v12  ;;  %v8134_v22 = vld [vmem:[#allocation3 + $0x2f] sm:$0xff] }
 0x30e   : > { %v8086_v59 = vpop.permute.xlu0 %2966  ;;  %v6093_v2 = vpop.f32.mrb[10].mxu0  ;;  %v3793_v55 = vld [vmem:[#allocation3 + $0x28] sm:$0xff] }
 0x30f   : > { %v8097_v9 = vadd.f32 %v6093_v2, %v7958_v52  ;;  %v2392_v7 = vpop.f32.mrb[11].mxu0 }
 0x310   : > { %v8102_v13 = vadd.f32 %v7958_v52, %v2392_v7  ;;  %3435 = vrot.lane.b32.xlu1 %v8031_v62, %s6574_s14  ;;  %3650 = vrot.lane.b32.xlu0 %v8099_v57, %s6576_s24  ;;  %v4914_v62 = vld [vmem:[%s9247_s3 + $0x10] sm:$0xff] }
 0x311   : > { %v6302_v44 = vpop.eup %6301  ;;  %v5860_v45 = vmul.f32 -1.442695, %v8097_v9  ;;  %v8109_v29 = vpop.permute.xlu1 %2971  ;;  %v6230_v35 = vpack.c.bf16 %v4915_v41, %v4914_v62 }
 0x312   : > { %v8111_v11 = vpop.permute.xlu0 %2976  ;;  %v6304_v37 = vpop.eup %6303  ;;  %v2638_v17 = vadd.f32 1.0, %v6302_v44  ;;  %v5859_v26 = vmul.f32 -1.442695, %v8102_v13  ;;  %v4659_v44 = vld [vmem:[#allocation3 + $0x2b] sm:$0xff] }
 0x313   : > { %v6306_v8 = vpop.eup %6305  ;;  %v2744_v34 = vmul.f32 %v6304_v37, %v8019_v54  ;;  %6309 = vpow2.f32 %v5860_v45  ;;  %6231 = vmatprep.subr.bf16.mxu1 %v6230_v35  ;;  %v4918_v45 = vld [vmem:[%s9247_s3 + $0x30] sm:$0xff]  ;;  %v4919_v37 = vld [vmem:[%s9247_s3 + $0x38] sm:$0xff] }
 0x314   : > { %v6308_v20 = vpop.eup %6307  ;;  %6311 = vrcp.f32 %v2638_v17  ;;  %v2637_v21 = vadd.f32 1.0, %v6306_v8  ;;  %v8121_v1 = vld [vmem:[#allocation3 + $0x31] sm:$0xff]  ;;  %4514 = vrot.lane.b32.xlu0 %v4442_v48, %s6583_s10  ;;  %6233 = vmatpush3.bf16.msra.mxu1 %v6230_v35  ;;  %v3075_v23 = vld [vmem:[#allocation3 + $0x3d] sm:$0xff]  ;;  %v6238_v62 = vpack.c.bf16 %v4919_v37, %v4918_v45 }
 0x315   : > { %v2996_v39 = vmul.f32 %v7972_v6, %v2744_v34  ;;  %v2743_v43 = vmul.f32 %v6308_v20, %v8022_v4  ;;  %6313 = vpow2.f32 %v5859_v26  ;;  %4299 = vrot.lane.b32.xlu1 %v8121_v1, %s6582_s22  ;;  %v8128_v54 = vpop.permute.xlu1 %2981  ;;  %v4916_v6 = vld [vmem:[%s9247_s3 + $0x20] sm:$0xff]  ;;  %v4917_v4 = vld [vmem:[%s9247_s3 + $0x28] sm:$0xff]  ;;  %v3074_v3 = vld [vmem:[#allocation3 + $0x35] sm:$0xff]  ;;  %3111 = vst.msk [vmem:[#allocation4 + $0x38] sm:$0xff] %vm3025_vm11, %v3075_v23 }
 0x316   : > { %v8130_v46 = vpop.permute.xlu0 %2986  ;;  %6315 = vrcp.f32 %v2637_v21  ;;  %v6234_v63 = vpack.c.bf16 %v4917_v4, %v4916_v6  ;;  %3110 = vst.msk [vmem:[#allocation4 + $0x30] sm:$0xff] %vm3025_vm11, %v3074_v3  ;;  %v4443_v26 = vld [vmem:[#allocation3 + $0x32] sm:$0xff]  ;;  %v3144_v4 = vld [vmem:[#allocation3 + $0x26] sm:$0xff] }
 0x317   : > { %3039 = vst.msk [vmem:[#allocation3 + $0x50] sm:$0xff] %vm3025_vm11, %v2996_v39  ;;  %v2995_v24 = vmul.f32 %v7970_v56, %v2743_v43 }
 0x318   : > { %3867 = vrot.lane.b32.xlu0 %v3793_v55, %s6578_s30  ;;  %6235 = vmatprep.subr.bf16.mxu1 %v6234_v63 }
 0x319   : > { %3038 = vst.msk [vmem:[#allocation3 + $0x48] sm:$0xff] %vm3025_vm11, %v2995_v24  ;;  %3652 = vrot.lane.b32.xlu1 %v8134_v22, %s6576_s24  ;;  %v3213_v56 = vpop.permute.xlu1 %3212  ;;  %6237 = vmatpush3.bf16.msra.mxu1 %v6234_v63  ;;  %v3794_v24 = vld [vmem:[#allocation3 + $0x30] sm:$0xff] }
 0x31a   : > { %v3215_v2 = vpop.permute.xlu0 %3214  ;;  %v6096_v28 = vpop.f32.mrb[12].mxu0  ;;  %3321 = vst.msk [vmem:[#allocation4] sm:$0xff] %vm3320_vm12, %v3213_v56  ;;  %6239 = vmatprep.subr.bf16.mxu1 %v6238_v62  ;;  %v4660_v56 = vld [vmem:[#allocation3 + $0x33] sm:$0xff] }
 0x31b   : > { %3322 = vst.msk [vmem:[#allocation4 + $0x8] sm:$0xff] %vm3320_vm12, %v3215_v2  ;;  %v8151_v7 = vadd.f32 %v6096_v28, %v7958_v52  ;;  %v2402_v12 = vpop.f32.mrb[13].mxu0  ;;  %v4920_v2 = vld [vmem:[%s9247_s3 + $0x40] sm:$0xff] }
 0x31c   : > { %v8160_v17 = vadd.f32 %v7958_v52, %v2402_v12  ;;  %4731 = vrot.lane.b32.xlu0 %v4659_v44, %s6584_s29  ;;  %v3145_v44 = vld [vmem:[#allocation3 + $0x2e] sm:$0xff] }
 0x31d   : > { %v6310_v8 = vpop.eup %6309  ;;  %v5862_v34 = vmul.f32 -1.442695, %v8151_v7  ;;  %4516 = vrot.lane.b32.xlu1 %v4443_v26, %s6583_s10  ;;  %v3430_v48 = vpop.permute.xlu1 %3429  ;;  %6241 = vmatpush3.bf16.msra.mxu1 %v6238_v62 }
 0x31e   : > { %v3432_v41 = vpop.permute.xlu0 %3431  ;;  %v6312_v20 = vpop.eup %6311  ;;  %v2640_v21 = vadd.f32 1.0, %v6310_v8  ;;  %v5861_v35 = vmul.f32 -1.442695, %v8160_v17  ;;  %3538 = vst.msk [vmem:[#allocation4] sm:$0xff] %vm3537_vm13, %v3430_v48  ;;  %6146 = vmatprep.subr.mxu1 %v4920_v2  ;;  %v8196_v48 = vld [vmem:[#allocation3 + $0x39] sm:$0xff] }
 0x31f   : > { %3539 = vst.msk [vmem:[#allocation4 + $0x8] sm:$0xff] %vm3537_vm13, %v3432_v41  ;;  %v6314_v39 = vpop.eup %6313  ;;  %v2746_v43 = vmul.f32 %v6312_v20, %v8054_v16  ;;  %6317 = vpow2.f32 %v5862_v34 }
 0x320   : > { %v6316_v55 = vpop.eup %6315  ;;  %6319 = vrcp.f32 %v2640_v21  ;;  %v2639_v6 = vadd.f32 1.0, %v6314_v39  ;;  %3869 = vrot.lane.b32.xlu0 %v3794_v24, %s6578_s30  ;;  %v3076_v63 = vld [vmem:[#allocation3 + $0x45] sm:$0xff] }
 0x321   : > { %v2998_v3 = vmul.f32 %v7983_v14, %v2746_v43  ;;  %v2745_v23 = vmul.f32 %v6316_v55, %v8057_v27  ;;  %6321 = vpow2.f32 %v5861_v35  ;;  %3220 = vrot.lane.b32.xlu1 %v3144_v4, %s6572_s12  ;;  %v3077_v14 = vld [vmem:[#allocation3 + $0x4d] sm:$0xff]  ;;  %6147 = vmatpush3.msra.mxu1 %v4920_v2  ;;  %3112 = vst.msk [vmem:[#allocation4 + $0x40] sm:$0xff] %vm3025_vm11, %v3076_v63  ;;  %v8206_v35 = vld [vmem:[#allocation3 + $0x37] sm:$0xff]  ;;  %v8221_v55 = vld [vmem:[#allocation3 + $0x41] sm:$0xff] }
 0x322   : > { %6323 = vrcp.f32 %v2639_v6  ;;  %3113 = vst.msk [vmem:[#allocation4 + $0x48] sm:$0xff] %vm3025_vm11, %v3077_v14  ;;  %v4444_v43 = vld [vmem:[#allocation3 + $0x3a] sm:$0xff] }
 0x323   : > { %3041 = vst.msk [vmem:[#allocation3 + $0x60] sm:$0xff] %vm3025_vm11, %v2998_v3  ;;  %v2997_v16 = vmul.f32 %v7981_v33, %v2745_v23  ;;  %v3795_v2 = vld [vmem:[#allocation3 + $0x38] sm:$0xff] }
 0x324   : > { %4733 = vrot.lane.b32.xlu0 %v4660_v56, %s6584_s29 }
 0x325   : > { %3040 = vst.msk [vmem:[#allocation3 + $0x58] sm:$0xff] %vm3025_vm11, %v2997_v16  ;;  %4084 = vrot.lane.b32.xlu1 %v8078_v53, %s6581_s21 }
 0x326   : > { %v6099_v33 = vpop.f32.mrb[14].mxu0 }
 0x327   : > { %v8185_v27 = vadd.f32 %v6099_v33, %v7958_v52  ;;  %v2412_v28 = vpop.f32.mrb[15].mxu0  ;;  %v8229_v33 = vld [vmem:[#allocation3 + $0x3f] sm:$0xff] }
 0x328   : > { %v8188_v12 = vadd.f32 %v7958_v52, %v2412_v28  ;;  %3437 = vrot.lane.b32.xlu0 %v8099_v57, %s6574_s14 }
 0x329   : > { %v6318_v45 = vpop.eup %6317  ;;  %v5864_v53 = vmul.f32 -1.442695, %v8185_v27  ;;  %3222 = vrot.lane.b32.xlu1 %v3145_v44, %s6572_s12 }
 0x32a   : > { %v6320_v37 = vpop.eup %6319  ;;  %v2642_v26 = vadd.f32 1.0, %v6318_v45  ;;  %v5863_v62 = vmul.f32 -1.442695, %v8188_v12  ;;  %v4661_v45 = vld [vmem:[#allocation3 + $0x3b] sm:$0xff] }
 0x32b   : > { %v6322_v8 = vpop.eup %6321  ;;  %v2748_v34 = vmul.f32 %v6320_v37, %v8097_v9  ;;  %6325 = vpow2.f32 %v5864_v53  ;;  %v4445_v37 = vld [vmem:[#allocation3 + $0x42] sm:$0xff] }
 0x32c   : > { %v6324_v41 = vpop.eup %6323  ;;  %6327 = vrcp.f32 %v2642_v26  ;;  %v2641_v20 = vadd.f32 1.0, %v6322_v8  ;;  %4301 = vrot.lane.b32.xlu0 %v8196_v48, %s6582_s22  ;;  %v3078_v39 = vld [vmem:[#allocation3 + $0x55] sm:$0xff] }
 0x32d   : > { %v3000_v57 = vmul.f32 %v7988_v60, %v2748_v34  ;;  %v2747_v21 = vmul.f32 %v6324_v41, %v8102_v13  ;;  %6329 = vpow2.f32 %v5863_v62  ;;  %4086 = vrot.lane.b32.xlu1 %v8121_v1, %s6581_s21  ;;  %3114 = vst.msk [vmem:[#allocation4 + $0x50] sm:$0xff] %vm3025_vm11, %v3078_v39  ;;  %v3079_v60 = vld [vmem:[#allocation3 + $0x5d] sm:$0xff] }
 0x32e   : > { %6331 = vrcp.f32 %v2641_v20  ;;  %3115 = vst.msk [vmem:[#allocation4 + $0x58] sm:$0xff] %vm3025_vm11, %v3079_v60  ;;  %v3146_v34 = vld [vmem:[#allocation3 + $0x36] sm:$0xff] }
 0x32f   : > { %3043 = vst.msk [vmem:[#allocation3 + $0x70] sm:$0xff] %vm3025_vm11, %v3000_v57  ;;  %v2999_v9 = vmul.f32 %v7986_v18, %v2747_v21 }
 0x330   : > { %3654 = vrot.lane.b32.xlu0 %v8206_v35, %s6576_s24 }
 0x331   : > { %3042 = vst.msk [vmem:[#allocation3 + $0x68] sm:$0xff] %vm3025_vm11, %v2999_v9  ;;  %3439 = vrot.lane.b32.xlu1 %v8134_v22, %s6574_s14 }
 0x332   : > { %v6102_v13 = vpop.f32.mrb[16].mxu0 }
 0x333   : > { %v8216_v1 = vadd.f32 %v6102_v13, %v7958_v52  ;;  %v2422_v18 = vpop.f32.mrb[17].mxu0  ;;  %v4662_v13 = vld [vmem:[#allocation3 + $0x43] sm:$0xff] }
 0x334   : > { %v8219_v24 = vadd.f32 %v7958_v52, %v2422_v18  ;;  %4518 = vrot.lane.b32.xlu0 %v4444_v43, %s6583_s10 }
 0x335   : > { %v6326_v6 = vpop.eup %6325  ;;  %v5866_v4 = vmul.f32 -1.442695, %v8216_v1  ;;  %4303 = vrot.lane.b32.xlu1 %v8221_v55, %s6582_s22 }
 0x336   : > { %v6328_v22 = vpop.eup %6327  ;;  %v2644_v3 = vadd.f32 1.0, %v6326_v6  ;;  %v5865_v23 = vmul.f32 -1.442695, %v8219_v24 }
 0x337   : > { %v6330_v16 = vpop.eup %6329  ;;  %v2750_v56 = vmul.f32 %v6328_v22, %v8151_v7  ;;  %6333 = vpow2.f32 %v5866_v4 }
 0x338   : > { %v6332_v63 = vpop.eup %6331  ;;  %6335 = vrcp.f32 %v2644_v3  ;;  %v2643_v14 = vadd.f32 1.0, %v6330_v16  ;;  %3871 = vrot.lane.b32.xlu0 %v3795_v2, %s6578_s30  ;;  %v3080_v53 = vld [vmem:[#allocation3 + $0x65] sm:$0xff]  ;;  %v3081_v26 = vld [vmem:[#allocation3 + $0x6d] sm:$0xff] }
 0x339   : > { %v3002_v28 = vmul.f32 %v7992_v61, %v2750_v56  ;;  %v2749_v44 = vmul.f32 %v6332_v63, %v8160_v17  ;;  %6337 = vpow2.f32 %v5865_v23  ;;  %3656 = vrot.lane.b32.xlu1 %v8229_v33, %s6576_s24  ;;  %3116 = vst.msk [vmem:[#allocation4 + $0x60] sm:$0xff] %vm3025_vm11, %v3080_v53  ;;  %3117 = vst.msk [vmem:[#allocation4 + $0x68] sm:$0xff] %vm3025_vm11, %v3081_v26  ;;  %v3147_v3 = vld [vmem:[#allocation3 + $0x3e] sm:$0xff]  ;;  %v4446_v26 = vld [vmem:[#allocation3 + $0x4a] sm:$0xff] }
 0x33a   : > { %6339 = vrcp.f32 %v2643_v14 }
 0x33b   : > { %3045 = vst.msk [vmem:[#allocation3 + $0x80] sm:$0xff] %vm3025_vm11, %v3002_v28  ;;  %v3001_v7 = vmul.f32 %v7990_v19, %v2749_v44  ;;  %v3796_v19 = vld [vmem:[#allocation3 + $0x40] sm:$0xff] }
 0x33c   : > { %4735 = vrot.lane.b32.xlu0 %v4661_v45, %s6584_s29 }
 0x33d   : > { %3044 = vst.msk [vmem:[#allocation3 + $0x78] sm:$0xff] %vm3025_vm11, %v3001_v7  ;;  %4520 = vrot.lane.b32.xlu1 %v4445_v37, %s6583_s10  ;;  %v8282_v7 = vld [vmem:[#allocation3 + $0x47] sm:$0xff] }
 0x33e   : > { %v6105_v61 = vpop.f32.mrb[18].mxu0 }
 0x33f   : > { %v8244_v17 = vadd.f32 %v6105_v61, %v7958_v52  ;;  %v2432_v62 = vpop.f32.mrb[19].mxu0 }
 0x340   : > { %v8247_v8 = vadd.f32 %v7958_v52, %v2432_v62  ;;  %3873 = vrot.lane.b32.xlu0 %v3796_v19, %s6578_s30  ;;  %v8292_v62 = vld [vmem:[#allocation3 + $0x51] sm:$0xff]  ;;  %v3797_v19 = vld [vmem:[#allocation3 + $0x48] sm:$0xff] }
 0x341   : > { %v6334_v41 = vpop.eup %6333  ;;  %v5868_v20 = vmul.f32 -1.442695, %v8244_v17  ;;  %3224 = vrot.lane.b32.xlu1 %v3146_v34, %s6572_s12 }
 0x342   : > { %v6336_v57 = vpop.eup %6335  ;;  %v2646_v21 = vadd.f32 1.0, %v6334_v41  ;;  %v5867_v9 = vmul.f32 -1.442695, %v8247_v8  ;;  %v8306_v41 = vld [vmem:[#allocation3 + $0x4f] sm:$0xff] }
 0x343   : > { %v6338_v39 = vpop.eup %6337  ;;  %v2752_v60 = vmul.f32 %v6336_v57, %v8185_v27  ;;  %6341 = vpow2.f32 %v5868_v20 }
 0x344   : > { %v6340_v18 = vpop.eup %6339  ;;  %6343 = vrcp.f32 %v2646_v21  ;;  %v2645_v43 = vadd.f32 1.0, %v6338_v39  ;;  %4737 = vrot.lane.b32.xlu0 %v4662_v13, %s6584_s29  ;;  %v3082_v22 = vld [vmem:[#allocation3 + $0x75] sm:$0xff]  ;;  %v3083_v23 = vld [vmem:[#allocation3 + $0x7d] sm:$0xff] }
 0x345   : > { %v3004_v6 = vmul.f32 %v8005_v31, %v2752_v60  ;;  %v2751_v4 = vmul.f32 %v6340_v18, %v8188_v12  ;;  %6345 = vpow2.f32 %v5867_v9  ;;  %4088 = vrot.lane.b32.xlu1 %v8196_v48, %s6581_s21  ;;  %3118 = vst.msk [vmem:[#allocation4 + $0x70] sm:$0xff] %vm3025_vm11, %v3082_v22  ;;  %3119 = vst.msk [vmem:[#allocation4 + $0x78] sm:$0xff] %vm3025_vm11, %v3083_v23  ;;  %v4663_v18 = vld [vmem:[#allocation3 + $0x4b] sm:$0xff] }
 0x346   : > { %6347 = vrcp.f32 %v2645_v43 }
 0x347   : > { %3047 = vst.msk [vmem:[#allocation3 + $0x90] sm:$0xff] %vm3025_vm11, %v3004_v6  ;;  %v3003_v27 = vmul.f32 %v8003_v30, %v2751_v4  ;;  %v8270_v30 = vld [vmem:[#allocation3 + $0x49] sm:$0xff]  ;;  %v4447_v4 = vld [vmem:[#allocation3 + $0x52] sm:$0xff] }
 0x348   : > { %3441 = vrot.lane.b32.xlu0 %v8206_v35, %s6574_s14 }
 0x349   : > { %3046 = vst.msk [vmem:[#allocation3 + $0x88] sm:$0xff] %vm3025_vm11, %v3003_v27  ;;  %3226 = vrot.lane.b32.xlu1 %v3147_v3, %s6572_s12  ;;  %v3798_v3 = vld [vmem:[#allocation3 + $0x50] sm:$0xff] }
 0x34a   : > { %v6108_v31 = vpop.f32.mrb[20].mxu0 }
 0x34b   : > { %v8268_v12 = vadd.f32 %v6108_v31, %v7958_v52  ;;  %v2442_v48 = vpop.f32.mrb[21].mxu0  ;;  %v3148_v31 = vld [vmem:[#allocation3 + $0x46] sm:$0xff] }
 0x34c   : > { %v8273_v16 = vadd.f32 %v7958_v52, %v2442_v48  ;;  %4305 = vrot.lane.b32.xlu0 %v8270_v30, %s6582_s22 }
 0x34d   : > { %v6342_v35 = vpop.eup %6341  ;;  %v5870_v56 = vmul.f32 -1.442695, %v8268_v12  ;;  %4090 = vrot.lane.b32.xlu1 %v8221_v55, %s6581_s21 }
 0x34e   : > { %v6344_v2 = vpop.eup %6343  ;;  %v2648_v63 = vadd.f32 1.0, %v6342_v35  ;;  %v5869_v14 = vmul.f32 -1.442695, %v8273_v16 }
 0x34f   : > { %v6346_v28 = vpop.eup %6345  ;;  %v2754_v44 = vmul.f32 %v6344_v2, %v8216_v1  ;;  %6349 = vpow2.f32 %v5870_v56 }
 0x350   : > { %v6348_v45 = vpop.eup %6347  ;;  %6351 = vrcp.f32 %v2648_v63  ;;  %v2647_v53 = vadd.f32 1.0, %v6346_v28  ;;  %3658 = vrot.lane.b32.xlu0 %v8282_v7, %s6576_s24  ;;  %v3084_v61 = vld [vmem:[#allocation3 + $0x85] sm:$0xff] }
 0x351   : > { %v3006_v37 = vmul.f32 %v8010_v38, %v2754_v44  ;;  %v2753_v55 = vmul.f32 %v6348_v45, %v8219_v24  ;;  %6353 = vpow2.f32 %v5869_v14  ;;  %3443 = vrot.lane.b32.xlu1 %v8229_v33, %s6574_s14  ;;  %3120 = vst.msk [vmem:[#allocation4 + $0x80] sm:$0xff] %vm3025_vm11, %v3084_v61  ;;  %v3085_v38 = vld [vmem:[#allocation3 + $0x8d] sm:$0xff] }
 0x352   : > { %6355 = vrcp.f32 %v2647_v53  ;;  %3121 = vst.msk [vmem:[#allocation4 + $0x88] sm:$0xff] %vm3025_vm11, %v3085_v38 }
 0x353   : > { %3049 = vst.msk [vmem:[#allocation3 + $0xa0] sm:$0xff] %vm3025_vm11, %v3006_v37  ;;  %v3005_v1 = vmul.f32 %v8008_v49, %v2753_v55 }
 0x354   : > { %4522 = vrot.lane.b32.xlu0 %v4446_v26, %s6583_s10 }
 0x355   : > { %3048 = vst.msk [vmem:[#allocation3 + $0x98] sm:$0xff] %vm3025_vm11, %v3005_v1  ;;  %4307 = vrot.lane.b32.xlu1 %v8292_v62, %s6582_s22  ;;  %v3149_v1 = vld [vmem:[#allocation3 + $0x4e] sm:$0xff] }
 0x356   : > { %v6111_v24 = vpop.f32.mrb[22].mxu0 }
 0x357   : > { %v8301_v33 = vadd.f32 %v6111_v24, %v7958_v52  ;;  %v2452_v49 = vpop.f32.mrb[23].mxu0 }
 0x358   : > { %v8304_v34 = vadd.f32 %v7958_v52, %v2452_v49  ;;  %3875 = vrot.lane.b32.xlu0 %v3797_v19, %s6578_s30  ;;  %v8358_v19 = vld [vmem:[#allocation3 + $0x57] sm:$0xff] }
 0x359   : > { %v6350_v20 = vpop.eup %6349  ;;  %v5872_v57 = vmul.f32 -1.442695, %v8301_v33  ;;  %3660 = vrot.lane.b32.xlu1 %v8306_v41, %s6576_s24 }
 0x35a   : > { %v6352_v21 = vpop.eup %6351  ;;  %v2650_v9 = vadd.f32 1.0, %v6350_v20  ;;  %v5871_v39 = vmul.f32 -1.442695, %v8304_v34 }
 0x35b   : > { %v6354_v60 = vpop.eup %6353  ;;  %v2756_v13 = vmul.f32 %v6352_v21, %v8244_v17  ;;  %6357 = vpow2.f32 %v5872_v57 }
 0x35c   : > { %v6356_v43 = vpop.eup %6355  ;;  %6359 = vrcp.f32 %v2650_v9  ;;  %v2649_v6 = vadd.f32 1.0, %v6354_v60  ;;  %4739 = vrot.lane.b32.xlu0 %v4663_v18, %s6584_s29  ;;  %v3086_v23 = vld [vmem:[#allocation3 + $0x95] sm:$0xff]  ;;  %v3087_v48 = vld [vmem:[#allocation3 + $0x9d] sm:$0xff] }
 0x35d   : > { %v3008_v27 = vmul.f32 %v8016_v42, %v2756_v13  ;;  %v2755_v22 = vmul.f32 %v6356_v43, %v8247_v8  ;;  %6361 = vpow2.f32 %v5871_v39  ;;  %4524 = vrot.lane.b32.xlu1 %v4447_v4, %s6583_s10  ;;  %3122 = vst.msk [vmem:[#allocation4 + $0x90] sm:$0xff] %vm3025_vm11, %v3086_v23  ;;  %3123 = vst.msk [vmem:[#allocation4 + $0x98] sm:$0xff] %vm3025_vm11, %v3087_v48  ;;  %v3799_v23 = vld [vmem:[#allocation3 + $0x58] sm:$0xff] }
 0x35e   : > { %6363 = vrcp.f32 %v2649_v6 }
 0x35f   : > { %3051 = vst.msk [vmem:[#allocation3 + $0xb0] sm:$0xff] %vm3025_vm11, %v3008_v27  ;;  %v3007_v17 = vmul.f32 %v8014_v51, %v2755_v22  ;;  %v4664_v51 = vld [vmem:[#allocation3 + $0x53] sm:$0xff]  ;;  %v8372_v27 = vld [vmem:[#allocation3 + $0x61] sm:$0xff] }
 0x360   : > { %3877 = vrot.lane.b32.xlu0 %v3798_v3, %s6578_s30 }
 0x361   : > { %3050 = vst.msk [vmem:[#allocation3 + $0xa8] sm:$0xff] %vm3025_vm11, %v3007_v17  ;;  %3228 = vrot.lane.b32.xlu1 %v3148_v31, %s6572_s12 }
 0x362   : > { %v6114_v42 = vpop.f32.mrb[24].mxu0 }
 0x363   : > { %v8326_v8 = vadd.f32 %v6114_v42, %v7958_v52  ;;  %v2462_v35 = vpop.f32.mrb[25].mxu0 }
 0x364   : > { %v8329_v56 = vadd.f32 %v7958_v52, %v2462_v35  ;;  %4741 = vrot.lane.b32.xlu0 %v4664_v51, %s6584_s29 }
 0x365   : > { %v6358_v2 = vpop.eup %6357  ;;  %v5874_v63 = vmul.f32 -1.442695, %v8326_v8  ;;  %4092 = vrot.lane.b32.xlu1 %v8270_v30, %s6581_s21  ;;  %v8344_v30 = vld [vmem:[#allocation3 + $0x59] sm:$0xff] }
 0x366   : > { %v6360_v14 = vpop.eup %6359  ;;  %v2652_v28 = vadd.f32 1.0, %v6358_v2  ;;  %v5873_v44 = vmul.f32 -1.442695, %v8329_v56 }
 0x367   : > { %v6362_v45 = vpop.eup %6361  ;;  %v2758_v53 = vmul.f32 %v6360_v14, %v8268_v12  ;;  %6365 = vpow2.f32 %v5874_v63  ;;  %v4665_v63 = vld [vmem:[#allocation3 + $0x5b] sm:$0xff] }
 0x368   : > { %v6364_v37 = vpop.eup %6363  ;;  %6367 = vrcp.f32 %v2652_v28  ;;  %v2651_v55 = vadd.f32 1.0, %v6362_v45  ;;  %3445 = vrot.lane.b32.xlu0 %v8282_v7, %s6574_s14  ;;  %v3088_v38 = vld [vmem:[#allocation3 + $0xa5] sm:$0xff] }
 0x369   : > { %v3010_v26 = vmul.f32 %v8027_v5, %v2758_v53  ;;  %v2757_v61 = vmul.f32 %v6364_v37, %v8273_v16  ;;  %6369 = vpow2.f32 %v5873_v44  ;;  %3230 = vrot.lane.b32.xlu1 %v3149_v1, %s6572_s12  ;;  %3124 = vst.msk [vmem:[#allocation4 + $0xa0] sm:$0xff] %vm3025_vm11, %v3088_v38  ;;  %v3089_v5 = vld [vmem:[#allocation3 + $0xad] sm:$0xff]  ;;  %v4449_v45 = vld [vmem:[#allocation3 + $0x62] sm:$0xff] }
 0x36a   : > { %6371 = vrcp.f32 %v2651_v55  ;;  %3125 = vst.msk [vmem:[#allocation4 + $0xa8] sm:$0xff] %vm3025_vm11, %v3089_v5  ;;  %v3800_v38 = vld [vmem:[#allocation3 + $0x60] sm:$0xff] }
 0x36b   : > { %3053 = vst.msk [vmem:[#allocation3 + $0xc0] sm:$0xff] %vm3025_vm11, %v3010_v26  ;;  %v3009_v12 = vmul.f32 %v8025_v25, %v2757_v61 }
 0x36c   : > { %4309 = vrot.lane.b32.xlu0 %v8344_v30, %s6582_s22 }
 0x36d   : > { %3052 = vst.msk [vmem:[#allocation3 + $0xb8] sm:$0xff] %vm3025_vm11, %v3009_v12  ;;  %4094 = vrot.lane.b32.xlu1 %v8292_v62, %s6581_s21  ;;  %v6117_v16 = vpop.f32.mrb[26].mxu0 }
 0x36e   : > { %v8354_v25 = vadd.f32 %v6117_v16, %v7958_v52  ;;  %v3649_v7 = vpop.permute.xlu0 %3648  ;;  %v3647_v24 = vpop.permute.xlu1 %3646 }
 0x36f   : > { %3756 = vst.msk [vmem:[#allocation4 + $0x8] sm:$0xff] %vm3754_vm14, %v3649_v7  ;;  %3755 = vst.msk [vmem:[#allocation4] sm:$0xff] %vm3754_vm14, %v3647_v24  ;;  %v2472_v49 = vpop.f32.mrb[27].mxu0  ;;  %v3150_v7 = vld [vmem:[#allocation3 + $0x56] sm:$0xff] }
 0x370   : > { %v5876_v20 = vmul.f32 -1.442695, %v8354_v25  ;;  %v8362_v57 = vadd.f32 %v7958_v52, %v2472_v49  ;;  %3662 = vrot.lane.b32.xlu0 %v8358_v19, %s6576_s24  ;;  %v4448_v52 = vld [vmem:[#allocation3 + $0x5a] sm:$0xff] }
 0x371   : > { %v6366_v62 = vpop.eup %6365  ;;  %3447 = vrot.lane.b32.xlu1 %v8306_v41, %s6574_s14 }
 0x372   : > { %v6368_v21 = vpop.eup %6367  ;;  %v2654_v9 = vadd.f32 1.0, %v6366_v62  ;;  %6373 = vpow2.f32 %v5876_v20  ;;  %v5875_v39 = vmul.f32 -1.442695, %v8362_v57  ;;  %v3864_v60 = vpop.permute.xlu1 %3863 }
 0x373   : > { %v3217_v13 = vpop.permute.xlu0 %3216  ;;  %v6370_v18 = vpop.eup %6369  ;;  %v2760_v43 = vmul.f32 %v6368_v21, %v8301_v33  ;;  %3972 = vst.msk [vmem:[#allocation4] sm:$0xff] %vm3971_vm15, %v3864_v60  ;;  %v4666_v21 = vld [vmem:[#allocation3 + $0x63] sm:$0xff] }
 0x374   : > { %3323 = vst.msk [vmem:[#allocation4 + $0x10] sm:$0xff] %vm3320_vm12, %v3217_v13  ;;  %v6372_v6 = vpop.eup %6371  ;;  %6375 = vrcp.f32 %v2654_v9  ;;  %v2653_v4 = vadd.f32 1.0, %v6370_v18  ;;  %4526 = vrot.lane.b32.xlu0 %v4448_v52, %s6583_s10  ;;  %v3090_v31 = vld [vmem:[#allocation3 + $0xb5] sm:$0xff] }
 0x375   : > { %v3012_v41 = vmul.f32 %v8039_v32, %v2760_v43  ;;  %v2759_v22 = vmul.f32 %v6372_v6, %v8304_v34  ;;  %6377 = vpow2.f32 %v5875_v39  ;;  %4311 = vrot.lane.b32.xlu1 %v8372_v27, %s6582_s22  ;;  %v8383_v32 = vld [vmem:[#allocation3 + $0x5f] sm:$0xff]  ;;  %3126 = vst.msk [vmem:[#allocation4 + $0xb0] sm:$0xff] %vm3025_vm11, %v3090_v31  ;;  %v8440_v31 = vld [vmem:[#allocation3 + $0x69] sm:$0xff] }
 0x376   : > { %6379 = vrcp.f32 %v2653_v4  ;;  %v3866_v33 = vpop.permute.xlu1 %3865  ;;  %v3091_v34 = vld [vmem:[#allocation3 + $0xbd] sm:$0xff] }
 0x377   : > { %v4081_v17 = vpop.permute.xlu0 %4080  ;;  %3055 = vst.msk [vmem:[#allocation3 + $0xd0] sm:$0xff] %vm3025_vm11, %v3012_v41  ;;  %v3011_v3 = vmul.f32 %v8037_v10, %v2759_v22  ;;  %3127 = vst.msk [vmem:[#allocation4 + $0xb8] sm:$0xff] %vm3025_vm11, %v3091_v34  ;;  %v8394_v10 = vld [vmem:[%s9246_s2] ss:$0 sm:$0xff] }
 0x378   : > { %3973 = vst.msk [vmem:[#allocation4 + $0x8] sm:$0xff] %vm3971_vm15, %v3866_v33  ;;  %3879 = vrot.lane.b32.xlu0 %v3799_v23, %s6578_s30 }
 0x379   : > { %4189 = vst.msk [vmem:[#allocation4] sm:$0xff] %vm4188_vm0, %v4081_v17  ;;  %3664 = vrot.lane.b32.xlu1 %v8383_v32, %s6576_s24  ;;  %v6120_v48 = vpop.f32.mrb[28].mxu0 }
 0x37a   : > { %3054 = vst.msk [vmem:[#allocation3 + $0xc8] sm:$0xff] %vm3025_vm11, %v3011_v3  ;;  %v8397_v42 = vadd.f32 %v8394_v10, %v6120_v48  ;;  %v3219_v35 = vpop.permute.xlu1 %3218  ;;  %v2482_v2 = vpop.f32.mrb[29].mxu0 }
 0x37b   : > { %v3434_v51 = vpop.permute.xlu0 %3433  ;;  %3324 = vst.msk [vmem:[#allocation4 + $0x18] sm:$0xff] %vm3320_vm12, %v3219_v35  ;;  %v8403_v44 = vadd.f32 %v8394_v10, %v2482_v2 }
 0x37c   : > { %3540 = vst.msk [vmem:[#allocation4 + $0x10] sm:$0xff] %vm3537_vm13, %v3434_v51  ;;  %v6374_v14 = vpop.eup %6373  ;;  %v5878_v28 = vmul.f32 -1.442695, %v8397_v42  ;;  %4743 = vrot.lane.b32.xlu0 %v4665_v63, %s6584_s29 }
 0x37d   : > { %v2656_v53 = vadd.f32 1.0, %v6374_v14  ;;  %4528 = vrot.lane.b32.xlu1 %v4449_v45, %s6583_s10  ;;  %v5877_v55 = vmul.f32 -1.442695, %v8403_v44 }
 0x37e   : > { %v6376_v37 = vpop.eup %6375  ;;  %6381 = vpow2.f32 %v5878_v28  ;;  %v4083_v1 = vpop.permute.xlu1 %4082 }
 0x37f   : > { %v4298_v26 = vpop.permute.xlu0 %4297  ;;  %v6378_v61 = vpop.eup %6377  ;;  %v2762_v12 = vmul.f32 %v6376_v37, %v8326_v8  ;;  %6383 = vrcp.f32 %v2656_v53  ;;  %4190 = vst.msk [vmem:[#allocation4 + $0x8] sm:$0xff] %vm4188_vm0, %v4083_v1  ;;  %v4450_v53 = vld [vmem:[#allocation3 + $0x6a] sm:$0xff] }
 0x380   : > { %4406 = vst.msk [vmem:[#allocation4] sm:$0xff] %vm4405_vm1, %v4298_v26  ;;  %v6380_v5 = vpop.eup %6379  ;;  %v2655_v16 = vadd.f32 1.0, %v6378_v61  ;;  %6385 = vpow2.f32 %v5877_v55  ;;  %3881 = vrot.lane.b32.xlu0 %v3800_v38, %s6578_s30 }
 0x381   : > { %v3014_v24 = vmul.f32 %v8050_v36, %v2762_v12  ;;  %v2761_v49 = vmul.f32 %v6380_v5, %v8329_v56  ;;  %3232 = vrot.lane.b32.xlu1 %v3150_v7, %s6572_s12  ;;  %v3092_v9 = vld [vmem:[#allocation3 + $0xc5] sm:$0xff]  ;;  %v3093_v36 = vld [vmem:[#allocation3 + $0xcd] sm:$0xff] }
 0x382   : > { %6387 = vrcp.f32 %v2655_v16  ;;  %v3436_v8 = vpop.permute.xlu1 %3435  ;;  %3128 = vst.msk [vmem:[#allocation4 + $0xc0] sm:$0xff] %vm3025_vm11, %v3092_v9  ;;  %3129 = vst.msk [vmem:[#allocation4 + $0xc8] sm:$0xff] %vm3025_vm11, %v3093_v36 }
 0x383   : > { %v3651_v20 = vpop.permute.xlu0 %3650  ;;  %3057 = vst.msk [vmem:[#allocation3 + $0xe0] sm:$0xff] %vm3025_vm11, %v3014_v24  ;;  %v3013_v62 = vmul.f32 %v8048_v15, %v2761_v49 }
 0x384   : > { %3541 = vst.msk [vmem:[#allocation4 + $0x18] sm:$0xff] %vm3537_vm13, %v3436_v8  ;;  %4745 = vrot.lane.b32.xlu0 %v4666_v21, %s6584_s29  ;;  %v3801_v8 = vld [vmem:[#allocation3 + $0x68] sm:$0xff] }
 0x385   : > { %3757 = vst.msk [vmem:[#allocation4 + $0x10] sm:$0xff] %vm3754_vm14, %v3651_v20  ;;  %4096 = vrot.lane.b32.xlu1 %v8344_v30, %s6581_s21  ;;  %v6123_v56 = vpop.f32.mrb[30].mxu0  ;;  %v3151_v30 = vld [vmem:[#allocation3 + $0x5e] sm:$0xff] }
 0x386   : > { %3056 = vst.msk [vmem:[#allocation3 + $0xd8] sm:$0xff] %vm3025_vm11, %v3013_v62  ;;  %v8426_v15 = vadd.f32 %v8394_v10, %v6123_v56  ;;  %v2492_v60 = vpop.f32.mrb[31].mxu0  ;;  %v4451_v56 = vld [vmem:[#allocation3 + $0x72] sm:$0xff] }
 0x387   : > { %v4515_v39 = vpop.permute.xlu0 %4514  ;;  %v4300_v13 = vpop.permute.xlu1 %4299  ;;  %v8430_v18 = vadd.f32 %v8394_v10, %v2492_v60 }
 0x388   : > { %4623 = vst.msk [vmem:[#allocation4] sm:$0xff] %vm4622_vm2, %v4515_v39  ;;  %v6382_v43 = vpop.eup %6381  ;;  %v5880_v52 = vmul.f32 -1.442695, %v8426_v15  ;;  %3449 = vrot.lane.b32.xlu0 %v8358_v19, %s6574_s14 }
 0x389   : > { %4407 = vst.msk [vmem:[#allocation4 + $0x8] sm:$0xff] %vm4405_vm1, %v4300_v13  ;;  %v6384_v6 = vpop.eup %6383  ;;  %v2658_v4 = vadd.f32 1.0, %v6382_v43  ;;  %v5879_v41 = vmul.f32 -1.442695, %v8430_v18  ;;  %3234 = vrot.lane.b32.xlu1 %v3151_v30, %s6572_s12 }
 0x38a   : > { %v6386_v22 = vpop.eup %6385  ;;  %v2764_v33 = vmul.f32 %v6384_v6, %v8354_v25  ;;  %6389 = vpow2.f32 %v5880_v52 }
 0x38b   : > { %v3868_v17 = vpop.permute.xlu0 %3867  ;;  %6391 = vrcp.f32 %v2658_v4  ;;  %v2657_v3 = vadd.f32 1.0, %v6386_v22  ;;  %v3653_v23 = vpop.permute.xlu1 %3652  ;;  %v3802_v4 = vld [vmem:[#allocation3 + $0x70] sm:$0xff] }
 0x38c   : > { %3974 = vst.msk [vmem:[#allocation4 + $0x10] sm:$0xff] %vm3971_vm15, %v3868_v17  ;;  %v6388_v34 = vpop.eup %6387  ;;  %v3016_v19 = vmul.f32 %v8064_v40, %v2764_v33  ;;  %6393 = vpow2.f32 %v5879_v41  ;;  %4313 = vrot.lane.b32.xlu0 %v8440_v31, %s6582_s22  ;;  %v8452_v40 = vld [vmem:[#allocation3 + $0x67] sm:$0xff] }
 0x38d   : > { %3758 = vst.msk [vmem:[#allocation4 + $0x18] sm:$0xff] %vm3754_vm14, %v3653_v23  ;;  %v2763_v25 = vmul.f32 %v6388_v34, %v8362_v57  ;;  %6395 = vrcp.f32 %v2657_v3  ;;  %4098 = vrot.lane.b32.xlu1 %v8372_v27, %s6581_s21  ;;  %v3094_v2 = vld [vmem:[#allocation3 + $0xd5] sm:$0xff]  ;;  %v3095_v57 = vld [vmem:[#allocation3 + $0xdd] sm:$0xff]  ;;  %v3152_v33 = vld [vmem:[#allocation3 + $0x66] sm:$0xff] }
 0x38e   : > { %3059 = vst.msk [vmem:[#allocation3 + $0xf0] sm:$0xff] %vm3025_vm11, %v3016_v19  ;;  %3130 = vst.msk [vmem:[#allocation4 + $0xd0] sm:$0xff] %vm3025_vm11, %v3094_v2 }
 0x38f   : > { %v4732_v48 = vpop.permute.xlu0 %4731  ;;  %v3015_v35 = vmul.f32 %v8062_v0, %v2763_v25  ;;  %v4517_v51 = vpop.permute.xlu1 %4516  ;;  %3131 = vst.msk [vmem:[#allocation4 + $0xd8] sm:$0xff] %vm3025_vm11, %v3095_v57 }
 0x390   : > { %4840 = vst.msk [vmem:[#allocation4] sm:$0xff] %vm4839_vm3, %v4732_v48  ;;  %3666 = vrot.lane.b32.xlu0 %v8452_v40, %s6576_s24 }
 0x391   : > { %4624 = vst.msk [vmem:[#allocation4 + $0x8] sm:$0xff] %vm4622_vm2, %v4517_v51  ;;  %3451 = vrot.lane.b32.xlu1 %v8383_v32, %s6574_s14  ;;  %v6126_v0 = vpop.f32.mrb[32].mxu0  ;;  %v8471_v32 = vld [vmem:[#allocation3 + $0x71] sm:$0xff] }
 0x392   : > { %3058 = vst.msk [vmem:[#allocation3 + $0xe8] sm:$0xff] %vm3025_vm11, %v3015_v35  ;;  %v8463_v27 = vadd.f32 %v8394_v10, %v6126_v0  ;;  %v2502_v14 = vpop.f32.mrb[33].mxu0  ;;  %v4668_v51 = vld [vmem:[#allocation3 + $0x73] sm:$0xff] }
 0x393   : > { %v3870_v63 = vpop.permute.xlu0 %3869  ;;  %v3221_v28 = vpop.permute.xlu1 %3220  ;;  %v8467_v45 = vadd.f32 %v8394_v10, %v2502_v14 }
 0x394   : > { %3975 = vst.msk [vmem:[#allocation4 + $0x18] sm:$0xff] %vm3971_vm15, %v3870_v63  ;;  %v6390_v37 = vpop.eup %6389  ;;  %v5882_v55 = vmul.f32 -1.442695, %v8463_v27  ;;  %4530 = vrot.lane.b32.xlu0 %v4450_v53, %s6583_s10 }
 0x395   : > { %3325 = vst.msk [vmem:[#allocation4 + $0x20] sm:$0xff] %vm3320_vm12, %v3221_v28  ;;  %v6392_v1 = vpop.eup %6391  ;;  %v2660_v26 = vadd.f32 1.0, %v6390_v37  ;;  %v5881_v61 = vmul.f32 -1.442695, %v8467_v45  ;;  %4315 = vrot.lane.b32.xlu1 %v8471_v32, %s6582_s22  ;;  %v8529_v28 = vld [vmem:[#allocation3 + $0x79] sm:$0xff] }
 0x396   : > { %v6394_v12 = vpop.eup %6393  ;;  %v2766_v38 = vmul.f32 %v6392_v1, %v8397_v42  ;;  %6397 = vpow2.f32 %v5882_v55  ;;  %v8483_v42 = vld [vmem:[#allocation3 + $0x6f] sm:$0xff] }
 0x397   : > { %v4734_v5 = vpop.permute.xlu0 %4733  ;;  %v4876_v16 = vld [vmem:[#allocation4] sm:$0xff]  ;;  %v6396_v7 = vpop.eup %6395  ;;  %6399 = vrcp.f32 %v2660_v26  ;;  %v2659_v24 = vadd.f32 1.0, %v6394_v12 }
 0x398   : > { %v4085_v49 = vpop.permute.xlu1 %4084  ;;  %4841 = vst.msk [vmem:[#allocation4 + $0x8] sm:$0xff] %vm4839_vm3, %v4734_v5  ;;  %6148 = vmatprep.mubr.msk.f32.mxu1 %vm4928_vm4, %v4876_v16  ;;  %v3018_v20 = vmul.f32 %v8074_v50, %v2766_v38  ;;  %v2765_v62 = vmul.f32 %v6396_v7, %v8403_v44  ;;  %6401 = vpow2.f32 %v5881_v61  ;;  %3883 = vrot.lane.b32.xlu0 %v3801_v8, %s6578_s30  ;;  %v4667_v50 = vld [vmem:[#allocation3 + $0x6b] sm:$0xff]  ;;  %v8538_v5 = vld [vmem:[#allocation3 + $0x77] sm:$0xff]  ;;  %v8553_v8 = vld [vmem:[#allocation3 + $0x81] sm:$0xff] }
 0x399   : > { %4191 = vst.msk [vmem:[#allocation4 + $0x10] sm:$0xff] %vm4188_vm0, %v4085_v49  ;;  %6403 = vrcp.f32 %v2659_v24  ;;  %3668 = vrot.lane.b32.xlu1 %v8483_v42, %s6576_s24  ;;  %v3096_v44 = vld [vmem:[#allocation3 + $0xe5] sm:$0xff]  ;;  %v3097_v39 = vld [vmem:[#allocation3 + $0xed] sm:$0xff] }
 0x39a   : > { %3061 = vst.msk [vmem:[#allocation3 + $0x100] sm:$0xff] %vm3025_vm11, %v3018_v20  ;;  %v3017_v21 = vmul.f32 %v8072_v47, %v2765_v62  ;;  %3132 = vst.msk [vmem:[#allocation4 + $0xe0] sm:$0xff] %vm3025_vm11, %v3096_v44 }
 0x39b   : > { %v3438_v9 = vpop.permute.xlu0 %3437  ;;  %3133 = vst.msk [vmem:[#allocation4 + $0xe8] sm:$0xff] %vm3025_vm11, %v3097_v39  ;;  %v4669_v39 = vld [vmem:[#allocation3 + $0x7b] sm:$0xff] }
 0x39c   : > { %v3223_v36 = vpop.permute.xlu1 %3222  ;;  %3542 = vst.msk [vmem:[#allocation4 + $0x20] sm:$0xff] %vm3537_vm13, %v3438_v9  ;;  %4747 = vrot.lane.b32.xlu0 %v4667_v50, %s6584_s29 }
 0x39d   : > { %3060 = vst.msk [vmem:[#allocation3 + $0xf8] sm:$0xff] %vm3025_vm11, %v3017_v21  ;;  %4532 = vrot.lane.b32.xlu1 %v4451_v56, %s6583_s10  ;;  %v6129_v60 = vpop.f32.mrb[34].mxu0  ;;  %v3587_v21 = vld [vmem:[#allocation3 + $0x7f] sm:$0xff] }
 0x39e   : > { %3326 = vst.msk [vmem:[#allocation4 + $0x28] sm:$0xff] %vm3320_vm12, %v3223_v36  ;;  %v8498_v47 = vadd.f32 %v8394_v10, %v6129_v60  ;;  %v2512_v43 = vpop.f32.mrb[35].mxu0 }
 0x39f   : > { %v4302_v13 = vpop.permute.xlu0 %4301  ;;  %v4877_v52 = vld [vmem:[#allocation4 + $0x8] sm:$0xff]  ;;  %v8502_v6 = vadd.f32 %v8394_v10, %v2512_v43  ;;  %v4453_v43 = vld [vmem:[#allocation3 + $0x82] sm:$0xff] }
 0x3a0   : > { %v4087_v30 = vpop.permute.xlu1 %4086  ;;  %4408 = vst.msk [vmem:[#allocation4 + $0x10] sm:$0xff] %vm4405_vm1, %v4302_v13  ;;  %6149 = vmatmul.mubr.msk.f32.vlgmr.msra.gmra.mrb[0].mxu1 %vm4928_vm4, %v4877_v52  ;;  %v6398_v41 = vpop.eup %6397  ;;  %v5884_v22 = vmul.f32 -1.442695, %v8498_v47  ;;  %3885 = vrot.lane.b32.xlu0 %v3802_v4, %s6578_s30 }
 0x3a1   : > { %4192 = vst.msk [vmem:[#allocation4 + $0x18] sm:$0xff] %vm4188_vm0, %v4087_v30  ;;  %v6400_v17 = vpop.eup %6399  ;;  %v2662_v3 = vadd.f32 1.0, %v6398_v41  ;;  %v5883_v23 = vmul.f32 -1.442695, %v8502_v6  ;;  %3236 = vrot.lane.b32.xlu1 %v3152_v33, %s6572_s12 }
 0x3a2   : > { %v6402_v34 = vpop.eup %6401  ;;  %v2768_v10 = vmul.f32 %v6400_v17, %v8426_v15  ;;  %6405 = vpow2.f32 %v5884_v22  ;;  %v3154_v22 = vld [vmem:[#allocation3 + $0x76] sm:$0xff]  ;;  %v4670_v17 = vld [vmem:[#allocation3 + $0x83] sm:$0xff] }
 0x3a3   : > { %v3655_v19 = vpop.permute.xlu0 %3654  ;;  %v6404_v25 = vpop.eup %6403  ;;  %6407 = vrcp.f32 %v2662_v3  ;;  %v2661_v48 = vadd.f32 1.0, %v6402_v34  ;;  %v3155_v34 = vld [vmem:[#allocation3 + $0x7e] sm:$0xff] }
 0x3a4   : > { %v3440_v35 = vpop.permute.xlu1 %3439  ;;  %3759 = vst.msk [vmem:[#allocation4 + $0x20] sm:$0xff] %vm3754_vm14, %v3655_v19  ;;  %v3020_v2 = vmul.f32 %v8086_v59, %v2768_v10  ;;  %v2767_v57 = vmul.f32 %v6404_v25, %v8430_v18  ;;  %6409 = vpow2.f32 %v5883_v23  ;;  %4749 = vrot.lane.b32.xlu0 %v4668_v51, %s6584_s29  ;;  %v3098_v63 = vld [vmem:[#allocation3 + $0xf5] sm:$0xff]  ;;  %v3099_v59 = vld [vmem:[#allocation3 + $0xfd] sm:$0xff]  ;;  %v4237_v25 = vld [vmem:[#allocation3 + $0x89] sm:$0xff] }
 0x3a5   : > { %3543 = vst.msk [vmem:[#allocation4 + $0x28] sm:$0xff] %vm3537_vm13, %v3440_v35  ;;  %6411 = vrcp.f32 %v2661_v48  ;;  %4100 = vrot.lane.b32.xlu1 %v8440_v31, %s6581_s21  ;;  %v3153_v18 = vld [vmem:[#allocation3 + $0x6e] sm:$0xff] }
 0x3a6   : > { %3063 = vst.msk [vmem:[#allocation3 + $0x110] sm:$0xff] %vm3025_vm11, %v3020_v2  ;;  %v3019_v15 = vmul.f32 %v8084_v58, %v2767_v57  ;;  %3134 = vst.msk [vmem:[#allocation4 + $0xf0] sm:$0xff] %vm3025_vm11, %v3098_v63  ;;  %v3588_v51 = vld [vmem:[#allocation3 + $0x87] sm:$0xff] }
 0x3a7   : > { %v4519_v0 = vpop.permute.xlu0 %4518  ;;  %3135 = vst.msk [vmem:[#allocation4 + $0xf8] sm:$0xff] %vm3025_vm11, %v3099_v59 }
 0x3a8   : > { %v4304_v14 = vpop.permute.xlu1 %4303  ;;  %4625 = vst.msk [vmem:[#allocation4 + $0x10] sm:$0xff] %vm4622_vm2, %v4519_v0  ;;  %3453 = vrot.lane.b32.xlu0 %v8452_v40, %s6574_s14  ;;  %v4238_v0 = vld [vmem:[#allocation3 + $0x91] sm:$0xff] }
 0x3a9   : > { %3062 = vst.msk [vmem:[#allocation3 + $0x108] sm:$0xff] %vm3025_vm11, %v3019_v15  ;;  %3238 = vrot.lane.b32.xlu1 %v3153_v18, %s6572_s12  ;;  %v4454_v15 = vld [vmem:[#allocation3 + $0x8a] sm:$0xff] }
 0x3aa   : > { %4409 = vst.msk [vmem:[#allocation4 + $0x18] sm:$0xff] %vm4405_vm1, %v4304_v14  ;;  %v3805_v18 = vld [vmem:[#allocation3 + $0x88] sm:$0xff] }
 0x3ab   : > { %v3872_v58 = vpop.permute.xlu0 %3871 }
 0x3ac   : > { %v3657_v31 = vpop.permute.xlu1 %3656  ;;  %3976 = vst.msk [vmem:[#allocation4 + $0x20] sm:$0xff] %vm3971_vm15, %v3872_v58  ;;  %v6406_v53 = vpop.eup %6405  ;;  %4317 = vrot.lane.b32.xlu0 %v8529_v28, %s6582_s22  ;;  %v3589_v58 = vld [vmem:[#allocation3 + $0x8f] sm:$0xff] }
 0x3ad   : > { %3760 = vst.msk [vmem:[#allocation4 + $0x28] sm:$0xff] %vm3754_vm14, %v3657_v31  ;;  %v6408_v37 = vpop.eup %6407  ;;  %v2664_v55 = vadd.f32 1.0, %v6406_v53  ;;  %4102 = vrot.lane.b32.xlu1 %v8471_v32, %s6581_s21  ;;  %v4671_v53 = vld [vmem:[#allocation3 + $0x8b] sm:$0xff] }
 0x3ae   : > { %v6410_v40 = vpop.eup %6409  ;;  %v2770_v1 = vmul.f32 %v6408_v37, %v8463_v27  ;;  %v4455_v37 = vld [vmem:[#allocation3 + $0x92] sm:$0xff] }
 0x3af   : > { %v4736_v26 = vpop.permute.xlu0 %4735  ;;  %v6412_v61 = vpop.eup %6411  ;;  %6413 = vrcp.f32 %v2664_v55  ;;  %v2663_v12 = vadd.f32 1.0, %v6410_v40 }
 0x3b0   : > { %v4521_v38 = vpop.permute.xlu1 %4520  ;;  %4842 = vst.msk [vmem:[#allocation4 + $0x10] sm:$0xff] %vm4839_vm3, %v4736_v26  ;;  %v3022_v16 = vmul.f32 %v8111_v11, %v2770_v1  ;;  %v2769_v7 = vmul.f32 %v6412_v61, %v8467_v45  ;;  %3670 = vrot.lane.b32.xlu0 %v8538_v5, %s6576_s24  ;;  %v3100_v24 = vld [vmem:[#allocation3 + $0x105] sm:$0xff]  ;;  %v4452_v11 = vld [vmem:[#allocation3 + $0x7a] sm:$0xff]  ;;  %v3101_v45 = vld [vmem:[#allocation3 + $0x10d] sm:$0xff] }
 0x3b1   : > { %4626 = vst.msk [vmem:[#allocation4 + $0x18] sm:$0xff] %vm4622_vm2, %v4521_v38  ;;  %6415 = vrcp.f32 %v2663_v12  ;;  %3455 = vrot.lane.b32.xlu1 %v8483_v42, %s6574_s14  ;;  %v3803_v42 = vld [vmem:[#allocation3 + $0x78] sm:$0xff]  ;;  %v3806_v26 = vld [vmem:[#allocation3 + $0x90] sm:$0xff]  ;;  %v3156_v61 = vld [vmem:[#allocation3 + $0x86] sm:$0xff] }
 0x3b2   : > { %3065 = vst.msk [vmem:[#allocation3 + $0x120] sm:$0xff] %vm3025_vm11, %v3022_v16  ;;  %v3021_v27 = vmul.f32 %v8109_v29, %v2769_v7  ;;  %3136 = vst.msk [vmem:[#allocation4 + $0x100] sm:$0xff] %vm3025_vm11, %v3100_v24 }
 0x3b3   : > { %v3874_v32 = vpop.permute.xlu0 %3873  ;;  %3137 = vst.msk [vmem:[#allocation4 + $0x108] sm:$0xff] %vm3025_vm11, %v3101_v45 }
 0x3b4   : > { %v3225_v49 = vpop.permute.xlu1 %3224  ;;  %3977 = vst.msk [vmem:[#allocation4 + $0x28] sm:$0xff] %vm3971_vm15, %v3874_v32  ;;  %4534 = vrot.lane.b32.xlu0 %v4452_v11, %s6583_s10 }
 0x3b5   : > { %3064 = vst.msk [vmem:[#allocation3 + $0x118] sm:$0xff] %vm3025_vm11, %v3021_v27  ;;  %4319 = vrot.lane.b32.xlu1 %v8553_v8, %s6582_s22  ;;  %v3157_v27 = vld [vmem:[#allocation3 + $0x8e] sm:$0xff] }
 0x3b6   : > { %3327 = vst.msk [vmem:[#allocation4 + $0x30] sm:$0xff] %vm3320_vm12, %v3225_v49  ;;  %v4239_v49 = vld [vmem:[#allocation3 + $0x99] sm:$0xff] }
 0x3b7   : > { %v4738_v29 = vpop.permute.xlu0 %4737  ;;  %v4878_v20 = vld [vmem:[#allocation4 + $0x10] sm:$0xff] }
 0x3b8   : > { %v4089_v62 = vpop.permute.xlu1 %4088  ;;  %4843 = vst.msk [vmem:[#allocation4 + $0x18] sm:$0xff] %vm4839_vm3, %v4738_v29  ;;  %6151 = vmatprep.mubr.msk.f32.mxu1 %vm4928_vm4, %v4878_v20  ;;  %3887 = vrot.lane.b32.xlu0 %v3803_v42, %s6578_s30  ;;  %v4240_v42 = vld [vmem:[#allocation3 + $0xa1] sm:$0xff] }
 0x3b9   : > { %4193 = vst.msk [vmem:[#allocation4 + $0x20] sm:$0xff] %vm4188_vm0, %v4089_v62  ;;  %v6414_v9 = vpop.eup %6413  ;;  %3672 = vrot.lane.b32.xlu1 %v3587_v21, %s6576_s24  ;;  %v4456_v62 = vld [vmem:[#allocation3 + $0x9a] sm:$0xff] }
 0x3ba   : > { %v2772_v36 = vmul.f32 %v6414_v9, %v8498_v47 }
 0x3bb   : > { %v3442_v50 = vpop.permute.xlu0 %3441  ;;  %v6416_v44 = vpop.eup %6415 }
 0x3bc   : > { %v3227_v56 = vpop.permute.xlu1 %3226  ;;  %3544 = vst.msk [vmem:[#allocation4 + $0x30] sm:$0xff] %vm3537_vm13, %v3442_v50  ;;  %v3024_v60 = vmul.f32 %v8130_v46, %v2772_v36  ;;  %v2771_v13 = vmul.f32 %v6416_v44, %v8502_v6  ;;  %4751 = vrot.lane.b32.xlu0 %v4669_v39, %s6584_s29  ;;  %v3804_v46 = vld [vmem:[#allocation3 + $0x80] sm:$0xff]  ;;  %v3102_v6 = vld [vmem:[#allocation3 + $0x115] sm:$0xff] }
 0x3bd   : > { %3328 = vst.msk [vmem:[#allocation4 + $0x38] sm:$0xff] %vm3320_vm12, %v3227_v56  ;;  %4536 = vrot.lane.b32.xlu1 %v4453_v43, %s6583_s10  ;;  %v3103_v41 = vld [vmem:[#allocation3 + $0x11d] sm:$0xff] }
 0x3be   : > { %3067 = vst.msk [vmem:[#allocation3 + $0x130] sm:$0xff] %vm3025_vm11, %v3024_v60  ;;  %v3023_v47 = vmul.f32 %v8128_v54, %v2771_v13  ;;  %3138 = vst.msk [vmem:[#allocation4 + $0x110] sm:$0xff] %vm3025_vm11, %v3102_v6  ;;  %v3807_v50 = vld [vmem:[#allocation3 + $0x98] sm:$0xff]  ;;  %v4457_v13 = vld [vmem:[#allocation3 + $0xa2] sm:$0xff] }
 0x3bf   : > { %v4306_v52 = vpop.permute.xlu0 %4305  ;;  %v4879_v30 = vld [vmem:[#allocation4 + $0x18] sm:$0xff]  ;;  %3139 = vst.msk [vmem:[#allocation4 + $0x118] sm:$0xff] %vm3025_vm11, %v3103_v41  ;;  %v3591_v44 = vld [vmem:[#allocation3 + $0x9f] sm:$0xff] }
 0x3c0   : > { %v4091_v4 = vpop.permute.xlu1 %4090  ;;  %4410 = vst.msk [vmem:[#allocation4 + $0x20] sm:$0xff] %vm4405_vm1, %v4306_v52  ;;  %6152 = vmatmul.mubr.msk.f32.gmra.mrb[2].mxu1 %vm4928_vm4, %v4879_v30  ;;  %3889 = vrot.lane.b32.xlu0 %v3804_v46, %s6578_s30  ;;  %v4673_v60 = vld [vmem:[#allocation3 + $0x9b] sm:$0xff]  ;;  %v4674_v41 = vld [vmem:[#allocation3 + $0xa3] sm:$0xff] }
 0x3c1   : > { %3066 = vst.msk [vmem:[#allocation3 + $0x128] sm:$0xff] %vm3025_vm11, %v3023_v47  ;;  %3240 = vrot.lane.b32.xlu1 %v3154_v22, %s6572_s12  ;;  %v3808_v30 = vld [vmem:[#allocation3 + $0xa0] sm:$0xff] }
 0x3c2   : > { %4194 = vst.msk [vmem:[#allocation4 + $0x28] sm:$0xff] %vm4188_vm0, %v4091_v4  ;;  %v3158_v4 = vld [vmem:[#allocation3 + $0x96] sm:$0xff] }
 0x3c3   : > { %v3659_v54 = vpop.permute.xlu0 %3658 }
 0x3c4   : > { %v3444_v33 = vpop.permute.xlu1 %3443  ;;  %3761 = vst.msk [vmem:[#allocation4 + $0x30] sm:$0xff] %vm3754_vm14, %v3659_v54  ;;  %4753 = vrot.lane.b32.xlu0 %v4670_v17, %s6584_s29 }
 0x3c5   : > { %3545 = vst.msk [vmem:[#allocation4 + $0x38] sm:$0xff] %vm3537_vm13, %v3444_v33  ;;  %4104 = vrot.lane.b32.xlu1 %v8529_v28, %s6581_s21  ;;  %v3159_v33 = vld [vmem:[#allocation3 + $0x9e] sm:$0xff] }
 0x3c7   : > { %v4523_v3 = vpop.permute.xlu0 %4522 }
 0x3c8   : > { %v4308_v23 = vpop.permute.xlu1 %4307  ;;  %4627 = vst.msk [vmem:[#allocation4 + $0x20] sm:$0xff] %vm4622_vm2, %v4523_v3  ;;  %3457 = vrot.lane.b32.xlu0 %v8538_v5, %s6574_s14  ;;  %v4672_v5 = vld [vmem:[#allocation3 + $0x93] sm:$0xff] }
 0x3c9   : > { %4411 = vst.msk [vmem:[#allocation4 + $0x28] sm:$0xff] %vm4405_vm1, %v4308_v23  ;;  %3242 = vrot.lane.b32.xlu1 %v3155_v34, %s6572_s12  ;;  %v4241_v23 = vld [vmem:[#allocation3 + $0xa9] sm:$0xff] }
 0x3cb   : > { %v3876_v10 = vpop.permute.xlu0 %3875 }
 0x3cc   : > { %v3661_v19 = vpop.permute.xlu1 %3660  ;;  %3978 = vst.msk [vmem:[#allocation4 + $0x30] sm:$0xff] %vm3971_vm15, %v3876_v10  ;;  %4321 = vrot.lane.b32.xlu0 %v4237_v25, %s6582_s22 }
 0x3cd   : > { %3762 = vst.msk [vmem:[#allocation4 + $0x38] sm:$0xff] %vm3754_vm14, %v3661_v19  ;;  %4106 = vrot.lane.b32.xlu1 %v8553_v8, %s6581_s21  ;;  %v3590_v8 = vld [vmem:[#allocation3 + $0x97] sm:$0xff]  ;;  %v3592_v19 = vld [vmem:[#allocation3 + $0xa7] sm:$0xff] }
 0x3cf   : > { %v4740_v48 = vpop.permute.xlu0 %4739 }
 0x3d0   : > { %v4525_v35 = vpop.permute.xlu1 %4524  ;;  %4844 = vst.msk [vmem:[#allocation4 + $0x20] sm:$0xff] %vm4839_vm3, %v4740_v48  ;;  %3674 = vrot.lane.b32.xlu0 %v3588_v51, %s6576_s24 }
 0x3d1   : > { %4628 = vst.msk [vmem:[#allocation4 + $0x28] sm:$0xff] %vm4622_vm2, %v4525_v35  ;;  %3459 = vrot.lane.b32.xlu1 %v3587_v21, %s6574_s14  ;;  %v4458_v35 = vld [vmem:[#allocation3 + $0xaa] sm:$0xff] }
 0x3d3   : > { %v3878_v2 = vpop.permute.xlu0 %3877 }
 0x3d4   : > { %v3229_v57 = vpop.permute.xlu1 %3228  ;;  %3979 = vst.msk [vmem:[#allocation4 + $0x38] sm:$0xff] %vm3971_vm15, %v3878_v2  ;;  %4538 = vrot.lane.b32.xlu0 %v4454_v15, %s6583_s10 }
 0x3d5   : > { %3329 = vst.msk [vmem:[#allocation4 + $0x40] sm:$0xff] %vm3320_vm12, %v3229_v57  ;;  %4323 = vrot.lane.b32.xlu1 %v4238_v0, %s6582_s22 }
 0x3d7   : > { %v4742_v63 = vpop.permute.xlu0 %4741  ;;  %v4880_v14 = vld [vmem:[#allocation4 + $0x20] sm:$0xff] }
 0x3d8   : > { %v4093_v59 = vpop.permute.xlu1 %4092  ;;  %4845 = vst.msk [vmem:[#allocation4 + $0x28] sm:$0xff] %vm4839_vm3, %v4742_v63  ;;  %6154 = vmatprep.mubr.msk.f32.mxu1 %vm4928_vm4, %v4880_v14  ;;  %3891 = vrot.lane.b32.xlu0 %v3805_v18, %s6578_s30  ;;  %v3593_v63 = vld [vmem:[#allocation3 + $0xaf] sm:$0xff] }
 0x3d9   : > { %4195 = vst.msk [vmem:[#allocation4 + $0x30] sm:$0xff] %vm4188_vm0, %v4093_v59  ;;  %3676 = vrot.lane.b32.xlu1 %v3589_v58, %s6576_s24  ;;  %v4675_v18 = vld [vmem:[#allocation3 + $0xab] sm:$0xff] }
 0x3db   : > { %v3446_v31 = vpop.permute.xlu0 %3445 }
 0x3dc   : > { %v3231_v28 = vpop.permute.xlu1 %3230  ;;  %3546 = vst.msk [vmem:[#allocation4 + $0x40] sm:$0xff] %vm3537_vm13, %v3446_v31  ;;  %4755 = vrot.lane.b32.xlu0 %v4671_v53, %s6584_s29 }
 0x3dd   : > { %3330 = vst.msk [vmem:[#allocation4 + $0x48] sm:$0xff] %vm3320_vm12, %v3231_v28  ;;  %4540 = vrot.lane.b32.xlu1 %v4455_v37, %s6583_s10  ;;  %v3810_v37 = vld [vmem:[#allocation3 + $0xb0] sm:$0xff] }
 0x3df   : > { %v4310_v55 = vpop.permute.xlu0 %4309  ;;  %v4881_v40 = vld [vmem:[#allocation4 + $0x28] sm:$0xff] }
 0x3e0   : > { %v4095_v1 = vpop.permute.xlu1 %4094  ;;  %4412 = vst.msk [vmem:[#allocation4 + $0x30] sm:$0xff] %vm4405_vm1, %v4310_v55  ;;  %6155 = vmatmul.mubr.msk.f32.gmra.mrb[4].mxu1 %vm4928_vm4, %v4881_v40  ;;  %3893 = vrot.lane.b32.xlu0 %v3806_v26, %s6578_s30  ;;  %v3160_v55 = vld [vmem:[#allocation3 + $0xa6] sm:$0xff]  ;;  %v4676_v26 = vld [vmem:[#allocation3 + $0xb3] sm:$0xff] }
 0x3e1   : > { %4196 = vst.msk [vmem:[#allocation4 + $0x38] sm:$0xff] %vm4188_vm0, %v4095_v1  ;;  %3244 = vrot.lane.b32.xlu1 %v3156_v61, %s6572_s12 }
 0x3e3   : > { %v3663_v12 = vpop.permute.xlu0 %3662 }
 0x3e4   : > { %v3448_v38 = vpop.permute.xlu1 %3447  ;;  %3763 = vst.msk [vmem:[#allocation4 + $0x40] sm:$0xff] %vm3754_vm14, %v3663_v12  ;;  %4757 = vrot.lane.b32.xlu0 %v4672_v5, %s6584_s29 }
 0x3e5   : > { %3547 = vst.msk [vmem:[#allocation4 + $0x48] sm:$0xff] %vm3537_vm13, %v3448_v38  ;;  %4108 = vrot.lane.b32.xlu1 %v4237_v25, %s6581_s21  ;;  %v3161_v38 = vld [vmem:[#allocation3 + $0xae] sm:$0xff] }
 0x3e7   : > { %v4527_v16 = vpop.permute.xlu0 %4526 }
 0x3e8   : > { %v4312_v7 = vpop.permute.xlu1 %4311  ;;  %4629 = vst.msk [vmem:[#allocation4 + $0x30] sm:$0xff] %vm4622_vm2, %v4527_v16  ;;  %3461 = vrot.lane.b32.xlu0 %v3588_v51, %s6574_s14  ;;  %v4242_v51 = vld [vmem:[#allocation3 + $0xb1] sm:$0xff] }
 0x3e9   : > { %4413 = vst.msk [vmem:[#allocation4 + $0x38] sm:$0xff] %vm4405_vm1, %v4312_v7  ;;  %3246 = vrot.lane.b32.xlu1 %v3157_v27, %s6572_s12  ;;  %v4243_v7 = vld [vmem:[#allocation3 + $0xb9] sm:$0xff] }
 0x3eb   : > { %v3880_v32 = vpop.permute.xlu0 %3879 }
 0x3ec   : > { %v3665_v24 = vpop.permute.xlu1 %3664  ;;  %3980 = vst.msk [vmem:[#allocation4 + $0x40] sm:$0xff] %vm3971_vm15, %v3880_v32  ;;  %4325 = vrot.lane.b32.xlu0 %v4239_v49, %s6582_s22 }
 0x3ed   : > { %3764 = vst.msk [vmem:[#allocation4 + $0x48] sm:$0xff] %vm3754_vm14, %v3665_v24  ;;  %4110 = vrot.lane.b32.xlu1 %v4238_v0, %s6581_s21  ;;  %v3809_v0 = vld [vmem:[#allocation3 + $0xa8] sm:$0xff]  ;;  %v3594_v24 = vld [vmem:[#allocation3 + $0xb7] sm:$0xff] }
 0x3ef   : > { %v4744_v11 = vpop.permute.xlu0 %4743 }
 0x3f0   : > { %v4529_v45 = vpop.permute.xlu1 %4528  ;;  %4846 = vst.msk [vmem:[#allocation4 + $0x30] sm:$0xff] %vm4839_vm3, %v4744_v11  ;;  %3678 = vrot.lane.b32.xlu0 %v3590_v8, %s6576_s24 }
 0x3f1   : > { %4630 = vst.msk [vmem:[#allocation4 + $0x38] sm:$0xff] %vm4622_vm2, %v4529_v45  ;;  %3463 = vrot.lane.b32.xlu1 %v3589_v58, %s6574_s14  ;;  %v4459_v58 = vld [vmem:[#allocation3 + $0xb2] sm:$0xff]  ;;  %v4460_v45 = vld [vmem:[#allocation3 + $0xba] sm:$0xff] }
 0x3f3   : > { %v3882_v29 = vpop.permute.xlu0 %3881 }
 0x3f4   : > { %v3233_v20 = vpop.permute.xlu1 %3232  ;;  %3981 = vst.msk [vmem:[#allocation4 + $0x48] sm:$0xff] %vm3971_vm15, %v3882_v29  ;;  %4542 = vrot.lane.b32.xlu0 %v4456_v62, %s6583_s10 }
 0x3f5   : > { %3331 = vst.msk [vmem:[#allocation4 + $0x50] sm:$0xff] %vm3320_vm12, %v3233_v20  ;;  %4327 = vrot.lane.b32.xlu1 %v4240_v42, %s6582_s22 }
 0x3f7   : > { %v4746_v21 = vpop.permute.xlu0 %4745  ;;  %v4882_v9 = vld [vmem:[#allocation4 + $0x30] sm:$0xff] }
 0x3f8   : > { %v4097_v36 = vpop.permute.xlu1 %4096  ;;  %4847 = vst.msk [vmem:[#allocation4 + $0x38] sm:$0xff] %vm4839_vm3, %v4746_v21  ;;  %6157 = vmatprep.mubr.msk.f32.mxu1 %vm4928_vm4, %v4882_v9  ;;  %3895 = vrot.lane.b32.xlu0 %v3807_v50, %s6578_s30  ;;  %v3595_v21 = vld [vmem:[#allocation3 + $0xbf] sm:$0xff] }
 0x3f9   : > { %4197 = vst.msk [vmem:[#allocation4 + $0x40] sm:$0xff] %vm4188_vm0, %v4097_v36  ;;  %3680 = vrot.lane.b32.xlu1 %v3591_v44, %s6576_s24  ;;  %v4677_v50 = vld [vmem:[#allocation3 + $0xbb] sm:$0xff] }
 0x3fb   : > { %v3450_v56 = vpop.permute.xlu0 %3449 }
 0x3fc   : > { %v3235_v39 = vpop.permute.xlu1 %3234  ;;  %3548 = vst.msk [vmem:[#allocation4 + $0x50] sm:$0xff] %vm3537_vm13, %v3450_v56  ;;  %4759 = vrot.lane.b32.xlu0 %v4673_v60, %s6584_s29 }
 0x3fd   : > { %3332 = vst.msk [vmem:[#allocation4 + $0x58] sm:$0xff] %vm3320_vm12, %v3235_v39  ;;  %4544 = vrot.lane.b32.xlu1 %v4457_v13, %s6583_s10  ;;  %v3812_v13 = vld [vmem:[#allocation3 + $0xc0] sm:$0xff] }
 0x3ff   : > { %v4314_v43 = vpop.permute.xlu0 %4313  ;;  %v4883_v47 = vld [vmem:[#allocation4 + $0x38] sm:$0xff] }
 0x400   : > { %v4099_v52 = vpop.permute.xlu1 %4098  ;;  %4414 = vst.msk [vmem:[#allocation4 + $0x40] sm:$0xff] %vm4405_vm1, %v4314_v43  ;;  %6158 = vmatmul.mubr.msk.f32.gmra.mrb[6].mxu1 %vm4928_vm4, %v4883_v47  ;;  %3897 = vrot.lane.b32.xlu0 %v3808_v30, %s6578_s30  ;;  %v3162_v43 = vld [vmem:[#allocation3 + $0xb6] sm:$0xff]  ;;  %v4678_v30 = vld [vmem:[#allocation3 + $0xc3] sm:$0xff] }
 0x401   : > { %4198 = vst.msk [vmem:[#allocation4 + $0x48] sm:$0xff] %vm4188_vm0, %v4099_v52  ;;  %3248 = vrot.lane.b32.xlu1 %v3158_v4, %s6572_s12 }
 0x403   : > { %v3667_v46 = vpop.permute.xlu0 %3666 }
 0x404   : > { %v3452_v6 = vpop.permute.xlu1 %3451  ;;  %3765 = vst.msk [vmem:[#allocation4 + $0x50] sm:$0xff] %vm3754_vm14, %v3667_v46  ;;  %4761 = vrot.lane.b32.xlu0 %v4674_v41, %s6584_s29 }
 0x405   : > { %3549 = vst.msk [vmem:[#allocation4 + $0x58] sm:$0xff] %vm3537_vm13, %v3452_v6  ;;  %4112 = vrot.lane.b32.xlu1 %v4239_v49, %s6581_s21  ;;  %v3163_v6 = vld [vmem:[#allocation3 + $0xbe] sm:$0xff] }
 0x407   : > { %v4531_v22 = vpop.permute.xlu0 %4530 }
 0x408   : > { %v4316_v54 = vpop.permute.xlu1 %4315  ;;  %4631 = vst.msk [vmem:[#allocation4 + $0x40] sm:$0xff] %vm4622_vm2, %v4531_v22  ;;  %3465 = vrot.lane.b32.xlu0 %v3590_v8, %s6574_s14  ;;  %v4244_v8 = vld [vmem:[#allocation3 + $0xc1] sm:$0xff] }
 0x409   : > { %4415 = vst.msk [vmem:[#allocation4 + $0x48] sm:$0xff] %vm4405_vm1, %v4316_v54  ;;  %3250 = vrot.lane.b32.xlu1 %v3159_v33, %s6572_s12  ;;  %v4245_v54 = vld [vmem:[#allocation3 + $0xc9] sm:$0xff] }
 0x40b   : > { %v3884_v17 = vpop.permute.xlu0 %3883 }
 0x40c   : > { %v3669_v3 = vpop.permute.xlu1 %3668  ;;  %3982 = vst.msk [vmem:[#allocation4 + $0x50] sm:$0xff] %vm3971_vm15, %v3884_v17  ;;  %4329 = vrot.lane.b32.xlu0 %v4241_v23, %s6582_s22 }
 0x40d   : > { %3766 = vst.msk [vmem:[#allocation4 + $0x58] sm:$0xff] %vm3754_vm14, %v3669_v3  ;;  %4114 = vrot.lane.b32.xlu1 %v4240_v42, %s6581_s21  ;;  %v3811_v42 = vld [vmem:[#allocation3 + $0xb8] sm:$0xff]  ;;  %v3596_v3 = vld [vmem:[#allocation3 + $0xc7] sm:$0xff] }
 0x40f   : > { %v4748_v34 = vpop.permute.xlu0 %4747 }
 0x410   : > { %v4533_v10 = vpop.permute.xlu1 %4532  ;;  %4848 = vst.msk [vmem:[#allocation4 + $0x40] sm:$0xff] %vm4839_vm3, %v4748_v34  ;;  %3682 = vrot.lane.b32.xlu0 %v3592_v19, %s6576_s24 }
 0x411   : > { %4632 = vst.msk [vmem:[#allocation4 + $0x48] sm:$0xff] %vm4622_vm2, %v4533_v10  ;;  %3467 = vrot.lane.b32.xlu1 %v3591_v44, %s6574_s14  ;;  %v4461_v44 = vld [vmem:[#allocation3 + $0xc2] sm:$0xff]  ;;  %v4462_v10 = vld [vmem:[#allocation3 + $0xca] sm:$0xff] }
 0x413   : > { %v3886_v25 = vpop.permute.xlu0 %3885 }
 0x414   : > { %v3237_v48 = vpop.permute.xlu1 %3236  ;;  %3983 = vst.msk [vmem:[#allocation4 + $0x58] sm:$0xff] %vm3971_vm15, %v3886_v25  ;;  %4546 = vrot.lane.b32.xlu0 %v4458_v35, %s6583_s10 }
 0x415   : > { %3333 = vst.msk [vmem:[#allocation4 + $0x60] sm:$0xff] %vm3320_vm12, %v3237_v48  ;;  %4331 = vrot.lane.b32.xlu1 %v4242_v51, %s6582_s22 }
 0x417   : > { %v4750_v2 = vpop.permute.xlu0 %4749  ;;  %v4884_v57 = vld [vmem:[#allocation4 + $0x40] sm:$0xff] }
 0x418   : > { %v4101_v15 = vpop.permute.xlu1 %4100  ;;  %4849 = vst.msk [vmem:[#allocation4 + $0x48] sm:$0xff] %vm4839_vm3, %v4750_v2  ;;  %6160 = vmatprep.mubr.msk.f32.mxu1 %vm4928_vm4, %v4884_v57  ;;  %3899 = vrot.lane.b32.xlu0 %v3809_v0, %s6578_s30  ;;  %v3597_v2 = vld [vmem:[#allocation3 + $0xcf] sm:$0xff] }
 0x419   : > { %4199 = vst.msk [vmem:[#allocation4 + $0x50] sm:$0xff] %vm4188_vm0, %v4101_v15  ;;  %3684 = vrot.lane.b32.xlu1 %v3593_v63, %s6576_s24  ;;  %v4679_v0 = vld [vmem:[#allocation3 + $0xcb] sm:$0xff] }
 0x41b   : > { %v3454_v14 = vpop.permute.xlu0 %3453 }
 0x41c   : > { %v3239_v59 = vpop.permute.xlu1 %3238  ;;  %3550 = vst.msk [vmem:[#allocation4 + $0x60] sm:$0xff] %vm3537_vm13, %v3454_v14  ;;  %4763 = vrot.lane.b32.xlu0 %v4675_v18, %s6584_s29 }
 0x41d   : > { %3334 = vst.msk [vmem:[#allocation4 + $0x68] sm:$0xff] %vm3320_vm12, %v3239_v59  ;;  %4548 = vrot.lane.b32.xlu1 %v4459_v58, %s6583_s10  ;;  %v3814_v58 = vld [vmem:[#allocation3 + $0xd0] sm:$0xff] }
 0x41f   : > { %v4318_v31 = vpop.permute.xlu0 %4317  ;;  %v4885_v28 = vld [vmem:[#allocation4 + $0x48] sm:$0xff] }
 0x420   : > { %v4103_v53 = vpop.permute.xlu1 %4102  ;;  %4416 = vst.msk [vmem:[#allocation4 + $0x50] sm:$0xff] %vm4405_vm1, %v4318_v31  ;;  %6161 = vmatmul.mubr.msk.f32.gmra.mrb[8].mxu1 %vm4928_vm4, %v4885_v28  ;;  %3901 = vrot.lane.b32.xlu0 %v3810_v37, %s6578_s30  ;;  %v3164_v31 = vld [vmem:[#allocation3 + $0xc6] sm:$0xff]  ;;  %v4680_v37 = vld [vmem:[#allocation3 + $0xd3] sm:$0xff] }
 0x421   : > { %4200 = vst.msk [vmem:[#allocation4 + $0x58] sm:$0xff] %vm4188_vm0, %v4103_v53  ;;  %3252 = vrot.lane.b32.xlu1 %v3160_v55, %s6572_s12 }
 0x423   : > { %v3671_v40 = vpop.permute.xlu0 %3670 }
 0x424   : > { %v3456_v1 = vpop.permute.xlu1 %3455  ;;  %3767 = vst.msk [vmem:[#allocation4 + $0x60] sm:$0xff] %vm3754_vm14, %v3671_v40  ;;  %4765 = vrot.lane.b32.xlu0 %v4676_v26, %s6584_s29 }
 0x425   : > { %3551 = vst.msk [vmem:[#allocation4 + $0x68] sm:$0xff] %vm3537_vm13, %v3456_v1  ;;  %4116 = vrot.lane.b32.xlu1 %v4241_v23, %s6581_s21  ;;  %v3165_v1 = vld [vmem:[#allocation3 + $0xce] sm:$0xff] }
 0x427   : > { %v4535_v61 = vpop.permute.xlu0 %4534 }
 0x428   : > { %v4320_v12 = vpop.permute.xlu1 %4319  ;;  %4633 = vst.msk [vmem:[#allocation4 + $0x50] sm:$0xff] %vm4622_vm2, %v4535_v61  ;;  %3469 = vrot.lane.b32.xlu0 %v3592_v19, %s6574_s14  ;;  %v4246_v19 = vld [vmem:[#allocation3 + $0xd1] sm:$0xff] }
 0x429   : > { %4417 = vst.msk [vmem:[#allocation4 + $0x58] sm:$0xff] %vm4405_vm1, %v4320_v12  ;;  %3254 = vrot.lane.b32.xlu1 %v3161_v38, %s6572_s12  ;;  %v8763_v12 = vld [vmem:[#allocation3 + $0xd9] sm:$0xff] }
 0x42b   : > { %v3888_v5 = vpop.permute.xlu0 %3887 }
 0x42c   : > { %v3673_v16 = vpop.permute.xlu1 %3672  ;;  %3984 = vst.msk [vmem:[#allocation4 + $0x60] sm:$0xff] %vm3971_vm15, %v3888_v5  ;;  %4333 = vrot.lane.b32.xlu0 %v4243_v7, %s6582_s22 }
 0x42d   : > { %3768 = vst.msk [vmem:[#allocation4 + $0x68] sm:$0xff] %vm3754_vm14, %v3673_v16  ;;  %4118 = vrot.lane.b32.xlu1 %v4242_v51, %s6581_s21  ;;  %v3813_v51 = vld [vmem:[#allocation3 + $0xc8] sm:$0xff]  ;;  %v8770_v16 = vld [vmem:[#allocation3 + $0xd7] sm:$0xff] }
 0x42f   : > { %v4752_v27 = vpop.permute.xlu0 %4751 }
 0x430   : > { %v4537_v32 = vpop.permute.xlu1 %4536  ;;  %4850 = vst.msk [vmem:[#allocation4 + $0x50] sm:$0xff] %vm4839_vm3, %v4752_v27  ;;  %3686 = vrot.lane.b32.xlu0 %v3594_v24, %s6576_s24 }
 0x431   : > { %4634 = vst.msk [vmem:[#allocation4 + $0x58] sm:$0xff] %vm4622_vm2, %v4537_v32  ;;  %3471 = vrot.lane.b32.xlu1 %v3593_v63, %s6574_s14  ;;  %v4463_v63 = vld [vmem:[#allocation3 + $0xd2] sm:$0xff] }
 0x433   : > { %v3890_v49 = vpop.permute.xlu0 %3889 }
 0x434   : > { %v3241_v11 = vpop.permute.xlu1 %3240  ;;  %3985 = vst.msk [vmem:[#allocation4 + $0x68] sm:$0xff] %vm3971_vm15, %v3890_v49  ;;  %4550 = vrot.lane.b32.xlu0 %v4460_v45, %s6583_s10  ;;  %v4464_v45 = vld [vmem:[#allocation3 + $0xda] sm:$0xff] }
 0x435   : > { %3335 = vst.msk [vmem:[#allocation4 + $0x70] sm:$0xff] %vm3320_vm12, %v3241_v11  ;;  %4335 = vrot.lane.b32.xlu1 %v4244_v8, %s6582_s22 }
 0x437   : > { %v4754_v29 = vpop.permute.xlu0 %4753  ;;  %v4886_v20 = vld [vmem:[#allocation4 + $0x50] sm:$0xff] }
 0x438   : > { %v4105_v62 = vpop.permute.xlu1 %4104  ;;  %4851 = vst.msk [vmem:[#allocation4 + $0x58] sm:$0xff] %vm4839_vm3, %v4754_v29  ;;  %6163 = vmatprep.mubr.msk.f32.mxu1 %vm4928_vm4, %v4886_v20  ;;  %3903 = vrot.lane.b32.xlu0 %v3811_v42, %s6578_s30  ;;  %v8789_v29 = vld [vmem:[#allocation3 + $0xe1] sm:$0xff] }
 0x439   : > { %4201 = vst.msk [vmem:[#allocation4 + $0x60] sm:$0xff] %vm4188_vm0, %v4105_v62  ;;  %3688 = vrot.lane.b32.xlu1 %v3595_v21, %s6576_s24 }
 0x43b   : > { %v3458_v9 = vpop.permute.xlu0 %3457 }
 0x43c   : > { %v3243_v36 = vpop.permute.xlu1 %3242  ;;  %3552 = vst.msk [vmem:[#allocation4 + $0x70] sm:$0xff] %vm3537_vm13, %v3458_v9  ;;  %4767 = vrot.lane.b32.xlu0 %v4677_v50, %s6584_s29  ;;  %v8799_v50 = vld [vmem:[#allocation3 + $0xdf] sm:$0xff] }
 0x43d   : > { %3336 = vst.msk [vmem:[#allocation4 + $0x78] sm:$0xff] %vm3320_vm12, %v3243_v36  ;;  %4552 = vrot.lane.b32.xlu1 %v4461_v44, %s6583_s10  ;;  %v3815_v36 = vld [vmem:[#allocation3 + $0xd8] sm:$0xff] }
 0x43f   : > { %v4322_v56 = vpop.permute.xlu0 %4321  ;;  %v4887_v39 = vld [vmem:[#allocation4 + $0x58] sm:$0xff] }
 0x440   : > { %v4107_v60 = vpop.permute.xlu1 %4106  ;;  %4418 = vst.msk [vmem:[#allocation4 + $0x60] sm:$0xff] %vm4405_vm1, %v4322_v56  ;;  %6164 = vmatmul.mubr.msk.f32.gmra.mrb[10].mxu1 %vm4928_vm4, %v4887_v39  ;;  %3905 = vrot.lane.b32.xlu0 %v3812_v13, %s6578_s30  ;;  %v4681_v39 = vld [vmem:[#allocation3 + $0xdb] sm:$0xff] }
 0x441   : > { %4202 = vst.msk [vmem:[#allocation4 + $0x68] sm:$0xff] %vm4188_vm0, %v4107_v60  ;;  %3256 = vrot.lane.b32.xlu1 %v3162_v43, %s6572_s12  ;;  %v4465_v60 = vld [vmem:[#allocation3 + $0xe2] sm:$0xff] }
 0x443   : > { %v3675_v47 = vpop.permute.xlu0 %3674 }
 0x444   : > { %v3460_v52 = vpop.permute.xlu1 %3459  ;;  %3769 = vst.msk [vmem:[#allocation4 + $0x70] sm:$0xff] %vm3754_vm14, %v3675_v47  ;;  %4769 = vrot.lane.b32.xlu0 %v4678_v30, %s6584_s29  ;;  %v3166_v30 = vld [vmem:[#allocation3 + $0xd6] sm:$0xff] }
 0x445   : > { %3553 = vst.msk [vmem:[#allocation4 + $0x78] sm:$0xff] %vm3537_vm13, %v3460_v52  ;;  %4120 = vrot.lane.b32.xlu1 %v4243_v7, %s6581_s21  ;;  %v8778_v7 = vld [vmem:[%s9248_s4] ss:$0 sm:$0xff] }
 0x446   : > { %v3816_v52 = vld [vmem:[#allocation3 + $0xe0] sm:$0xff] }
 0x447   : > { %v4539_v4 = vpop.permute.xlu0 %4538 }
 0x448   : > { %v4324_v46 = vpop.permute.xlu1 %4323  ;;  %4635 = vst.msk [vmem:[#allocation4 + $0x60] sm:$0xff] %vm4622_vm2, %v4539_v4  ;;  %3473 = vrot.lane.b32.xlu0 %v3594_v24, %s6574_s14  ;;  %v5602_v4 = vld [vmem:[%s9249_s5] sm:$0xff] }
 0x449   : > { %4419 = vst.msk [vmem:[#allocation4 + $0x68] sm:$0xff] %vm4405_vm1, %v4324_v46  ;;  %3258 = vrot.lane.b32.xlu1 %v3163_v6, %s6572_s12  ;;  %v5603_v46 = vld [vmem:[%s9249_s5 + $0x8] sm:$0xff] }
 0x44b   : > { %v3892_v41 = vpop.permute.xlu0 %3891 }
 0x44c   : > { %v3677_v22 = vpop.permute.xlu1 %3676  ;;  %3986 = vst.msk [vmem:[#allocation4 + $0x70] sm:$0xff] %vm3971_vm15, %v3892_v41  ;;  %4337 = vrot.lane.b32.xlu0 %v4245_v54, %s6582_s22  ;;  %v6242_v41 = vpack.c.bf16 %v5603_v46, %v5602_v4 }
 0x44d   : > { %3770 = vst.msk [vmem:[#allocation4 + $0x78] sm:$0xff] %vm3754_vm14, %v3677_v22  ;;  %4122 = vrot.lane.b32.xlu1 %v4244_v8, %s6581_s21 }
 0x44e   : > { %6243 = vmatprep.subr.bf16.mxu0 %v6242_v41  ;;  %6246 = vmatprep.subr.bf16.mxu1 %v6242_v41 }
 0x44f   : > { %v4756_v33 = vpop.permute.xlu0 %4755  ;;  %6245 = vmatpush3.bf16.msra.mxu0 %v6242_v41  ;;  %6247 = vmatpush3.bf16.msra.mxu1 %v6242_v41  ;;  %v8893_v41 = vld [vmem:[#allocation3 + $0xf7] sm:$0xff] }
 0x450   : > { %v4541_v17 = vpop.permute.xlu1 %4540  ;;  %4852 = vst.msk [vmem:[#allocation4 + $0x60] sm:$0xff] %vm4839_vm3, %v4756_v33  ;;  %3690 = vrot.lane.b32.xlu0 %v3596_v3, %s6576_s24 }
 0x451   : > { %4636 = vst.msk [vmem:[#allocation4 + $0x68] sm:$0xff] %vm4622_vm2, %v4541_v17  ;;  %3475 = vrot.lane.b32.xlu1 %v3595_v21, %s6574_s14 }
 0x453   : > { %v3894_v23 = vpop.permute.xlu0 %3893 }
 0x454   : > { %v3245_v34 = vpop.permute.xlu1 %3244  ;;  %3987 = vst.msk [vmem:[#allocation4 + $0x78] sm:$0xff] %vm3971_vm15, %v3894_v23  ;;  %4554 = vrot.lane.b32.xlu0 %v4462_v10, %s6583_s10  ;;  %v4682_v23 = vld [vmem:[#allocation3 + $0xe3] sm:$0xff] }
 0x455   : > { %3337 = vst.msk [vmem:[#allocation4 + $0x80] sm:$0xff] %vm3320_vm12, %v3245_v34  ;;  %4339 = vrot.lane.b32.xlu1 %v4246_v19, %s6582_s22 }
 0x457   : > { %v4758_v25 = vpop.permute.xlu0 %4757  ;;  %v4888_v48 = vld [vmem:[#allocation4 + $0x60] sm:$0xff] }
 0x458   : > { %v4109_v35 = vpop.permute.xlu1 %4108  ;;  %4853 = vst.msk [vmem:[#allocation4 + $0x68] sm:$0xff] %vm4839_vm3, %v4758_v25  ;;  %6166 = vmatprep.mubr.msk.f32.mxu1 %vm4928_vm4, %v4888_v48  ;;  %3907 = vrot.lane.b32.xlu0 %v3813_v51, %s6578_s30 }
 0x459   : > { %4203 = vst.msk [vmem:[#allocation4 + $0x70] sm:$0xff] %vm4188_vm0, %v4109_v35  ;;  %3692 = vrot.lane.b32.xlu1 %v3597_v2, %s6576_s24  ;;  %v8830_v35 = vld [vmem:[#allocation3 + $0xe9] sm:$0xff] }
 0x45b   : > { %v3462_v57 = vpop.permute.xlu0 %3461 }
 0x45c   : > { %v3247_v15 = vpop.permute.xlu1 %3246  ;;  %3554 = vst.msk [vmem:[#allocation4 + $0x80] sm:$0xff] %vm3537_vm13, %v3462_v57  ;;  %4771 = vrot.lane.b32.xlu0 %v4679_v0, %s6584_s29 }
 0x45d   : > { %3338 = vst.msk [vmem:[#allocation4 + $0x88] sm:$0xff] %vm3320_vm12, %v3247_v15  ;;  %4556 = vrot.lane.b32.xlu1 %v4463_v63, %s6583_s10  ;;  %v8839_v63 = vld [vmem:[#allocation3 + $0xe7] sm:$0xff] }
 0x45f   : > { %v4326_v14 = vpop.permute.xlu0 %4325  ;;  %v4889_v59 = vld [vmem:[#allocation4 + $0x68] sm:$0xff] }
 0x460   : > { %v4111_v18 = vpop.permute.xlu1 %4110  ;;  %4420 = vst.msk [vmem:[#allocation4 + $0x70] sm:$0xff] %vm4405_vm1, %v4326_v14  ;;  %6167 = vmatmul.mubr.msk.f32.gmra.mrb[12].mxu1 %vm4928_vm4, %v4889_v59  ;;  %3909 = vrot.lane.b32.xlu0 %v3814_v58, %s6578_s30 }
 0x461   : > { %4204 = vst.msk [vmem:[#allocation4 + $0x78] sm:$0xff] %vm4188_vm0, %v4111_v18  ;;  %3260 = vrot.lane.b32.xlu1 %v3164_v31, %s6572_s12 }
 0x463   : > { %v3679_v28 = vpop.permute.xlu0 %3678 }
 0x464   : > { %v3464_v53 = vpop.permute.xlu1 %3463  ;;  %3771 = vst.msk [vmem:[#allocation4 + $0x80] sm:$0xff] %vm3754_vm14, %v3679_v28  ;;  %4773 = vrot.lane.b32.xlu0 %v4680_v37, %s6584_s29 }
 0x465   : > { %3555 = vst.msk [vmem:[#allocation4 + $0x88] sm:$0xff] %vm3537_vm13, %v3464_v53  ;;  %4124 = vrot.lane.b32.xlu1 %v4245_v54, %s6581_s21  ;;  %v4466_v53 = vld [vmem:[#allocation3 + $0xea] sm:$0xff] }
 0x467   : > { %v4543_v55 = vpop.permute.xlu0 %4542 }
 0x468   : > { %v4328_v40 = vpop.permute.xlu1 %4327  ;;  %4637 = vst.msk [vmem:[#allocation4 + $0x70] sm:$0xff] %vm4622_vm2, %v4543_v55  ;;  %3477 = vrot.lane.b32.xlu0 %v3596_v3, %s6574_s14  ;;  %v8853_v55 = vld [vmem:[#allocation3 + $0xf1] sm:$0xff] }
 0x469   : > { %4421 = vst.msk [vmem:[#allocation4 + $0x78] sm:$0xff] %vm4405_vm1, %v4328_v40  ;;  %3262 = vrot.lane.b32.xlu1 %v3165_v1, %s6572_s12 }
 0x46b   : > { %v3896_v26 = vpop.permute.xlu0 %3895 }
 0x46c   : > { %v3681_v61 = vpop.permute.xlu1 %3680  ;;  %3988 = vst.msk [vmem:[#allocation4 + $0x80] sm:$0xff] %vm3971_vm15, %v3896_v26  ;;  %4341 = vrot.lane.b32.xlu0 %v8763_v12, %s6582_s22 }
 0x46d   : > { %3772 = vst.msk [vmem:[#allocation4 + $0x88] sm:$0xff] %vm3754_vm14, %v3681_v61  ;;  %4126 = vrot.lane.b32.xlu1 %v4246_v19, %s6581_s21  ;;  %v3167_v19 = vld [vmem:[#allocation3 + $0xde] sm:$0xff] }
 0x46f   : > { %v4760_v38 = vpop.permute.xlu0 %4759 }
 0x470   : > { %v4545_v5 = vpop.permute.xlu1 %4544  ;;  %4854 = vst.msk [vmem:[#allocation4 + $0x70] sm:$0xff] %vm4839_vm3, %v4760_v38  ;;  %3694 = vrot.lane.b32.xlu0 %v8770_v16, %s6576_s24  ;;  %v3817_v38 = vld [vmem:[#allocation3 + $0xe8] sm:$0xff] }
 0x471   : > { %4638 = vst.msk [vmem:[#allocation4 + $0x78] sm:$0xff] %vm4622_vm2, %v4545_v5  ;;  %3479 = vrot.lane.b32.xlu1 %v3597_v2, %s6574_s14  ;;  %v3601_v5 = vld [vmem:[#allocation3 + $0xef] sm:$0xff] }
 0x473   : > { %v6150_v27 = vpop.f32.mrb[0].mxu1  ;;  %v3898_v32 = vpop.permute.xlu0 %3897 }
 0x474   : > { %v3249_v24 = vpop.permute.xlu1 %3248  ;;  %v8782_v49 = vadd.f32 %v6150_v27, %v8778_v7  ;;  %3989 = vst.msk [vmem:[#allocation4 + $0x88] sm:$0xff] %vm3971_vm15, %v3898_v32  ;;  %v5103_v11 = vpop.f32.mrb[1].mxu1  ;;  %4558 = vrot.lane.b32.xlu0 %v4464_v45, %s6583_s10 }
 0x475   : > { %3339 = vst.msk [vmem:[#allocation4 + $0x90] sm:$0xff] %vm3320_vm12, %v3249_v24  ;;  %v8787_v8 = vadd.f32 %v8778_v7, %v5103_v11  ;;  %4343 = vrot.lane.b32.xlu1 %v8789_v29, %s6582_s22  ;;  %v4683_v24 = vld [vmem:[#allocation3 + $0xeb] sm:$0xff] }
 0x476   : > { %v5923_v20 = vmul.f32 -1.442695, %v8782_v49 }
 0x477   : > { %v5922_v62 = vmul.f32 -1.442695, %v8787_v8  ;;  %v4762_v42 = vpop.permute.xlu0 %4761  ;;  %v4890_v21 = vld [vmem:[#allocation4 + $0x70] sm:$0xff] }
 0x478   : > { %6417 = vpow2.f32 %v5923_v20  ;;  %v4113_v9 = vpop.permute.xlu1 %4112  ;;  %4855 = vst.msk [vmem:[#allocation4 + $0x78] sm:$0xff] %vm4839_vm3, %v4762_v42  ;;  %6169 = vmatprep.mubr.msk.f32.mxu1 %vm4928_vm4, %v4890_v21  ;;  %3911 = vrot.lane.b32.xlu0 %v3815_v36, %s6578_s30  ;;  %v3168_v20 = vld [vmem:[#allocation3 + $0xe6] sm:$0xff] }
 0x479   : > { %6419 = vpow2.f32 %v5922_v62  ;;  %4205 = vst.msk [vmem:[#allocation4 + $0x80] sm:$0xff] %vm4188_vm0, %v4113_v9  ;;  %3696 = vrot.lane.b32.xlu1 %v8799_v50, %s6576_s24 }
 0x47b   : > { %v3466_v44 = vpop.permute.xlu0 %3465 }
 0x47c   : > { %v3251_v56 = vpop.permute.xlu1 %3250  ;;  %3556 = vst.msk [vmem:[#allocation4 + $0x90] sm:$0xff] %vm3537_vm13, %v3466_v44  ;;  %4775 = vrot.lane.b32.xlu0 %v4681_v39, %s6584_s29 }
 0x47d   : > { %3340 = vst.msk [vmem:[#allocation4 + $0x98] sm:$0xff] %vm3320_vm12, %v3251_v56  ;;  %4560 = vrot.lane.b32.xlu1 %v4465_v60, %s6583_s10  ;;  %v4684_v56 = vld [vmem:[#allocation3 + $0xf3] sm:$0xff] }
 0x47f   : > { %v4330_v13 = vpop.permute.xlu0 %4329  ;;  %v4891_v43 = vld [vmem:[#allocation4 + $0x78] sm:$0xff] }
 0x480   : > { %v4115_v47 = vpop.permute.xlu1 %4114  ;;  %4422 = vst.msk [vmem:[#allocation4 + $0x80] sm:$0xff] %vm4405_vm1, %v4330_v13  ;;  %6170 = vmatmul.mubr.msk.f32.gmra.mrb[14].mxu1 %vm4928_vm4, %v4891_v43  ;;  %3913 = vrot.lane.b32.xlu0 %v3816_v52, %s6578_s30  ;;  %v3169_v13 = vld [vmem:[#allocation3 + $0xee] sm:$0xff]  ;;  %v8885_v52 = vld [vmem:[#allocation3 + $0xf9] sm:$0xff] }
 0x481   : > { %4206 = vst.msk [vmem:[#allocation4 + $0x88] sm:$0xff] %vm4188_vm0, %v4115_v47  ;;  %3264 = vrot.lane.b32.xlu1 %v3166_v30, %s6572_s12 }
 0x482   : > { %v6418_v6 = vpop.eup %6417 }
 0x483   : > { %v6420_v22 = vpop.eup %6419  ;;  %v5391_v54 = vadd.f32 1.0, %v6418_v6  ;;  %v3683_v33 = vpop.permute.xlu0 %3682 }
 0x484   : > { %v5390_v17 = vadd.f32 1.0, %v6420_v22  ;;  %v3468_v3 = vpop.permute.xlu1 %3467  ;;  %3773 = vst.msk [vmem:[#allocation4 + $0x90] sm:$0xff] %vm3754_vm14, %v3683_v33  ;;  %4777 = vrot.lane.b32.xlu0 %v4682_v23, %s6584_s29  ;;  %v4468_v23 = vld [vmem:[#allocation3 + $0xfa] sm:$0xff] }
 0x485   : > { %6421 = vrcp.f32 %v5391_v54  ;;  %3557 = vst.msk [vmem:[#allocation4 + $0x98] sm:$0xff] %vm3537_vm13, %v3468_v3  ;;  %4128 = vrot.lane.b32.xlu1 %v8763_v12, %s6581_s21 }
 0x486   : > { %6423 = vrcp.f32 %v5390_v17 }
 0x487   : > { %v4547_v34 = vpop.permute.xlu0 %4546 }
 0x488   : > { %v4332_v10 = vpop.permute.xlu1 %4331  ;;  %4639 = vst.msk [vmem:[#allocation4 + $0x80] sm:$0xff] %vm4622_vm2, %v4547_v34  ;;  %3481 = vrot.lane.b32.xlu0 %v8770_v16, %s6574_s14 }
 0x489   : > { %4423 = vst.msk [vmem:[#allocation4 + $0x88] sm:$0xff] %vm4405_vm1, %v4332_v10  ;;  %3266 = vrot.lane.b32.xlu1 %v3167_v19, %s6572_s12  ;;  %v4252_v10 = vld [vmem:[#allocation3 + $0x101] sm:$0xff] }
 0x48b   : > { %v3900_v25 = vpop.permute.xlu0 %3899 }
 0x48c   : > { %v3685_v48 = vpop.permute.xlu1 %3684  ;;  %3990 = vst.msk [vmem:[#allocation4 + $0x90] sm:$0xff] %vm3971_vm15, %v3900_v25  ;;  %4345 = vrot.lane.b32.xlu0 %v8830_v35, %s6582_s22 }
 0x48d   : > { %3774 = vst.msk [vmem:[#allocation4 + $0x98] sm:$0xff] %vm3754_vm14, %v3685_v48  ;;  %4130 = vrot.lane.b32.xlu1 %v8789_v29, %s6581_s21  ;;  %v3818_v29 = vld [vmem:[#allocation3 + $0xf0] sm:$0xff] }
 0x48f   : > { %v6422_v51 = vpop.eup %6421  ;;  %v4764_v2 = vpop.permute.xlu0 %4763 }
 0x490   : > { %v6424_v57 = vpop.eup %6423  ;;  %v5499_v15 = vmul.f32 %v6422_v51, %v8782_v49  ;;  %v4549_v0 = vpop.permute.xlu1 %4548  ;;  %4856 = vst.msk [vmem:[#allocation4 + $0x80] sm:$0xff] %vm4839_vm3, %v4764_v2  ;;  %3698 = vrot.lane.b32.xlu0 %v8839_v63, %s6576_s24  ;;  %v4467_v49 = vld [vmem:[#allocation3 + $0xf2] sm:$0xff] }
 0x491   : > { %v5498_v14 = vmul.f32 %v6424_v57, %v8787_v8  ;;  %4640 = vst.msk [vmem:[#allocation4 + $0x88] sm:$0xff] %vm4622_vm2, %v4549_v0  ;;  %3483 = vrot.lane.b32.xlu1 %v8799_v50, %s6574_s14  ;;  %v3819_v2 = vld [vmem:[#allocation3 + $0xf8] sm:$0xff] }
 0x492   : > { %5536 = vst.msk [vmem:[#allocation5 + $0x8] sm:$0xff] %vm5534_vm5, %v5499_v15  ;;  %v3603_v57 = vld [vmem:[#allocation3 + $0xff] sm:$0xff] }
 0x493   : > { %5535 = vst.msk [vmem:[#allocation5] sm:$0xff] %vm5534_vm5, %v5498_v14  ;;  %v3902_v59 = vpop.permute.xlu0 %3901  ;;  %v6153_v18 = vpop.f32.mrb[2].mxu1  ;;  %v4469_v14 = vld [vmem:[#allocation3 + $0x102] sm:$0xff] }
 0x494   : > { %v3253_v58 = vpop.permute.xlu1 %3252  ;;  %3991 = vst.msk [vmem:[#allocation4 + $0x98] sm:$0xff] %vm3971_vm15, %v3902_v59  ;;  %v5119_v31 = vadd.f32 %v6153_v18, %v8778_v7  ;;  %v5113_v28 = vpop.f32.mrb[3].mxu1  ;;  %4562 = vrot.lane.b32.xlu0 %v4466_v53, %s6583_s10 }
 0x495   : > { %3341 = vst.msk [vmem:[#allocation4 + $0xa0] sm:$0xff] %vm3320_vm12, %v3253_v58  ;;  %v5114_v37 = vadd.f32 %v8778_v7, %v5113_v28  ;;  %4347 = vrot.lane.b32.xlu1 %v8853_v55, %s6582_s22  ;;  %v3170_v28 = vld [vmem:[#allocation3 + $0xf6] sm:$0xff] }
 0x496   : > { %v5925_v40 = vmul.f32 -1.442695, %v5119_v31  ;;  %v3820_v31 = vld [vmem:[#allocation3 + $0x100] sm:$0xff] }
 0x497   : > { %v5924_v1 = vmul.f32 -1.442695, %v5114_v37  ;;  %v4766_v26 = vpop.permute.xlu0 %4765  ;;  %v4892_v61 = vld [vmem:[#allocation4 + $0x80] sm:$0xff] }
 0x498   : > { %6425 = vpow2.f32 %v5925_v40  ;;  %v4117_v12 = vpop.permute.xlu1 %4116  ;;  %4857 = vst.msk [vmem:[#allocation4 + $0x88] sm:$0xff] %vm4839_vm3, %v4766_v26  ;;  %6172 = vmatprep.mubr.msk.f32.mxu1 %vm4928_vm4, %v4892_v61  ;;  %3915 = vrot.lane.b32.xlu0 %v3817_v38, %s6578_s30  ;;  %v4686_v61 = vld [vmem:[#allocation3 + $0x103] sm:$0xff] }
 0x499   : > { %6427 = vpow2.f32 %v5924_v1  ;;  %4207 = vst.msk [vmem:[#allocation4 + $0x90] sm:$0xff] %vm4188_vm0, %v4117_v12  ;;  %3700 = vrot.lane.b32.xlu1 %v3601_v5, %s6576_s24 }
 0x49a   : > { %v5571_v16 = vld [vmem:[#allocation5] ss:$2 sm:$0xff] }
 0x49b   : > { %v3470_v27 = vpop.permute.xlu0 %3469  ;;  %5572 = vst.msk [vmem:[#allocation6] sm:$0xff] %vm5534_vm5, %v5571_v16 }
 0x49c   : > { %v3255_v32 = vpop.permute.xlu1 %3254  ;;  %3558 = vst.msk [vmem:[#allocation4 + $0xa0] sm:$0xff] %vm3537_vm13, %v3470_v27  ;;  %4779 = vrot.lane.b32.xlu0 %v4683_v24, %s6584_s29 }
 0x49d   : > { %3342 = vst.msk [vmem:[#allocation4 + $0xa8] sm:$0xff] %vm3320_vm12, %v3255_v32  ;;  %4564 = vrot.lane.b32.xlu1 %v4467_v49, %s6583_s10  ;;  %v8936_v32 = vld [vmem:[#allocation3 + $0x109] sm:$0xff] }
 0x49f   : > { %v4334_v11 = vpop.permute.xlu0 %4333  ;;  %v4893_v45 = vld [vmem:[#allocation4 + $0x88] sm:$0xff] }
 0x4a0   : > { %v4119_v8 = vpop.permute.xlu1 %4118  ;;  %4424 = vst.msk [vmem:[#allocation4 + $0x90] sm:$0xff] %vm4405_vm1, %v4334_v11  ;;  %6173 = vmatmul.mubr.msk.f32.gmra.mrb[16].mxu1 %vm4928_vm4, %v4893_v45  ;;  %3917 = vrot.lane.b32.xlu0 %v3818_v29, %s6578_s30  ;;  %v8944_v29 = vld [vmem:[#allocation3 + $0x107] sm:$0xff] }
 0x4a1   : > { %4208 = vst.msk [vmem:[#allocation4 + $0x98] sm:$0xff] %vm4188_vm0, %v4119_v8  ;;  %3268 = vrot.lane.b32.xlu1 %v3168_v20, %s6572_s12 }
 0x4a2   : > { %v6426_v62 = vpop.eup %6425  ;;  %v5594_v42 = vld [vmem:[#allocation6] sm:$0xff] }
 0x4a3   : > { %v6428_v21 = vpop.eup %6427  ;;  %v5393_v9 = vadd.f32 1.0, %v6426_v62  ;;  %6206 = vmatprep.mubr.msk.f32.mxu0 %vm5534_vm5, %v5594_v42  ;;  %v3687_v36 = vpop.permute.xlu0 %3686 }
 0x4a4   : > { %v5392_v50 = vadd.f32 1.0, %v6428_v21  ;;  %v3472_v44 = vpop.permute.xlu1 %3471  ;;  %3775 = vst.msk [vmem:[#allocation4 + $0xa0] sm:$0xff] %vm3754_vm14, %v3687_v36  ;;  %4781 = vrot.lane.b32.xlu0 %v4684_v56, %s6584_s29  ;;  %v4254_v56 = vld [vmem:[#allocation3 + $0x111] sm:$0xff] }
 0x4a5   : > { %6429 = vrcp.f32 %v5393_v9  ;;  %3559 = vst.msk [vmem:[#allocation4 + $0xa8] sm:$0xff] %vm3537_vm13, %v3472_v44  ;;  %4132 = vrot.lane.b32.xlu1 %v8830_v35, %s6581_s21 }
 0x4a6   : > { %6431 = vrcp.f32 %v5392_v50  ;;  %v4470_v50 = vld [vmem:[#allocation3 + $0x10a] sm:$0xff] }
 0x4a7   : > { %v4551_v39 = vpop.permute.xlu0 %4550 }
 0x4a8   : > { %v4336_v60 = vpop.permute.xlu1 %4335  ;;  %4641 = vst.msk [vmem:[#allocation4 + $0x90] sm:$0xff] %vm4622_vm2, %v4551_v39  ;;  %3485 = vrot.lane.b32.xlu0 %v8839_v63, %s6574_s14  ;;  %v4685_v63 = vld [vmem:[#allocation3 + $0xfb] sm:$0xff] }
 0x4a9   : > { %4425 = vst.msk [vmem:[#allocation4 + $0x98] sm:$0xff] %vm4405_vm1, %v4336_v60  ;;  %3270 = vrot.lane.b32.xlu1 %v3169_v13, %s6572_s12 }
 0x4ab   : > { %v3904_v43 = vpop.permute.xlu0 %3903 }
 0x4ac   : > { %v3689_v47 = vpop.permute.xlu1 %3688  ;;  %3992 = vst.msk [vmem:[#allocation4 + $0xa0] sm:$0xff] %vm3971_vm15, %v3904_v43  ;;  %4349 = vrot.lane.b32.xlu0 %v8885_v52, %s6582_s22 }
 0x4ad   : > { %3776 = vst.msk [vmem:[#allocation4 + $0xa8] sm:$0xff] %vm3754_vm14, %v3689_v47  ;;  %4134 = vrot.lane.b32.xlu1 %v8853_v55, %s6581_s21 }
 0x4af   : > { %v6430_v30 = vpop.eup %6429  ;;  %v4768_v4 = vpop.permute.xlu0 %4767 }
 0x4b0   : > { %v6432_v46 = vpop.eup %6431  ;;  %v4553_v6 = vpop.permute.xlu1 %4552  ;;  %4858 = vst.msk [vmem:[#allocation4 + $0x90] sm:$0xff] %vm4839_vm3, %v4768_v4  ;;  %3702 = vrot.lane.b32.xlu0 %v8893_v41, %s6576_s24  ;;  %v3605_v30 = vld [vmem:[#allocation3 + $0x10f] sm:$0xff] }
 0x4b1   : > { %4642 = vst.msk [vmem:[#allocation4 + $0x98] sm:$0xff] %vm4622_vm2, %v4553_v6  ;;  %3487 = vrot.lane.b32.xlu1 %v3601_v5, %s6574_s14  ;;  %v3171_v5 = vld [vmem:[#allocation3 + $0xfe] sm:$0xff]  ;;  %v4687_v6 = vld [vmem:[#allocation3 + $0x10b] sm:$0xff] }
 0x4b3   : > { %v3906_v22 = vpop.permute.xlu0 %3905  ;;  %v6156_v54 = vpop.f32.mrb[4].mxu1 }
 0x4b4   : > { %v3257_v33 = vpop.permute.xlu1 %3256  ;;  %3993 = vst.msk [vmem:[#allocation4 + $0xa8] sm:$0xff] %vm3971_vm15, %v3906_v22  ;;  %v8901_v17 = vadd.f32 %v6156_v54, %v8778_v7  ;;  %v5123_v3 = vpop.f32.mrb[5].mxu1  ;;  %4566 = vrot.lane.b32.xlu0 %v4468_v23, %s6583_s10 }
 0x4b5   : > { %3343 = vst.msk [vmem:[#allocation4 + $0xb0] sm:$0xff] %vm3320_vm12, %v3257_v33  ;;  %v8905_v34 = vadd.f32 %v8778_v7, %v5123_v3  ;;  %4351 = vrot.lane.b32.xlu1 %v4252_v10, %s6582_s22  ;;  %v3172_v3 = vld [vmem:[#allocation3 + $0x106] sm:$0xff] }
 0x4b6   : > { %v5927_v19 = vmul.f32 -1.442695, %v8901_v17 }
 0x4b7   : > { %v5926_v25 = vmul.f32 -1.442695, %v8905_v34  ;;  %v4770_v48 = vpop.permute.xlu0 %4769  ;;  %v4894_v35 = vld [vmem:[#allocation4 + $0x90] sm:$0xff] }
 0x4b8   : > { %6433 = vpow2.f32 %v5927_v19  ;;  %v4121_v51 = vpop.permute.xlu1 %4120  ;;  %4859 = vst.msk [vmem:[#allocation4 + $0x98] sm:$0xff] %vm4839_vm3, %v4770_v48  ;;  %6175 = vmatprep.mubr.msk.f32.mxu1 %vm4928_vm4, %v4894_v35  ;;  %3919 = vrot.lane.b32.xlu0 %v3819_v2, %s6578_s30  ;;  %v4688_v35 = vld [vmem:[#allocation3 + $0x113] sm:$0xff] }
 0x4b9   : > { %6435 = vpow2.f32 %v5926_v25  ;;  %4209 = vst.msk [vmem:[#allocation4 + $0xa0] sm:$0xff] %vm4188_vm0, %v4121_v51  ;;  %3704 = vrot.lane.b32.xlu1 %v3603_v57, %s6576_s24 }
 0x4bb   : > { %v3474_v15 = vpop.permute.xlu0 %3473 }
 0x4bc   : > { %v3259_v0 = vpop.permute.xlu1 %3258  ;;  %3560 = vst.msk [vmem:[#allocation4 + $0xb0] sm:$0xff] %vm3537_vm13, %v3474_v15  ;;  %4783 = vrot.lane.b32.xlu0 %v4685_v63, %s6584_s29  ;;  %v4255_v63 = vld [vmem:[#allocation3 + $0x119] sm:$0xff] }
 0x4bd   : > { %3344 = vst.msk [vmem:[#allocation4 + $0xb8] sm:$0xff] %vm3320_vm12, %v3259_v0  ;;  %4568 = vrot.lane.b32.xlu1 %v4469_v14, %s6583_s10 }
 0x4bf   : > { %v4338_v59 = vpop.permute.xlu0 %4337  ;;  %v4895_v18 = vld [vmem:[#allocation4 + $0x98] sm:$0xff] }
 0x4c0   : > { %v4123_v58 = vpop.permute.xlu1 %4122  ;;  %4426 = vst.msk [vmem:[#allocation4 + $0xa0] sm:$0xff] %vm4405_vm1, %v4338_v59  ;;  %6176 = vmatmul.mubr.msk.f32.gmra.mrb[18].mxu1 %vm4928_vm4, %v4895_v18  ;;  %3921 = vrot.lane.b32.xlu0 %v3820_v31, %s6578_s30  ;;  %v8991_v31 = vld [vmem:[#allocation3 + $0x117] sm:$0xff] }
 0x4c1   : > { %4210 = vst.msk [vmem:[#allocation4 + $0xa8] sm:$0xff] %vm4188_vm0, %v4123_v58  ;;  %3272 = vrot.lane.b32.xlu1 %v3170_v28, %s6572_s12 }
 0x4c2   : > { %v6434_v53 = vpop.eup %6433 }
 0x4c3   : > { %v6436_v37 = vpop.eup %6435  ;;  %v5395_v55 = vadd.f32 1.0, %v6434_v53  ;;  %v3691_v40 = vpop.permute.xlu0 %3690 }
 0x4c4   : > { %v5394_v1 = vadd.f32 1.0, %v6436_v37  ;;  %v3476_v26 = vpop.permute.xlu1 %3475  ;;  %3777 = vst.msk [vmem:[#allocation4 + $0xb0] sm:$0xff] %vm3754_vm14, %v3691_v40  ;;  %4785 = vrot.lane.b32.xlu0 %v4686_v61, %s6584_s29 }
 0x4c5   : > { %6437 = vrcp.f32 %v5395_v55  ;;  %3561 = vst.msk [vmem:[#allocation4 + $0xb8] sm:$0xff] %vm3537_vm13, %v3476_v26  ;;  %4136 = vrot.lane.b32.xlu1 %v8885_v52, %s6581_s21  ;;  %v3821_v52 = vld [vmem:[#allocation3 + $0x108] sm:$0xff]  ;;  %v4472_v26 = vld [vmem:[#allocation3 + $0x11a] sm:$0xff] }
 0x4c6   : > { %6439 = vrcp.f32 %v5394_v1 }
 0x4c7   : > { %v4555_v12 = vpop.permute.xlu0 %4554 }
 0x4c8   : > { %v4340_v38 = vpop.permute.xlu1 %4339  ;;  %4643 = vst.msk [vmem:[#allocation4 + $0xa0] sm:$0xff] %vm4622_vm2, %v4555_v12  ;;  %3489 = vrot.lane.b32.xlu0 %v8893_v41, %s6574_s14  ;;  %v4471_v41 = vld [vmem:[#allocation3 + $0x112] sm:$0xff]  ;;  %v4256_v12 = vld [vmem:[#allocation3 + $0x121] sm:$0xff] }
 0x4c9   : > { %4427 = vst.msk [vmem:[#allocation4 + $0xa8] sm:$0xff] %vm4405_vm1, %v4340_v38  ;;  %3274 = vrot.lane.b32.xlu1 %v3171_v5, %s6572_s12 }
 0x4cb   : > { %v3908_v16 = vpop.permute.xlu0 %3907 }
 0x4cc   : > { %v3693_v27 = vpop.permute.xlu1 %3692  ;;  %3994 = vst.msk [vmem:[#allocation4 + $0xb0] sm:$0xff] %vm3971_vm15, %v3908_v16  ;;  %4353 = vrot.lane.b32.xlu0 %v8936_v32, %s6582_s22 }
 0x4cd   : > { %3778 = vst.msk [vmem:[#allocation4 + $0xb8] sm:$0xff] %vm3754_vm14, %v3693_v27  ;;  %4138 = vrot.lane.b32.xlu1 %v4252_v10, %s6581_s21 }
 0x4cf   : > { %v6438_v24 = vpop.eup %6437  ;;  %v4772_v49 = vpop.permute.xlu0 %4771 }
 0x4d0   : > { %v6440_v11 = vpop.eup %6439  ;;  %v5503_v45 = vmul.f32 %v6438_v24, %v8901_v17  ;;  %v4557_v8 = vpop.permute.xlu1 %4556  ;;  %4860 = vst.msk [vmem:[#allocation4 + $0xa0] sm:$0xff] %vm4839_vm3, %v4772_v49  ;;  %3706 = vrot.lane.b32.xlu0 %v8944_v29, %s6576_s24  ;;  %v3822_v17 = vld [vmem:[#allocation3 + $0x110] sm:$0xff]  ;;  %v3823_v24 = vld [vmem:[#allocation3 + $0x118] sm:$0xff] }
 0x4d1   : > { %v5502_v20 = vmul.f32 %v6440_v11, %v8905_v34  ;;  %4644 = vst.msk [vmem:[#allocation4 + $0xa8] sm:$0xff] %vm4622_vm2, %v4557_v8  ;;  %3491 = vrot.lane.b32.xlu1 %v3603_v57, %s6574_s14  ;;  %v3173_v57 = vld [vmem:[#allocation3 + $0x10e] sm:$0xff]  ;;  %v9011_v49 = vld [vmem:[#allocation3 + $0x11f] sm:$0xff] }
 0x4d2   : > { %5540 = vst.msk [vmem:[#allocation5 + $0x28] sm:$0xff] %vm5534_vm5, %v5503_v45 }
 0x4d3   : > { %5539 = vst.msk [vmem:[#allocation5 + $0x20] sm:$0xff] %vm5534_vm5, %v5502_v20  ;;  %v3910_v62 = vpop.permute.xlu0 %3909  ;;  %v6159_v42 = vpop.f32.mrb[6].mxu1  ;;  %v4473_v20 = vld [vmem:[#allocation3 + $0x122] sm:$0xff] }
 0x4d4   : > { %v3261_v21 = vpop.permute.xlu1 %3260  ;;  %3995 = vst.msk [vmem:[#allocation4 + $0xb8] sm:$0xff] %vm3971_vm15, %v3910_v62  ;;  %v5139_v9 = vadd.f32 %v6159_v42, %v8778_v7  ;;  %v5133_v36 = vpop.f32.mrb[7].mxu1  ;;  %4570 = vrot.lane.b32.xlu0 %v4470_v50, %s6583_s10 }
 0x4d5   : > { %3345 = vst.msk [vmem:[#allocation4 + $0xc0] sm:$0xff] %vm3320_vm12, %v3261_v21  ;;  %v8957_v44 = vadd.f32 %v8778_v7, %v5133_v36  ;;  %4355 = vrot.lane.b32.xlu1 %v4254_v56, %s6582_s22 }
 0x4d6   : > { %v5929_v39 = vmul.f32 -1.442695, %v5139_v9  ;;  %v3824_v9 = vld [vmem:[#allocation3 + $0x120] sm:$0xff] }
 0x4d7   : > { %v5928_v60 = vmul.f32 -1.442695, %v8957_v44  ;;  %v4774_v13 = vpop.permute.xlu0 %4773  ;;  %v4896_v43 = vld [vmem:[#allocation4 + $0xa0] sm:$0xff] }
 0x4d8   : > { %6441 = vpow2.f32 %v5929_v39  ;;  %v4125_v47 = vpop.permute.xlu1 %4124  ;;  %4861 = vst.msk [vmem:[#allocation4 + $0xa8] sm:$0xff] %vm4839_vm3, %v4774_v13  ;;  %6178 = vmatprep.mubr.msk.f32.mxu1 %vm4928_vm4, %v4896_v43  ;;  %3923 = vrot.lane.b32.xlu0 %v3821_v52, %s6578_s30  ;;  %v4690_v43 = vld [vmem:[#allocation3 + $0x123] sm:$0xff] }
 0x4d9   : > { %6443 = vpow2.f32 %v5928_v60  ;;  %4211 = vst.msk [vmem:[#allocation4 + $0xb0] sm:$0xff] %vm4188_vm0, %v4125_v47  ;;  %3708 = vrot.lane.b32.xlu1 %v3605_v30, %s6576_s24 }
 0x4db   : > { %v3478_v4 = vpop.permute.xlu0 %3477 }
 0x4dc   : > { %v3263_v46 = vpop.permute.xlu1 %3262  ;;  %3562 = vst.msk [vmem:[#allocation4 + $0xc0] sm:$0xff] %vm3537_vm13, %v3478_v4  ;;  %4787 = vrot.lane.b32.xlu0 %v4687_v6, %s6584_s29  ;;  %v9035_v4 = vld [vmem:[#allocation3 + $0x129] sm:$0xff] }
 0x4dd   : > { %3346 = vst.msk [vmem:[#allocation4 + $0xc8] sm:$0xff] %vm3320_vm12, %v3263_v46  ;;  %4572 = vrot.lane.b32.xlu1 %v4471_v41, %s6583_s10  ;;  %v4475_v41 = vld [vmem:[#allocation3 + $0x132] sm:$0xff] }
 0x4df   : > { %v4342_v22 = vpop.permute.xlu0 %4341  ;;  %v4897_v54 = vld [vmem:[#allocation4 + $0xa8] sm:$0xff] }
 0x4e0   : > { %v4127_v33 = vpop.permute.xlu1 %4126  ;;  %4428 = vst.msk [vmem:[#allocation4 + $0xb0] sm:$0xff] %vm4405_vm1, %v4342_v22  ;;  %6179 = vmatmul.mubr.msk.f32.gmra.mrb[20].mxu1 %vm4928_vm4, %v4897_v54  ;;  %3925 = vrot.lane.b32.xlu0 %v3822_v17, %s6578_s30  ;;  %v4474_v22 = vld [vmem:[#allocation3 + $0x12a] sm:$0xff] }
 0x4e1   : > { %4212 = vst.msk [vmem:[#allocation4 + $0xb8] sm:$0xff] %vm4188_vm0, %v4127_v33  ;;  %3276 = vrot.lane.b32.xlu1 %v3172_v3, %s6572_s12 }
 0x4e2   : > { %v6442_v23 = vpop.eup %6441 }
 0x4e3   : > { %v6444_v34 = vpop.eup %6443  ;;  %v5397_v10 = vadd.f32 1.0, %v6442_v23  ;;  %v3695_v19 = vpop.permute.xlu0 %3694 }
 0x4e4   : > { %v5396_v25 = vadd.f32 1.0, %v6444_v34  ;;  %v3480_v48 = vpop.permute.xlu1 %3479  ;;  %3779 = vst.msk [vmem:[#allocation4 + $0xc0] sm:$0xff] %vm3754_vm14, %v3695_v19  ;;  %4789 = vrot.lane.b32.xlu0 %v4688_v35, %s6584_s29  ;;  %v4692_v34 = vld [vmem:[#allocation3 + $0x133] sm:$0xff] }
 0x4e5   : > { %6445 = vrcp.f32 %v5397_v10  ;;  %3563 = vst.msk [vmem:[#allocation4 + $0xc8] sm:$0xff] %vm3537_vm13, %v3480_v48  ;;  %4140 = vrot.lane.b32.xlu1 %v8936_v32, %s6581_s21  ;;  %v4691_v10 = vld [vmem:[#allocation3 + $0x12b] sm:$0xff] }
 0x4e6   : > { %6447 = vrcp.f32 %v5396_v25 }
 0x4e7   : > { %v4559_v51 = vpop.permute.xlu0 %4558 }
 0x4e8   : > { %v4344_v2 = vpop.permute.xlu1 %4343  ;;  %4645 = vst.msk [vmem:[#allocation4 + $0xb0] sm:$0xff] %vm4622_vm2, %v4559_v51  ;;  %3493 = vrot.lane.b32.xlu0 %v8944_v29, %s6574_s14  ;;  %v4689_v29 = vld [vmem:[#allocation3 + $0x11b] sm:$0xff] }
 0x4e9   : > { %4429 = vst.msk [vmem:[#allocation4 + $0xb8] sm:$0xff] %vm4405_vm1, %v4344_v2  ;;  %3278 = vrot.lane.b32.xlu1 %v3173_v57, %s6572_s12  ;;  %v3175_v2 = vld [vmem:[#allocation3 + $0x11e] sm:$0xff] }
 0x4eb   : > { %v3912_v15 = vpop.permute.xlu0 %3911 }
 0x4ec   : > { %v3697_v0 = vpop.permute.xlu1 %3696  ;;  %3996 = vst.msk [vmem:[#allocation4 + $0xc0] sm:$0xff] %vm3971_vm15, %v3912_v15  ;;  %4357 = vrot.lane.b32.xlu0 %v4255_v63, %s6582_s22  ;;  %v3174_v15 = vld [vmem:[#allocation3 + $0x116] sm:$0xff] }
 0x4ed   : > { %3780 = vst.msk [vmem:[#allocation4 + $0xc8] sm:$0xff] %vm3754_vm14, %v3697_v0  ;;  %4142 = vrot.lane.b32.xlu1 %v4254_v56, %s6581_s21 }
 0x4ef   : > { %v6446_v14 = vpop.eup %6445  ;;  %v4776_v59 = vpop.permute.xlu0 %4775 }
 0x4f0   : > { %v6448_v18 = vpop.eup %6447  ;;  %v4561_v58 = vpop.permute.xlu1 %4560  ;;  %4862 = vst.msk [vmem:[#allocation4 + $0xb0] sm:$0xff] %vm4839_vm3, %v4776_v59  ;;  %3710 = vrot.lane.b32.xlu0 %v8991_v31, %s6576_s24 }
 0x4f1   : > { %v5504_v28 = vmul.f32 %v6448_v18, %v8957_v44  ;;  %4646 = vst.msk [vmem:[#allocation4 + $0xb8] sm:$0xff] %vm4622_vm2, %v4561_v58  ;;  %3495 = vrot.lane.b32.xlu1 %v3605_v30, %s6574_s14  ;;  %v9032_v30 = vld [vmem:[#allocation3 + $0x131] sm:$0xff] }
 0x4f3   : > { %5541 = vst.msk [vmem:[#allocation5 + $0x30] sm:$0xff] %vm5534_vm5, %v5504_v28  ;;  %v3914_v53 = vpop.permute.xlu0 %3913  ;;  %v6162_v37 = vpop.f32.mrb[8].mxu1  ;;  %v3609_v28 = vld [vmem:[#allocation3 + $0x12f] sm:$0xff] }
 0x4f4   : > { %v3265_v55 = vpop.permute.xlu1 %3264  ;;  %3997 = vst.msk [vmem:[#allocation4 + $0xc8] sm:$0xff] %vm3971_vm15, %v3914_v53  ;;  %v9001_v40 = vadd.f32 %v6162_v37, %v8778_v7  ;;  %v5143_v1 = vpop.f32.mrb[9].mxu1  ;;  %4574 = vrot.lane.b32.xlu0 %v4472_v26, %s6583_s10  ;;  %v3608_v53 = vld [vmem:[#allocation3 + $0x127] sm:$0xff] }
 0x4f5   : > { %3347 = vst.msk [vmem:[#allocation4 + $0xd0] sm:$0xff] %vm3320_vm12, %v3265_v55  ;;  %v5144_v61 = vadd.f32 %v8778_v7, %v5143_v1  ;;  %4359 = vrot.lane.b32.xlu1 %v4256_v12, %s6582_s22  ;;  %v3825_v1 = vld [vmem:[#allocation3 + $0x128] sm:$0xff] }
 0x4f6   : > { %v5931_v38 = vmul.f32 -1.442695, %v9001_v40 }
 0x4f7   : > { %v5930_v5 = vmul.f32 -1.442695, %v5144_v61  ;;  %v4778_v16 = vpop.permute.xlu0 %4777  ;;  %v4898_v27 = vld [vmem:[#allocation4 + $0xb0] sm:$0xff] }
 0x4f8   : > { %6449 = vpow2.f32 %v5931_v38  ;;  %v4129_v32 = vpop.permute.xlu1 %4128  ;;  %4863 = vst.msk [vmem:[#allocation4 + $0xb8] sm:$0xff] %vm4839_vm3, %v4778_v16  ;;  %6181 = vmatprep.mubr.msk.f32.mxu1 %vm4928_vm4, %v4898_v27  ;;  %3927 = vrot.lane.b32.xlu0 %v3823_v24, %s6578_s30 }
 0x4f9   : > { %6451 = vpow2.f32 %v5930_v5  ;;  %4213 = vst.msk [vmem:[#allocation4 + $0xc0] sm:$0xff] %vm4188_vm0, %v4129_v32  ;;  %3712 = vrot.lane.b32.xlu1 %v9011_v49, %s6576_s24 }
 0x4fa   : > { %v5574_v11 = vld [vmem:[#allocation5 + $0x24] ss:$2 sm:$0xff] }
 0x4fb   : > { %5575 = vst.msk [vmem:[#allocation6 + $0x8] sm:$0xff] %vm5534_vm5, %v5574_v11  ;;  %v3482_v45 = vpop.permute.xlu0 %3481 }
 0x4fc   : > { %v3267_v8 = vpop.permute.xlu1 %3266  ;;  %3564 = vst.msk [vmem:[#allocation4 + $0xd0] sm:$0xff] %vm3537_vm13, %v3482_v45  ;;  %4791 = vrot.lane.b32.xlu0 %v4689_v29, %s6584_s29 }
 0x4fd   : > { %3348 = vst.msk [vmem:[#allocation4 + $0xd8] sm:$0xff] %vm3320_vm12, %v3267_v8  ;;  %4576 = vrot.lane.b32.xlu1 %v4473_v20, %s6583_s10 }
 0x4ff   : > { %v4346_v62 = vpop.permute.xlu0 %4345  ;;  %v4899_v42 = vld [vmem:[#allocation4 + $0xb8] sm:$0xff] }
 0x500   : > { %v4131_v21 = vpop.permute.xlu1 %4130  ;;  %4430 = vst.msk [vmem:[#allocation4 + $0xc0] sm:$0xff] %vm4405_vm1, %v4346_v62  ;;  %6182 = vmatmul.mubr.msk.f32.gmra.mrb[22].mxu1 %vm4928_vm4, %v4899_v42  ;;  %4144 = vrot.lane.b32.xlu0 %v4255_v63, %s6581_s21 }
 0x501   : > { %4214 = vst.msk [vmem:[#allocation4 + $0xc8] sm:$0xff] %vm4188_vm0, %v4131_v21  ;;  %3929 = vrot.lane.b32.xlu1 %v3824_v9, %s6578_s30  ;;  %v9090_v9 = vld [vmem:[%s9248_s4] ss:$0 sm:$0xff] }
 0x502   : > { %v6450_v36 = vpop.eup %6449  ;;  %v5595_v50 = vld [vmem:[#allocation6 + $0x8] sm:$0xff] }
 0x503   : > { %v6452_v44 = vpop.eup %6451  ;;  %v5399_v56 = vadd.f32 1.0, %v6450_v36  ;;  %v3699_v39 = vpop.permute.xlu0 %3698  ;;  %6207 = vmatmul.mubr.msk.f32.vlgmr.msra.gmra.mrb[36].mxu0 %vm5534_vm5, %v5595_v50 }
 0x504   : > { %v5398_v60 = vadd.f32 1.0, %v6452_v44  ;;  %v3484_v13 = vpop.permute.xlu1 %3483  ;;  %3781 = vst.msk [vmem:[#allocation4 + $0xd0] sm:$0xff] %vm3754_vm14, %v3699_v39  ;;  %4146 = vrot.lane.b32.xlu0 %v4256_v12, %s6581_s21 }
 0x505   : > { %6453 = vrcp.f32 %v5399_v56  ;;  %3565 = vst.msk [vmem:[#allocation4 + $0xd8] sm:$0xff] %vm3537_vm13, %v3484_v13  ;;  %4793 = vrot.lane.b32.xlu1 %v4690_v43, %s6584_s29 }
 0x506   : > { %6455 = vrcp.f32 %v5398_v60 }
 0x507   : > { %v4563_v47 = vpop.permute.xlu0 %4562 }
 0x508   : > { %v4348_v52 = vpop.permute.xlu1 %4347  ;;  %4647 = vst.msk [vmem:[#allocation4 + $0xc0] sm:$0xff] %vm4622_vm2, %v4563_v47  ;;  %4363 = vrot.lane.b32.xlu0 %v9032_v30, %s6582_s22 }
 0x509   : > { %4431 = vst.msk [vmem:[#allocation4 + $0xc8] sm:$0xff] %vm4405_vm1, %v4348_v52  ;;  %4361 = vrot.lane.b32.xlu1 %v9035_v4, %s6582_s22 }
 0x50b   : > { %v3916_v46 = vpop.permute.xlu0 %3915 }
 0x50c   : > { %v3701_v6 = vpop.permute.xlu1 %3700  ;;  %3998 = vst.msk [vmem:[#allocation4 + $0xd0] sm:$0xff] %vm3971_vm15, %v3916_v46  ;;  %4580 = vrot.lane.b32.xlu0 %v4475_v41, %s6583_s10 }
 0x50d   : > { %3782 = vst.msk [vmem:[#allocation4 + $0xd8] sm:$0xff] %vm3754_vm14, %v3701_v6  ;;  %4578 = vrot.lane.b32.xlu1 %v4474_v22, %s6583_s10 }
 0x50f   : > { %v6454_v54 = vpop.eup %6453  ;;  %v4780_v33 = vpop.permute.xlu0 %4779 }
 0x510   : > { %v6456_v17 = vpop.eup %6455  ;;  %v5507_v3 = vmul.f32 %v6454_v54, %v9001_v40  ;;  %v4565_v23 = vpop.permute.xlu1 %4564  ;;  %4864 = vst.msk [vmem:[#allocation4 + $0xc0] sm:$0xff] %vm4839_vm3, %v4780_v33  ;;  %4797 = vrot.lane.b32.xlu0 %v4692_v34, %s6584_s29 }
 0x511   : > { %4648 = vst.msk [vmem:[#allocation4 + $0xc8] sm:$0xff] %vm4622_vm2, %v4565_v23  ;;  %4795 = vrot.lane.b32.xlu1 %v4691_v10, %s6584_s29 }
 0x512   : > { %5544 = vst.msk [vmem:[#allocation5 + $0x48] sm:$0xff] %vm5534_vm5, %v5507_v3 }
 0x513   : > { %v3918_v19 = vpop.permute.xlu0 %3917  ;;  %v6165_v25 = vpop.f32.mrb[10].mxu1 }
 0x514   : > { %v3269_v48 = vpop.permute.xlu1 %3268  ;;  %3999 = vst.msk [vmem:[#allocation4 + $0xd8] sm:$0xff] %vm3971_vm15, %v3918_v19  ;;  %v5159_v35 = vadd.f32 %v6165_v25, %v8778_v7  ;;  %v5153_v51 = vpop.f32.mrb[11].mxu1  ;;  %3282 = vrot.lane.b32.xlu0 %v3175_v2, %s6572_s12 }
 0x515   : > { %3349 = vst.msk [vmem:[#allocation4 + $0xe0] sm:$0xff] %vm3320_vm12, %v3269_v48  ;;  %v5154_v57 = vadd.f32 %v8778_v7, %v5153_v51  ;;  %3280 = vrot.lane.b32.xlu1 %v3174_v15, %s6572_s12 }
 0x516   : > { %v5933_v0 = vmul.f32 -1.442695, %v5159_v35 }
 0x517   : > { %v5932_v63 = vmul.f32 -1.442695, %v5154_v57  ;;  %v4782_v14 = vpop.permute.xlu0 %4781  ;;  %v4900_v59 = vld [vmem:[#allocation4 + $0xc0] sm:$0xff] }
 0x518   : > { %6457 = vpow2.f32 %v5933_v0  ;;  %v4133_v18 = vpop.permute.xlu1 %4132  ;;  %4865 = vst.msk [vmem:[#allocation4 + $0xc8] sm:$0xff] %vm4839_vm3, %v4782_v14  ;;  %6184 = vmatprep.mubr.msk.f32.mxu1 %vm4928_vm4, %v4900_v59  ;;  %3499 = vrot.lane.b32.xlu0 %v9011_v49, %s6574_s14 }
 0x519   : > { %6459 = vpow2.f32 %v5932_v63  ;;  %4215 = vst.msk [vmem:[#allocation4 + $0xd0] sm:$0xff] %vm4188_vm0, %v4133_v18  ;;  %3497 = vrot.lane.b32.xlu1 %v8991_v31, %s6574_s14  ;;  %v3826_v31 = vld [vmem:[#allocation3 + $0x130] sm:$0xff] }
 0x51b   : > { %v3486_v7 = vpop.permute.xlu0 %3485 }
 0x51c   : > { %v3271_v58 = vpop.permute.xlu1 %3270  ;;  %3566 = vst.msk [vmem:[#allocation4 + $0xe0] sm:$0xff] %vm3537_vm13, %v3486_v7  ;;  %3716 = vrot.lane.b32.xlu0 %v3609_v28, %s6576_s24 }
 0x51d   : > { %3350 = vst.msk [vmem:[#allocation4 + $0xe8] sm:$0xff] %vm3320_vm12, %v3271_v58  ;;  %3714 = vrot.lane.b32.xlu1 %v3608_v53, %s6576_s24  ;;  %s5969_s24 = sshll.u32 %s9254_s28, 6 }
 0x51e   : > { %s9194_s25 = scalar_lea.vmem %s9252_s8, %s5969_s24 }
 0x51f   : > { %v4350_v37 = vpop.permute.xlu0 %4349  ;;  %v4901_v55 = vld [vmem:[#allocation4 + $0xc8] sm:$0xff] }
 0x520   : > { %v4135_v40 = vpop.permute.xlu1 %4134  ;;  %4432 = vst.msk [vmem:[#allocation4 + $0xd0] sm:$0xff] %vm4405_vm1, %v4350_v37  ;;  %6185 = vmatmul.mubr.msk.f32.gmra.mrb[24].mxu1 %vm4928_vm4, %v4901_v55  ;;  %3933 = vrot.lane.b32.xlu0 %v3826_v31, %s6578_s30  ;;  %v4259_v55 = vld [vmem:[#allocation3 + $0x139] sm:$0xff] }
 0x521   : > { %4216 = vst.msk [vmem:[#allocation4 + $0xd8] sm:$0xff] %vm4188_vm0, %v4135_v40  ;;  %3931 = vrot.lane.b32.xlu1 %v3825_v1, %s6578_s30  ;;  %v4260_v40 = vld [vmem:[#allocation3 + $0x141] sm:$0xff] }
 0x522   : > { %v6458_v26 = vpop.eup %6457 }
 0x523   : > { %v6460_v61 = vpop.eup %6459  ;;  %v5401_v12 = vadd.f32 1.0, %v6458_v26  ;;  %v3703_v38 = vpop.permute.xlu0 %3702  ;;  %v4476_v26 = vld [vmem:[#allocation3 + $0x13a] sm:$0xff] }
 0x524   : > { %v5400_v5 = vadd.f32 1.0, %v6460_v61  ;;  %v3488_v16 = vpop.permute.xlu1 %3487  ;;  %3783 = vst.msk [vmem:[#allocation4 + $0xe0] sm:$0xff] %vm3754_vm14, %v3703_v38  ;;  %4150 = vrot.lane.b32.xlu0 %v9032_v30, %s6581_s21  ;;  %v4477_v61 = vld [vmem:[#allocation3 + $0x142] sm:$0xff] }
 0x525   : > { %6461 = vrcp.f32 %v5401_v12  ;;  %3567 = vst.msk [vmem:[#allocation4 + $0xe8] sm:$0xff] %vm3537_vm13, %v3488_v16  ;;  %4148 = vrot.lane.b32.xlu1 %v9035_v4, %s6581_s21  ;;  %v4693_v16 = vld [vmem:[#allocation3 + $0x13b] sm:$0xff] }
 0x526   : > { %6463 = vrcp.f32 %v5400_v5 }
 0x527   : > { %v4567_v27 = vpop.permute.xlu0 %4566 }
 0x528   : > { %v4352_v32 = vpop.permute.xlu1 %4351  ;;  %4649 = vst.msk [vmem:[#allocation4 + $0xd0] sm:$0xff] %vm4622_vm2, %v4567_v27  ;;  %4367 = vrot.lane.b32.xlu0 %v4260_v40, %s6582_s22 }
 0x529   : > { %4433 = vst.msk [vmem:[#allocation4 + $0xd8] sm:$0xff] %vm4405_vm1, %v4352_v32  ;;  %4365 = vrot.lane.b32.xlu1 %v4259_v55, %s6582_s22  ;;  %v4694_v32 = vld [vmem:[#allocation3 + $0x143] sm:$0xff] }
 0x52b   : > { %v3920_v24 = vpop.permute.xlu0 %3919 }
 0x52c   : > { %v3705_v49 = vpop.permute.xlu1 %3704  ;;  %4000 = vst.msk [vmem:[#allocation4 + $0xe0] sm:$0xff] %vm3971_vm15, %v3920_v24  ;;  %4584 = vrot.lane.b32.xlu0 %v4477_v61, %s6583_s10 }
 0x52d   : > { %3784 = vst.msk [vmem:[#allocation4 + $0xe8] sm:$0xff] %vm3754_vm14, %v3705_v49  ;;  %4582 = vrot.lane.b32.xlu1 %v4476_v26, %s6583_s10 }
 0x52f   : > { %v6462_v11 = vpop.eup %6461  ;;  %v4784_v45 = vpop.permute.xlu0 %4783 }
 0x530   : > { %v6464_v8 = vpop.eup %6463  ;;  %v4569_v29 = vpop.permute.xlu1 %4568  ;;  %4866 = vst.msk [vmem:[#allocation4 + $0xd0] sm:$0xff] %vm4839_vm3, %v4784_v45  ;;  %4801 = vrot.lane.b32.xlu0 %v4694_v32, %s6584_s29 }
 0x531   : > { %v5508_v20 = vmul.f32 %v6464_v8, %v5154_v57  ;;  %4650 = vst.msk [vmem:[#allocation4 + $0xd8] sm:$0xff] %vm4622_vm2, %v4569_v29  ;;  %4799 = vrot.lane.b32.xlu1 %v4693_v16, %s6584_s29 }
 0x533   : > { %5545 = vst.msk [vmem:[#allocation5 + $0x50] sm:$0xff] %vm5534_vm5, %v5508_v20  ;;  %v3922_v62 = vpop.permute.xlu0 %3921  ;;  %v6168_v42 = vpop.f32.mrb[12].mxu1 }
 0x534   : > { %v3273_v21 = vpop.permute.xlu1 %3272  ;;  %4001 = vst.msk [vmem:[#allocation4 + $0xe8] sm:$0xff] %vm3971_vm15, %v3922_v62  ;;  %v5169_v36 = vadd.f32 %v9090_v9, %v6168_v42  ;;  %v5163_v50 = vpop.f32.mrb[13].mxu1 }
 0x535   : > { %3351 = vst.msk [vmem:[#allocation4 + $0xf0] sm:$0xff] %vm3320_vm12, %v3273_v21  ;;  %v5164_v44 = vadd.f32 %v9090_v9, %v5163_v50 }
 0x536   : > { %v5935_v56 = vmul.f32 -1.442695, %v5169_v36 }
 0x537   : > { %v5934_v39 = vmul.f32 -1.442695, %v5164_v44  ;;  %v4786_v60 = vpop.permute.xlu0 %4785  ;;  %v4902_v13 = vld [vmem:[#allocation4 + $0xd0] sm:$0xff] }
 0x538   : > { %6465 = vpow2.f32 %v5935_v56  ;;  %v4137_v43 = vpop.permute.xlu1 %4136  ;;  %4867 = vst.msk [vmem:[#allocation4 + $0xd8] sm:$0xff] %vm4839_vm3, %v4786_v60  ;;  %6187 = vmatprep.mubr.msk.f32.mxu1 %vm4928_vm4, %v4902_v13 }
 0x539   : > { %6467 = vpow2.f32 %v5934_v39  ;;  %4217 = vst.msk [vmem:[#allocation4 + $0xe0] sm:$0xff] %vm4188_vm0, %v4137_v43 }
 0x53a   : > { %v5577_v47 = vld [vmem:[#allocation5 + $0x48] ss:$2 sm:$0xff] }
 0x53b   : > { %v3490_v52 = vpop.permute.xlu0 %3489  ;;  %5578 = vst.msk [vmem:[#allocation6 + $0x10] sm:$0xff] %vm5534_vm5, %v5577_v47 }
 0x53c   : > { %v3275_v30 = vpop.permute.xlu1 %3274  ;;  %3568 = vst.msk [vmem:[#allocation4 + $0xf0] sm:$0xff] %vm3537_vm13, %v3490_v52 }
 0x53d   : > { %3352 = vst.msk [vmem:[#allocation4 + $0xf8] sm:$0xff] %vm3320_vm12, %v3275_v30 }
 0x53f   : > { %v4354_v4 = vpop.permute.xlu0 %4353  ;;  %v4903_v46 = vld [vmem:[#allocation4 + $0xd8] sm:$0xff] }
 0x540   : > { %v4139_v6 = vpop.permute.xlu1 %4138  ;;  %4434 = vst.msk [vmem:[#allocation4 + $0xe0] sm:$0xff] %vm4405_vm1, %v4354_v4  ;;  %6188 = vmatmul.mubr.msk.f32.gmra.mrb[26].mxu1 %vm4928_vm4, %v4903_v46 }
 0x541   : > { %4218 = vst.msk [vmem:[#allocation4 + $0xe8] sm:$0xff] %vm4188_vm0, %v4139_v6 }
 0x542   : > { %v6466_v41 = vpop.eup %6465  ;;  %v5596_v22 = vld [vmem:[#allocation6 + $0x10] sm:$0xff] }
 0x543   : > { %v6468_v54 = vpop.eup %6467  ;;  %v5403_v33 = vadd.f32 1.0, %v6466_v41  ;;  %v3707_v17 = vpop.permute.xlu0 %3706  ;;  %6209 = vmatprep.mubr.msk.f32.mxu0 %vm5534_vm5, %v5596_v22 }
 0x544   : > { %v5402_v3 = vadd.f32 1.0, %v6468_v54  ;;  %v3492_v23 = vpop.permute.xlu1 %3491  ;;  %3785 = vst.msk [vmem:[#allocation4 + $0xf0] sm:$0xff] %vm3754_vm14, %v3707_v17 }
 0x545   : > { %6469 = vrcp.f32 %v5403_v33  ;;  %3569 = vst.msk [vmem:[#allocation4 + $0xf8] sm:$0xff] %vm3537_vm13, %v3492_v23 }
 0x546   : > { %6471 = vrcp.f32 %v5402_v3 }
 0x547   : > { %v4571_v34 = vpop.permute.xlu0 %4570 }
 0x548   : > { %v4356_v10 = vpop.permute.xlu1 %4355  ;;  %4651 = vst.msk [vmem:[#allocation4 + $0xe0] sm:$0xff] %vm4622_vm2, %v4571_v34 }
 0x549   : > { %4435 = vst.msk [vmem:[#allocation4 + $0xe8] sm:$0xff] %vm4405_vm1, %v4356_v10 }
 0x54b   : > { %v3924_v19 = vpop.permute.xlu0 %3923 }
 0x54c   : > { %v3709_v25 = vpop.permute.xlu1 %3708  ;;  %4002 = vst.msk [vmem:[#allocation4 + $0xf0] sm:$0xff] %vm3971_vm15, %v3924_v19 }
 0x54d   : > { %3786 = vst.msk [vmem:[#allocation4 + $0xf8] sm:$0xff] %vm3754_vm14, %v3709_v25 }
 0x54f   : > { %v6470_v48 = vpop.eup %6469  ;;  %v4788_v35 = vpop.permute.xlu0 %4787 }
 0x550   : > { %v6472_v51 = vpop.eup %6471  ;;  %v5511_v2 = vmul.f32 %v6470_v48, %v5169_v36  ;;  %v4573_v57 = vpop.permute.xlu1 %4572  ;;  %4868 = vst.msk [vmem:[#allocation4 + $0xe0] sm:$0xff] %vm4839_vm3, %v4788_v35 }
 0x551   : > { %4652 = vst.msk [vmem:[#allocation4 + $0xe8] sm:$0xff] %vm4622_vm2, %v4573_v57 }
 0x552   : > { %5548 = vst.msk [vmem:[#allocation5 + $0x68] sm:$0xff] %vm5534_vm5, %v5511_v2 }
 0x553   : > { %v3926_v15 = vpop.permute.xlu0 %3925  ;;  %v6171_v0 = vpop.f32.mrb[14].mxu1 }
 0x554   : > { %v3277_v63 = vpop.permute.xlu1 %3276  ;;  %4003 = vst.msk [vmem:[#allocation4 + $0xf8] sm:$0xff] %vm3971_vm15, %v3926_v15  ;;  %v5179_v14 = vadd.f32 %v9090_v9, %v6171_v0  ;;  %v5173_v59 = vpop.f32.mrb[15].mxu1 }
 0x555   : > { %3353 = vst.msk [vmem:[#allocation4 + $0x100] sm:$0xff] %vm3320_vm12, %v3277_v63  ;;  %v5174_v18 = vadd.f32 %v9090_v9, %v5173_v59 }
 0x556   : > { %v5937_v7 = vmul.f32 -1.442695, %v5179_v14 }
 0x557   : > { %v5936_v58 = vmul.f32 -1.442695, %v5174_v18  ;;  %v4790_v28 = vpop.permute.xlu0 %4789  ;;  %v4904_v53 = vld [vmem:[#allocation4 + $0xe0] sm:$0xff] }
 0x558   : > { %6473 = vpow2.f32 %v5937_v7  ;;  %v4141_v37 = vpop.permute.xlu1 %4140  ;;  %4869 = vst.msk [vmem:[#allocation4 + $0xe8] sm:$0xff] %vm4839_vm3, %v4790_v28  ;;  %6190 = vmatprep.mubr.msk.f32.mxu1 %vm4928_vm4, %v4904_v53 }
 0x559   : > { %6475 = vpow2.f32 %v5936_v58  ;;  %4219 = vst.msk [vmem:[#allocation4 + $0xf0] sm:$0xff] %vm4188_vm0, %v4141_v37 }
 0x55b   : > { %v3494_v31 = vpop.permute.xlu0 %3493 }
 0x55c   : > { %v3279_v1 = vpop.permute.xlu1 %3278  ;;  %3570 = vst.msk [vmem:[#allocation4 + $0x100] sm:$0xff] %vm3537_vm13, %v3494_v31 }
 0x55d   : > { %3354 = vst.msk [vmem:[#allocation4 + $0x108] sm:$0xff] %vm3320_vm12, %v3279_v1 }
 0x55f   : > { %v4358_v12 = vpop.permute.xlu0 %4357  ;;  %v4905_v38 = vld [vmem:[#allocation4 + $0xe8] sm:$0xff] }
 0x560   : > { %v4143_v5 = vpop.permute.xlu1 %4142  ;;  %4436 = vst.msk [vmem:[#allocation4 + $0xf0] sm:$0xff] %vm4405_vm1, %v4358_v12  ;;  %6191 = vmatmul.mubr.msk.f32.gmra.mrb[28].mxu1 %vm4928_vm4, %v4905_v38 }
 0x561   : > { %4220 = vst.msk [vmem:[#allocation4 + $0xf8] sm:$0xff] %vm4188_vm0, %v4143_v5 }
 0x562   : > { %v6474_v27 = vpop.eup %6473 }
 0x563   : > { %v6476_v24 = vpop.eup %6475  ;;  %v5405_v49 = vadd.f32 1.0, %v6474_v27  ;;  %v3711_v11 = vpop.permute.xlu0 %3710 }
 0x564   : > { %v5404_v45 = vadd.f32 1.0, %v6476_v24  ;;  %v3496_v8 = vpop.permute.xlu1 %3495  ;;  %3787 = vst.msk [vmem:[#allocation4 + $0x100] sm:$0xff] %vm3754_vm14, %v3711_v11 }
 0x565   : > { %6477 = vrcp.f32 %v5405_v49  ;;  %3571 = vst.msk [vmem:[#allocation4 + $0x108] sm:$0xff] %vm3537_vm13, %v3496_v8 }
 0x566   : > { %6479 = vrcp.f32 %v5404_v45 }
 0x567   : > { %v4575_v29 = vpop.permute.xlu0 %4574 }
 0x568   : > { %v4360_v20 = vpop.permute.xlu1 %4359  ;;  %4653 = vst.msk [vmem:[#allocation4 + $0xf0] sm:$0xff] %vm4622_vm2, %v4575_v29 }
 0x569   : > { %4437 = vst.msk [vmem:[#allocation4 + $0xf8] sm:$0xff] %vm4405_vm1, %v4360_v20 }
 0x56b   : > { %v3928_v62 = vpop.permute.xlu0 %3927 }
 0x56c   : > { %v3713_v42 = vpop.permute.xlu1 %3712  ;;  %4004 = vst.msk [vmem:[#allocation4 + $0x100] sm:$0xff] %vm3971_vm15, %v3928_v62 }
 0x56d   : > { %3788 = vst.msk [vmem:[#allocation4 + $0x108] sm:$0xff] %vm3754_vm14, %v3713_v42 }
 0x56f   : > { %v6478_v21 = vpop.eup %6477  ;;  %v4792_v36 = vpop.permute.xlu0 %4791 }
 0x570   : > { %v6480_v50 = vpop.eup %6479  ;;  %v5513_v44 = vmul.f32 %v6478_v21, %v5179_v14  ;;  %v4577_v56 = vpop.permute.xlu1 %4576  ;;  %4870 = vst.msk [vmem:[#allocation4 + $0xf0] sm:$0xff] %vm4839_vm3, %v4792_v36 }
 0x571   : > { %v5512_v39 = vmul.f32 %v6480_v50, %v5174_v18  ;;  %4654 = vst.msk [vmem:[#allocation4 + $0xf8] sm:$0xff] %vm4622_vm2, %v4577_v56 }
 0x572   : > { %5550 = vst.msk [vmem:[#allocation5 + $0x78] sm:$0xff] %vm5534_vm5, %v5513_v44 }
 0x573   : > { %5549 = vst.msk [vmem:[#allocation5 + $0x70] sm:$0xff] %vm5534_vm5, %v5512_v39  ;;  %v4145_v60 = vpop.permute.xlu0 %4144  ;;  %v6174_v13 = vpop.f32.mrb[16].mxu1 }
 0x574   : > { %v3930_v43 = vpop.permute.xlu1 %3929  ;;  %4221 = vst.msk [vmem:[#allocation4 + $0x100] sm:$0xff] %vm4188_vm0, %v4145_v60  ;;  %v5189_v47 = vadd.f32 %v9090_v9, %v6174_v13  ;;  %v5183_v52 = vpop.f32.mrb[17].mxu1 }
 0x575   : > { %4005 = vst.msk [vmem:[#allocation4 + $0x108] sm:$0xff] %vm3971_vm15, %v3930_v43  ;;  %v5184_v30 = vadd.f32 %v9090_v9, %v5183_v52 }
 0x576   : > { %v5939_v4 = vmul.f32 -1.442695, %v5189_v47 }
 0x577   : > { %v5938_v46 = vmul.f32 -1.442695, %v5184_v30  ;;  %v4147_v6 = vpop.permute.xlu0 %4146  ;;  %v4906_v41 = vld [vmem:[#allocation4 + $0xf0] sm:$0xff] }
 0x578   : > { %6481 = vpow2.f32 %v5939_v4  ;;  %v4794_v22 = vpop.permute.xlu1 %4793  ;;  %4222 = vst.msk [vmem:[#allocation4 + $0x108] sm:$0xff] %vm4188_vm0, %v4147_v6  ;;  %6193 = vmatprep.mubr.msk.f32.mxu1 %vm4928_vm4, %v4906_v41 }
 0x579   : > { %6483 = vpow2.f32 %v5938_v46  ;;  %4871 = vst.msk [vmem:[#allocation4 + $0xf8] sm:$0xff] %vm4839_vm3, %v4794_v22  ;;  %v9187_v22 = vld [vmem:[%s9250_s6] ss:$0 sm:$0xff] }
 0x57a   : > { %v5580_v54 = vld [vmem:[#allocation5 + $0x6c] ss:$2 sm:$0xff] }
 0x57b   : > { %v4364_v33 = vpop.permute.xlu0 %4363  ;;  %5581 = vst.msk [vmem:[#allocation6 + $0x18] sm:$0xff] %vm5534_vm5, %v5580_v54 }
 0x57c   : > { %v4362_v17 = vpop.permute.xlu1 %4361  ;;  %4439 = vst.msk [vmem:[#allocation4 + $0x108] sm:$0xff] %vm4405_vm1, %v4364_v33 }
 0x57d   : > { %4438 = vst.msk [vmem:[#allocation4 + $0x100] sm:$0xff] %vm4405_vm1, %v4362_v17 }
 0x57f   : > { %v4581_v3 = vpop.permute.xlu0 %4580 }
 0x580   : > { %v4579_v23 = vpop.permute.xlu1 %4578  ;;  %4656 = vst.msk [vmem:[#allocation4 + $0x108] sm:$0xff] %vm4622_vm2, %v4581_v3  ;;  %v4907_v34 = vld [vmem:[#allocation4 + $0xf8] sm:$0xff] }
 0x581   : > { %4655 = vst.msk [vmem:[#allocation4 + $0x100] sm:$0xff] %vm4622_vm2, %v4579_v23  ;;  %6194 = vmatmul.mubr.msk.f32.gmra.mrb[30].mxu1 %vm4928_vm4, %v4907_v34 }
 0x582   : > { %v6482_v10 = vpop.eup %6481  ;;  %v5597_v19 = vld [vmem:[#allocation6 + $0x18] sm:$0xff] }
 0x583   : > { %v6484_v25 = vpop.eup %6483  ;;  %v5407_v48 = vadd.f32 1.0, %v6482_v10  ;;  %v4798_v35 = vpop.permute.xlu0 %4797  ;;  %6210 = vmatmul.mubr.msk.f32.gmra.mrb[38].mxu0 %vm5534_vm5, %v5597_v19 }
 0x584   : > { %v5406_v51 = vadd.f32 1.0, %v6484_v25  ;;  %v4796_v2 = vpop.permute.xlu1 %4795  ;;  %4873 = vst.msk [vmem:[#allocation4 + $0x108] sm:$0xff] %vm4839_vm3, %v4798_v35 }
 0x585   : > { %6485 = vrcp.f32 %v5407_v48  ;;  %4872 = vst.msk [vmem:[#allocation4 + $0x100] sm:$0xff] %vm4839_vm3, %v4796_v2 }
 0x586   : > { %6487 = vrcp.f32 %v5406_v51 }
 0x587   : > { %v3283_v57 = vpop.permute.xlu0 %3282 }
 0x588   : > { %v3281_v15 = vpop.permute.xlu1 %3280  ;;  %3356 = vst.msk [vmem:[#allocation4 + $0x118] sm:$0xff] %vm3320_vm12, %v3283_v57 }
 0x589   : > { %3355 = vst.msk [vmem:[#allocation4 + $0x110] sm:$0xff] %vm3320_vm12, %v3281_v15 }
 0x58b   : > { %v3500_v0 = vpop.permute.xlu0 %3499  ;;  %v4909_v63 = vld [vmem:[#allocation4 + $0x108] sm:$0xff] }
 0x58c   : > { %v3498_v14 = vpop.permute.xlu1 %3497  ;;  %3573 = vst.msk [vmem:[#allocation4 + $0x118] sm:$0xff] %vm3537_vm13, %v3500_v0  ;;  %v4908_v59 = vld [vmem:[#allocation4 + $0x100] sm:$0xff] }
 0x58d   : > { %3572 = vst.msk [vmem:[#allocation4 + $0x110] sm:$0xff] %vm3537_vm13, %v3498_v14  ;;  %6196 = vmatprep.mubr.msk.f32.mxu1 %vm4928_vm4, %v4908_v59 }
 0x58e   : > { %6197 = vmatmul.mubr.msk.f32.gmra.mrb[32].mxu1 %vm4928_vm4, %v4909_v63 }
 0x58f   : > { %v6486_v18 = vpop.eup %6485  ;;  %v3717_v7 = vpop.permute.xlu0 %3716 }
 0x590   : > { %v6488_v58 = vpop.eup %6487  ;;  %v3715_v28 = vpop.permute.xlu1 %3714  ;;  %3790 = vst.msk [vmem:[#allocation4 + $0x118] sm:$0xff] %vm3754_vm14, %v3717_v7 }
 0x591   : > { %3789 = vst.msk [vmem:[#allocation4 + $0x110] sm:$0xff] %vm3754_vm14, %v3715_v28 }
 0x593   : > { %v3934_v53 = vpop.permute.xlu0 %3933  ;;  %v6177_v37 = vpop.f32.mrb[18].mxu1 }
 0x594   : > { %v3932_v55 = vpop.permute.xlu1 %3931  ;;  %4007 = vst.msk [vmem:[#allocation4 + $0x118] sm:$0xff] %vm3971_vm15, %v3934_v53  ;;  %v5199_v40 = vadd.f32 %v9090_v9, %v6177_v37  ;;  %v5193_v31 = vpop.f32.mrb[19].mxu1 }
 0x595   : > { %4006 = vst.msk [vmem:[#allocation4 + $0x110] sm:$0xff] %vm3971_vm15, %v3932_v55  ;;  %v5194_v1 = vadd.f32 %v9090_v9, %v5193_v31 }
 0x596   : > { %v5941_v26 = vmul.f32 -1.442695, %v5199_v40 }
 0x597   : > { %v5940_v61 = vmul.f32 -1.442695, %v5194_v1  ;;  %v4151_v12 = vpop.permute.xlu0 %4150 }
 0x598   : > { %6489 = vpow2.f32 %v5941_v26  ;;  %v4149_v38 = vpop.permute.xlu1 %4148  ;;  %4224 = vst.msk [vmem:[#allocation4 + $0x118] sm:$0xff] %vm4188_vm0, %v4151_v12 }
 0x599   : > { %6491 = vpow2.f32 %v5940_v61  ;;  %4223 = vst.msk [vmem:[#allocation4 + $0x110] sm:$0xff] %vm4188_vm0, %v4149_v38 }
 0x59b   : > { %v4368_v43 = vpop.permute.xlu0 %4367 }
 0x59c   : > { %v4366_v13 = vpop.permute.xlu1 %4365  ;;  %4441 = vst.msk [vmem:[#allocation4 + $0x118] sm:$0xff] %vm4405_vm1, %v4368_v43 }
 0x59d   : > { %4440 = vst.msk [vmem:[#allocation4 + $0x110] sm:$0xff] %vm4405_vm1, %v4366_v13 }
 0x59f   : > { %v4585_v4 = vpop.permute.xlu0 %4584 }
 0x5a0   : > { %v4583_v30 = vpop.permute.xlu1 %4582  ;;  %4658 = vst.msk [vmem:[#allocation4 + $0x118] sm:$0xff] %vm4622_vm2, %v4585_v4 }
 0x5a1   : > { %4657 = vst.msk [vmem:[#allocation4 + $0x110] sm:$0xff] %vm4622_vm2, %v4583_v30 }
 0x5a2   : > { %v6490_v5 = vpop.eup %6489 }
 0x5a3   : > { %v6492_v16 = vpop.eup %6491  ;;  %v5409_v27 = vadd.f32 1.0, %v6490_v5  ;;  %v4802_v17 = vpop.permute.xlu0 %4801 }
 0x5a4   : > { %v5408_v32 = vadd.f32 1.0, %v6492_v16  ;;  %v4800_v54 = vpop.permute.xlu1 %4799  ;;  %4875 = vst.msk [vmem:[#allocation4 + $0x118] sm:$0xff] %vm4839_vm3, %v4802_v17 }
 0x5a5   : > { %6493 = vrcp.f32 %v5409_v27  ;;  %4874 = vst.msk [vmem:[#allocation4 + $0x110] sm:$0xff] %vm4839_vm3, %v4800_v54 }
 0x5a6   : > { %6495 = vrcp.f32 %v5408_v32 }
 0x5ab   : > { %v4911_v35 = vld [vmem:[#allocation4 + $0x118] sm:$0xff] }
 0x5ac   : > { %v4910_v48 = vld [vmem:[#allocation4 + $0x110] sm:$0xff] }
 0x5ad   : > { %6199 = vmatprep.mubr.msk.f32.mxu1 %vm4928_vm4, %v4910_v48 }
 0x5ae   : > { %6200 = vmatmul.mubr.msk.f32.gmra.mrb[34].mxu1 %vm4928_vm4, %v4911_v35 }
 0x5af   : > { %v6494_v24 = vpop.eup %6493 }
 0x5b0   : > { %v6496_v49 = vpop.eup %6495  ;;  %v5517_v11 = vmul.f32 %v6494_v24, %v5199_v40 }
 0x5b1   : > { %v5516_v45 = vmul.f32 %v6496_v49, %v5194_v1 }
 0x5b2   : > { %5554 = vst.msk [vmem:[#allocation5 + $0x98] sm:$0xff] %vm5534_vm5, %v5517_v11 }
 0x5b3   : > { %5553 = vst.msk [vmem:[#allocation5 + $0x90] sm:$0xff] %vm5534_vm5, %v5516_v45  ;;  %v6180_v8 = vpop.f32.mrb[20].mxu1 }
 0x5b4   : > { %v5209_v29 = vadd.f32 %v9090_v9, %v6180_v8  ;;  %v5203_v20 = vpop.f32.mrb[21].mxu1 }
 0x5b5   : > { %v5204_v62 = vadd.f32 %v9090_v9, %v5203_v20 }
 0x5b6   : > { %v5943_v42 = vmul.f32 -1.442695, %v5209_v29 }
 0x5b7   : > { %v5942_v21 = vmul.f32 -1.442695, %v5204_v62 }
 0x5b8   : > { %6497 = vpow2.f32 %v5943_v42 }
 0x5b9   : > { %6499 = vpow2.f32 %v5942_v21 }
 0x5ba   : > { %v5583_v36 = vld [vmem:[#allocation5 + $0x90] ss:$2 sm:$0xff] }
 0x5bb   : > { %5584 = vst.msk [vmem:[#allocation6 + $0x20] sm:$0xff] %vm5534_vm5, %v5583_v36 }
 0x5c2   : > { %v6498_v50 = vpop.eup %6497  ;;  %v5598_v44 = vld [vmem:[#allocation6 + $0x20] sm:$0xff] }
 0x5c3   : > { %v6500_v56 = vpop.eup %6499  ;;  %v5411_v39 = vadd.f32 1.0, %v6498_v50  ;;  %6212 = vmatprep.mubr.msk.f32.mxu0 %vm5534_vm5, %v5598_v44 }
 0x5c4   : > { %v5410_v60 = vadd.f32 1.0, %v6500_v56 }
 0x5c5   : > { %6501 = vrcp.f32 %v5411_v39 }
 0x5c6   : > { %6503 = vrcp.f32 %v5410_v60 }
 0x5cf   : > { %v6502_v47 = vpop.eup %6501 }
 0x5d0   : > { %v6504_v52 = vpop.eup %6503 }
 0x5d3   : > { %v6183_v46 = vpop.f32.mrb[22].mxu1 }
 0x5d4   : > { %v5219_v6 = vadd.f32 %v9090_v9, %v6183_v46  ;;  %v5213_v41 = vpop.f32.mrb[23].mxu1 }
 0x5d5   : > { %v5214_v33 = vadd.f32 %v9090_v9, %v5213_v41 }
 0x5d6   : > { %v5945_v3 = vmul.f32 -1.442695, %v5219_v6  ;;  %v6208_v23 = vpop.f32.mrb[36].mxu0 }
 0x5d7   : > { %v5944_v34 = vmul.f32 -1.442695, %v5214_v33  ;;  %v5707_v10 = vadd.f32 %v6208_v23, %v9187_v22  ;;  %v5701_v19 = vpop.f32.mrb[37].mxu0 }
 0x5d8   : > { %6505 = vpow2.f32 %v5945_v3  ;;  %v5702_v25 = vadd.f32 %v9187_v22, %v5701_v19 }
 0x5d9   : > { %6507 = vpow2.f32 %v5944_v34  ;;  %5741 = vst [vmem:[%s9194_s25 + $0x8] sm:$0xff] %v5707_v10 }
 0x5da   : > { %5740 = vst [vmem:[%s9194_s25] sm:$0xff] %v5702_v25 }
 0x5e2   : > { %v6506_v51 = vpop.eup %6505 }
 0x5e3   : > { %v6508_v2 = vpop.eup %6507  ;;  %v5413_v57 = vadd.f32 1.0, %v6506_v51 }
 0x5e4   : > { %v5412_v15 = vadd.f32 1.0, %v6508_v2 }
 0x5e5   : > { %6509 = vrcp.f32 %v5413_v57 }
 0x5e6   : > { %6511 = vrcp.f32 %v5412_v15 }
 0x5ef   : > { %v6510_v0 = vpop.eup %6509 }
 0x5f0   : > { %v6512_v63 = vpop.eup %6511  ;;  %v5521_v14 = vmul.f32 %v6510_v0, %v5219_v6 }
 0x5f1   : > { %v5520_v59 = vmul.f32 %v6512_v63, %v5214_v33 }
 0x5f2   : > { %5558 = vst.msk [vmem:[#allocation5 + $0xb8] sm:$0xff] %vm5534_vm5, %v5521_v14 }
 0x5f3   : > { %5557 = vst.msk [vmem:[#allocation5 + $0xb0] sm:$0xff] %vm5534_vm5, %v5520_v59  ;;  %v6186_v18 = vpop.f32.mrb[24].mxu1 }
 0x5f4   : > { %v5229_v7 = vadd.f32 %v9090_v9, %v6186_v18  ;;  %v5223_v58 = vpop.f32.mrb[25].mxu1 }
 0x5f5   : > { %v5224_v28 = vadd.f32 %v9090_v9, %v5223_v58 }
 0x5f6   : > { %v5947_v53 = vmul.f32 -1.442695, %v5229_v7 }
 0x5f7   : > { %v5946_v37 = vmul.f32 -1.442695, %v5224_v28 }
 0x5f8   : > { %6513 = vpow2.f32 %v5947_v53 }
 0x5f9   : > { %6515 = vpow2.f32 %v5946_v37 }
 0x602   : > { %v6514_v55 = vpop.eup %6513 }
 0x603   : > { %v6516_v40 = vpop.eup %6515  ;;  %v5415_v31 = vadd.f32 1.0, %v6514_v55 }
 0x604   : > { %v5414_v1 = vadd.f32 1.0, %v6516_v40 }
 0x605   : > { %6517 = vrcp.f32 %v5415_v31 }
 0x606   : > { %6519 = vrcp.f32 %v5414_v1 }
 0x60f   : > { %v6518_v26 = vpop.eup %6517 }
 0x610   : > { %v6520_v61 = vpop.eup %6519 }
 0x611   : > { %v5522_v12 = vmul.f32 %v6520_v61, %v5224_v28 }
 0x613   : > { %5559 = vst.msk [vmem:[#allocation5 + $0xc0] sm:$0xff] %vm5534_vm5, %v5522_v12  ;;  %v6189_v38 = vpop.f32.mrb[26].mxu1 }
 0x614   : > { %v5239_v5 = vadd.f32 %v9090_v9, %v6189_v38  ;;  %v5233_v16 = vpop.f32.mrb[27].mxu1 }
 0x615   : > { %v5234_v27 = vadd.f32 %v9090_v9, %v5233_v16 }
 0x616   : > { %v5949_v32 = vmul.f32 -1.442695, %v5239_v5 }
 0x617   : > { %v5948_v24 = vmul.f32 -1.442695, %v5234_v27 }
 0x618   : > { %6521 = vpow2.f32 %v5949_v32 }
 0x619   : > { %6523 = vpow2.f32 %v5948_v24 }
 0x61a   : > { %v5586_v49 = vld [vmem:[#allocation5 + $0xb4] ss:$2 sm:$0xff] }
 0x61b   : > { %5587 = vst.msk [vmem:[#allocation6 + $0x28] sm:$0xff] %vm5534_vm5, %v5586_v49 }
 0x622   : > { %v6522_v11 = vpop.eup %6521  ;;  %v5599_v45 = vld [vmem:[#allocation6 + $0x28] sm:$0xff] }
 0x623   : > { %v6524_v8 = vpop.eup %6523  ;;  %v5417_v29 = vadd.f32 1.0, %v6522_v11  ;;  %6213 = vmatmul.mubr.msk.f32.gmra.mrb[40].mxu0 %vm5534_vm5, %v5599_v45 }
 0x624   : > { %v5416_v20 = vadd.f32 1.0, %v6524_v8 }
 0x625   : > { %6525 = vrcp.f32 %v5417_v29 }
 0x626   : > { %6527 = vrcp.f32 %v5416_v20 }
 0x62f   : > { %v6526_v62 = vpop.eup %6525 }
 0x630   : > { %v6528_v42 = vpop.eup %6527  ;;  %v5525_v21 = vmul.f32 %v6526_v62, %v5239_v5 }
 0x632   : > { %5562 = vst.msk [vmem:[#allocation5 + $0xd8] sm:$0xff] %vm5534_vm5, %v5525_v21 }
 0x633   : > { %v6192_v36 = vpop.f32.mrb[28].mxu1 }
 0x634   : > { %v5249_v50 = vadd.f32 %v9090_v9, %v6192_v36  ;;  %v5243_v44 = vpop.f32.mrb[29].mxu1 }
 0x635   : > { %v5244_v56 = vadd.f32 %v9090_v9, %v5243_v44 }
 0x636   : > { %v5951_v39 = vmul.f32 -1.442695, %v5249_v50 }
 0x637   : > { %v5950_v60 = vmul.f32 -1.442695, %v5244_v56 }
 0x638   : > { %6529 = vpow2.f32 %v5951_v39 }
 0x639   : > { %6531 = vpow2.f32 %v5950_v60 }
 0x642   : > { %v6530_v13 = vpop.eup %6529 }
 0x643   : > { %v6532_v43 = vpop.eup %6531  ;;  %v5419_v47 = vadd.f32 1.0, %v6530_v13 }
 0x644   : > { %v5418_v52 = vadd.f32 1.0, %v6532_v43 }
 0x645   : > { %6533 = vrcp.f32 %v5419_v47 }
 0x646   : > { %6535 = vrcp.f32 %v5418_v52 }
 0x64f   : > { %v6534_v30 = vpop.eup %6533 }
 0x650   : > { %v6536_v4 = vpop.eup %6535 }
 0x651   : > { %v5526_v46 = vmul.f32 %v6536_v4, %v5244_v56 }
 0x653   : > { %5563 = vst.msk [vmem:[#allocation5 + $0xe0] sm:$0xff] %vm5534_vm5, %v5526_v46 }
 0x654   : > { %v6195_v6 = vpop.f32.mrb[30].mxu1 }
 0x655   : > { %v5259_v41 = vadd.f32 %v9090_v9, %v6195_v6  ;;  %v5253_v54 = vpop.f32.mrb[31].mxu1 }
 0x656   : > { %v5254_v33 = vadd.f32 %v9090_v9, %v5253_v54  ;;  %v6211_v17 = vpop.f32.mrb[38].mxu0 }
 0x657   : > { %v5953_v3 = vmul.f32 -1.442695, %v5259_v41  ;;  %v5717_v23 = vadd.f32 %v6211_v17, %v9187_v22  ;;  %v5711_v34 = vpop.f32.mrb[39].mxu0 }
 0x658   : > { %v5952_v10 = vmul.f32 -1.442695, %v5254_v33  ;;  %v5712_v19 = vadd.f32 %v9187_v22, %v5711_v34 }
 0x659   : > { %6537 = vpow2.f32 %v5953_v3  ;;  %5743 = vst [vmem:[%s9194_s25 + $0x18] sm:$0xff] %v5717_v23 }
 0x65a   : > { %6539 = vpow2.f32 %v5952_v10  ;;  %5742 = vst [vmem:[%s9194_s25 + $0x10] sm:$0xff] %v5712_v19  ;;  %v5589_v25 = vld [vmem:[#allocation5 + $0xd8] ss:$2 sm:$0xff] }
 0x65b   : > { %5590 = vst.msk [vmem:[#allocation6 + $0x30] sm:$0xff] %vm5534_vm5, %v5589_v25 }
 0x661   : > { %v6198_v48 = vpop.f32.mrb[32].mxu1 }
 0x662   : > { %v5269_v35 = vadd.f32 %v9090_v9, %v6198_v48  ;;  %v5263_v51 = vpop.f32.mrb[33].mxu1  ;;  %v5600_v2 = vld [vmem:[#allocation6 + $0x30] sm:$0xff] }
 0x663   : > { %v6538_v57 = vpop.eup %6537  ;;  %v5264_v15 = vadd.f32 %v9090_v9, %v5263_v51  ;;  %6215 = vmatprep.mubr.msk.f32.mxu1 %vm5534_vm5, %v5600_v2 }
 0x664   : > { %v6540_v0 = vpop.eup %6539  ;;  %v5421_v63 = vadd.f32 1.0, %v6538_v57  ;;  %v5955_v14 = vmul.f32 -1.442695, %v5269_v35 }
 0x665   : > { %v5420_v59 = vadd.f32 1.0, %v6540_v0  ;;  %v5954_v18 = vmul.f32 -1.442695, %v5264_v15 }
 0x666   : > { %6541 = vrcp.f32 %v5421_v63 }
 0x667   : > { %6543 = vrcp.f32 %v5420_v59 }
 0x668   : > { %6545 = vpow2.f32 %v5955_v14 }
 0x669   : > { %6547 = vpow2.f32 %v5954_v18 }
 0x670   : > { %v6542_v7 = vpop.eup %6541 }
 0x671   : > { %v6544_v58 = vpop.eup %6543  ;;  %v5529_v28 = vmul.f32 %v6542_v7, %v5259_v41 }
 0x672   : > { %v6546_v53 = vpop.eup %6545 }
 0x673   : > { %v6548_v37 = vpop.eup %6547  ;;  %5566 = vst.msk [vmem:[#allocation5 + $0xf8] sm:$0xff] %vm5534_vm5, %v5529_v28  ;;  %v5423_v55 = vadd.f32 1.0, %v6546_v53 }
 0x674   : > { %v5422_v40 = vadd.f32 1.0, %v6548_v37 }
 0x675   : > { %6549 = vrcp.f32 %v5423_v55 }
 0x676   : > { %6551 = vrcp.f32 %v5422_v40 }
 0x67f   : > { %v6550_v31 = vpop.eup %6549 }
 0x680   : > { %v6552_v1 = vpop.eup %6551  ;;  %v5531_v26 = vmul.f32 %v6550_v31, %v5269_v35 }
 0x681   : > { %v5530_v61 = vmul.f32 %v6552_v1, %v5264_v15  ;;  %v6201_v5 = vpop.f32.mrb[34].mxu1 }
 0x682   : > { %5568 = vst.msk [vmem:[#allocation5 + $0x108] sm:$0xff] %vm5534_vm5, %v5531_v26  ;;  %v5279_v16 = vadd.f32 %v9090_v9, %v6201_v5  ;;  %v5273_v27 = vpop.f32.mrb[35].mxu1 }
 0x683   : > { %5567 = vst.msk [vmem:[#allocation5 + $0x100] sm:$0xff] %vm5534_vm5, %v5530_v61  ;;  %v5274_v32 = vadd.f32 %v9090_v9, %v5273_v27 }
 0x684   : > { %v5957_v24 = vmul.f32 -1.442695, %v5279_v16 }
 0x685   : > { %v5956_v49 = vmul.f32 -1.442695, %v5274_v32 }
 0x686   : > { %6553 = vpow2.f32 %v5957_v24 }
 0x687   : > { %6555 = vpow2.f32 %v5956_v49 }
 0x68a   : > { %v5592_v12 = vld [vmem:[#allocation5 + $0xfc] ss:$2 sm:$0xff] }
 0x68b   : > { %5593 = vst.msk [vmem:[#allocation6 + $0x38] sm:$0xff] %vm5534_vm5, %v5592_v12 }
 0x690   : > { %v6554_v11 = vpop.eup %6553 }
 0x691   : > { %v6556_v45 = vpop.eup %6555  ;;  %v5425_v8 = vadd.f32 1.0, %v6554_v11 }
 0x692   : > { %v5601_v38 = vld [vmem:[#allocation6 + $0x38] sm:$0xff]  ;;  %v5424_v29 = vadd.f32 1.0, %v6556_v45 }
 0x693   : > { %6216 = vmatmul.mubr.msk.f32.vlgmr.msra.gmra.mrb[36].mxu1 %vm5534_vm5, %v5601_v38  ;;  %6557 = vrcp.f32 %v5425_v8 }
 0x694   : > { %6559 = vrcp.f32 %v5424_v29 }
 0x69d   : > { %v6558_v20 = vpop.eup %6557 }
 0x69e   : > { %v6560_v62 = vpop.eup %6559 }
 0x6f6   : > { %v6214_v42 = vpop.f32.mrb[40].mxu0 }
 0x6f7   : > { %v5727_v21 = vadd.f32 %v6214_v42, %v9187_v22  ;;  %v5721_v9 = vpop.f32.mrb[41].mxu0 }
 0x6f8   : > { %v5722_v36 = vadd.f32 %v9187_v22, %v5721_v9 }
 0x6f9   : > { %5745 = vst [vmem:[%s9194_s25 + $0x28] sm:$0xff] %v5727_v21 }
 0x6fa   : > { %5744 = vst [vmem:[%s9194_s25 + $0x20] sm:$0xff] %v5722_v36 }
 0x766   : > { %v6217_v50 = vpop.f32.mrb[36].mxu1 }
 0x767   : > { %v5737_v44 = vadd.f32 %v6217_v50, %v9187_v22  ;;  %v5731_v56 = vpop.f32.mrb[37].mxu1 }
 0x768   : > { %v5732_v39 = vadd.f32 %v9187_v22, %v5731_v56 }
 0x769   : > { %5747 = vst [vmem:[%s9194_s25 + $0x38] sm:$0xff] %v5737_v44 }
 0x76a   : > { %5746 = vst [vmem:[%s9194_s25 + $0x30] sm:$0xff] %v5732_v39 }
 0x76b PF: > { %s18_s27 = sadd.s32 1, %s6569_s27  }
 0x76c   : > { %p15_p4 = scmp.ge.s32.totalorder %s18_s27, 4  }
 0x76e   :  { %17 = sbr.rel (!%p15_p4) target bundleno = 1 (0x1), region = 89 }

</bundles_post_ra>
